<compile_context>
chip_gen: v6e
topology: v6e:2x2x1
jax: 0.10.0
libtpu: 0.0.40
codegen_flags: <defaults>
</compile_context>

<pallas_src>
import functools

import numpy as np
import jax
import jax.numpy as jnp
from jax.experimental import pallas as pl
from jax.experimental.pallas import tpu as pltpu


# ----------------------------------------------------------------------------
# Helpers
# ----------------------------------------------------------------------------
def _round_up(x, m):
    return ((x + m - 1) // m) * m


def _fit_tile(np_, cap):
    """Largest power-of-two tile <= cap (>=128) that divides np_."""
    t = cap
    while t > 128 and np_ % t != 0:
        t //= 2
    return min(t, np_)


def _choose_tiles(num_nodes, max_tm=512, max_tk=1024):
    np_ = _round_up(max(num_nodes, 128), 128)
    return np_, _fit_tile(np_, max_tm), _fit_tile(np_, max_tk)


def _vmem_limit_bytes(np_, dp, tm, tk, cur_resident):
    adj = 2 * tm * tk                                     # int8, double-buffered
    cast_tmp = tm * tk * 6                                # f32 + bf16 cast temps
    cur = 2 * (np_ * dp * 2 if cur_resident else tk * dp * 2)
    total_in = 2 * tm * dp * 4
    dinv = 2 * tm * 128 * 4                               # lane-padded
    outs = 2 * tm * dp * (2 + 4)
    acc = tm * dp * 4
    est = adj + cast_tmp + cur + total_in + dinv + outs + acc
    # Headroom, but stay below v7x's 64 MiB physical VMEM.
    return int(min(max(2 * est, 32 * 2**20), 60 * 2**20))


# ----------------------------------------------------------------------------
# Pallas kernel: one propagation layer
#   acc   = A_bin @ s_cur                (bf16 MXU, f32 accumulate)
#   e_new = dinv * acc                   (epilogue)
#   total+= e_new ;  s_new = dinv * e_new
# ----------------------------------------------------------------------------
def _layer_kernel(adj_ref, dinv_ref, cur_ref, total_ref,
                  new_state_ref, new_total_ref, acc_ref, *, tk, cur_resident):
    k = pl.program_id(1)

    @pl.when(k == 0)
    def _():
        acc_ref[...] = jnp.zeros_like(acc_ref)

    if cur_resident:
        off = pl.multiple_of(k * tk, tk)
        cur_blk = cur_ref[pl.ds(off, tk), :]
    else:
        cur_blk = cur_ref[...]

    # int8 (binary/count) adjacency -> bf16 in VMEM; values are exact.
    a = adj_ref[...].astype(jnp.float32).astype(jnp.bfloat16)
    acc_ref[...] += jnp.dot(a, cur_blk, preferred_element_type=jnp.float32)

    @pl.when(k == pl.num_programs(1) - 1)
    def _():
        dinv = dinv_ref[...]                          # (tm, 1) f32
        new_emb = acc_ref[...] * dinv                 # e_{l+1}
        new_total_ref[...] = total_ref[...] + new_emb
        new_state_ref[...] = (new_emb * dinv).astype(new_state_ref.dtype)


def _propagate_one_layer(adj_i8, dinv, cur, total, *, tm, tk, cur_resident,
                         vmem_limit):
    np_, dp = cur.shape
    grid = (np_ // tm, np_ // tk)

    if cur_resident:
        cur_spec = pl.BlockSpec((np_, dp), lambda i, k: (0, 0))   # VMEM-resident
    else:
        cur_spec = pl.BlockSpec((tk, dp), lambda i, k: (k, 0))

    kernel = functools.partial(_layer_kernel, tk=tk, cur_resident=cur_resident)

    return pl.pallas_call(
        kernel,
        out_shape=(
            jax.ShapeDtypeStruct((np_, dp), jnp.bfloat16),   # next scaled state
            jax.ShapeDtypeStruct((np_, dp), jnp.float32),    # updated layer sum
        ),
        grid_spec=pltpu.PrefetchScalarGridSpec(
            num_scalar_prefetch=0,
            grid=grid,
            in_specs=[
                pl.BlockSpec((tm, tk), lambda i, k: (i, k)),   # int8 adjacency
                pl.BlockSpec((tm, 1), lambda i, k: (i, 0)),    # deg^-1/2 rows
                cur_spec,                                       # scaled state
                pl.BlockSpec((tm, dp), lambda i, k: (i, 0)),   # running sum
            ],
            out_specs=[
                pl.BlockSpec((tm, dp), lambda i, k: (i, 0)),
                pl.BlockSpec((tm, dp), lambda i, k: (i, 0)),
            ],
            scratch_shapes=[pltpu.VMEM((tm, dp), jnp.float32)],
        ),
        input_output_aliases={3: 1},   # total_f32 updated in place
        compiler_params=pltpu.CompilerParams(
            dimension_semantics=("parallel", "arbitrary"),
            vmem_limit_bytes=vmem_limit),
    )(adj_i8, dinv, cur, total)


@functools.partial(jax.jit, static_argnames=("num_layers", "tm", "tk",
                                             "cur_resident", "vmem_limit"))
def lightgcn_propagate(adj_i8, dinv, emb0_padded, *, num_layers, tm, tk,
                       cur_resident, vmem_limit):
    """num_layers propagation steps; returns the mean over all layer outputs."""
    cur = (emb0_padded * dinv).astype(jnp.bfloat16)   # s_0 = D^{-1/2} e_0
    total = emb0_padded.astype(jnp.float32)           # running sum of e_l
    for _ in range(num_layers):
        cur, total = _propagate_one_layer(
            adj_i8, dinv, cur, total, tm=tm, tk=tk,
            cur_resident=cur_resident, vmem_limit=vmem_limit)
    return total * (1.0 / float(num_layers + 1))


# ----------------------------------------------------------------------------
# Plain-JAX glue: binary adjacency (counts) + degree normalization vector
# ----------------------------------------------------------------------------
def build_graph_tensors(edge_index, num_nodes):
    row, col = edge_index[0], edge_index[1]   # row = source j, col = target i
    deg = jnp.zeros((num_nodes,), jnp.float32).at[col].add(1.0)
    dinv = jnp.where(deg > 0, jax.lax.rsqrt(deg), 0.0)
    # Count matrix adj[i, j] = #edges j -> i (exactly representable in int8).
    adj = jnp.zeros((num_nodes, num_nodes), jnp.float32).at[col, row].add(1.0)
    return adj.astype(jnp.int8), dinv


# ----------------------------------------------------------------------------
# LightGCN module (forward only)
# ----------------------------------------------------------------------------
class LightGCN:
    def __init__(self, num_users, num_items, emb_dim=64, num_layers=3, key=None):
        self.num_users = num_users
        self.num_items = num_items
        self.emb_dim = emb_dim
        self.num_layers = num_layers
        if key is None:
            key = jax.random.PRNGKey(0)
        ku, ki = jax.random.split(key)
        # nn.Embedding default init: N(0, 1)
        self.user_emb = jax.random.normal(ku, (num_users, emb_dim), jnp.float32)
        self.item_emb = jax.random.normal(ki, (num_items, emb_dim), jnp.float32)
        self._graph_cache = None

    @staticmethod
    def _edge_key(edge_index):
        arr = np.asarray(jax.device_get(edge_index))
        return (arr.shape, hash(arr.tobytes()))

    def precompute_graph(self, edge_index):
        """Build + pad the int8 adjacency and deg^-1/2 once (graph is static)."""
        n = self.num_users + self.num_items
        np_, tm, tk = _choose_tiles(n)
        dp = _round_up(self.emb_dim, 128)
        adj_i8, dinv = build_graph_tensors(edge_index, n)
        adj_i8 = jnp.pad(adj_i8, ((0, np_ - n), (0, np_ - n)))
        dinv = jnp.pad(dinv[:, None], ((0, np_ - n), (0, 0)))          # (np_, 1)
        cur_resident = (2 * np_ * dp * 2) <= 8 * 2**20                 # bf16, 2 bufs
        vmem_limit = _vmem_limit_bytes(np_, dp, tm, tk, cur_resident)
        self._graph_cache = (self._edge_key(edge_index), adj_i8, dinv,
                             np_, dp, tm, tk, cur_resident, vmem_limit)
        return self._graph_cache

    def forward(self, edge_index):
        key = self._edge_key(edge_index)
        if self._graph_cache is None or self._graph_cache[0] != key:
            self.precompute_graph(edge_index)
        (_, adj_i8, dinv, np_, dp, tm, tk, cur_resident,
         vmem_limit) = self._graph_cache

        n = self.num_users + self.num_items
        d = self.emb_dim
        emb0 = jnp.concatenate([self.user_emb, self.item_emb], axis=0)  # [N, D]
        emb0_padded = jnp.pad(emb0, ((0, np_ - n), (0, dp - d)))

        out_padded = lightgcn_propagate(
            adj_i8, dinv, emb0_padded, num_layers=self.num_layers,
            tm=tm, tk=tk, cur_resident=cur_resident, vmem_limit=vmem_limit)
        out_emb = out_padded[:n, :d]
        users_emb_final = out_emb[: self.num_users]
        items_emb_final = out_emb[self.num_users:]
        return users_emb_final, self.user_emb, items_emb_final, self.item_emb


# ----------------------------------------------------------------------------
# Pure-JAX f32 reference for correctness check
# ----------------------------------------------------------------------------
def reference_forward(model, edge_index):
    n = model.num_users + model.num_items
    emb = jnp.concatenate([model.user_emb, model.item_emb], axis=0)
    row, col = edge_index[0], edge_index[1]
    deg = jnp.zeros((n,), jnp.float32).at[col].add(1.0)
    dinv = jnp.where(deg > 0, deg ** -0.5, 0.0)
    norm = dinv[row] * dinv[col]
    adj = jnp.zeros((n, n), jnp.float32).at[col, row].add(norm)
    emb_lst = [emb]
    cur = emb
    for _ in range(model.num_layers):
        cur = adj @ cur
        emb_lst.append(cur)
    out = jnp.mean(jnp.stack(emb_lst, axis=1), axis=1)
    return out[: model.num_users], out[model.num_users:]


if __name__ == "__main__":
    num_users, num_items, emb_dim, num_layers = 768, 768, 64, 3

    key = jax.random.PRNGKey(0)
    k_model, k_edges = jax.random.split(key)

    # Deterministic random bipartite interaction graph; edges in both
    # directions (user -> item and item -> user), as is standard for LightGCN.
    num_interactions = 4096
    ku, ki = jax.random.split(k_edges)
    u = jax.random.randint(ku, (num_interactions,), 0, num_users)
    it = jax.random.randint(ki, (num_interactions,), 0, num_items) + num_users
    row = jnp.concatenate([u, it])
    col = jnp.concatenate([it, u])
    edge_index = jnp.stack([row, col], axis=0).astype(jnp.int32)   # [2, 2*E]

    model = LightGCN(num_users, num_items, emb_dim=emb_dim,
                     num_layers=num_layers, key=k_model)

    users_final, users_0, items_final, items_0 = model.forward(edge_index)
    jax.block_until_ready((users_final, users_0, items_final, items_0))

    # Adjacency values are exact (int8 counts); only the bf16 layer state
    # introduces rounding, so compare against the exact f32 reference with a
    # modest tolerance.
    ref_users, ref_items = reference_forward(model, edge_index)
    assert jnp.allclose(users_final, ref_users, atol=2e-2, rtol=2e-2)
    assert jnp.allclose(items_final, ref_items, atol=2e-2, rtol=2e-2)
    assert users_final.shape == (num_users, emb_dim)
    assert items_final.shape == (num_items, emb_dim)

    print("KERNEL_OK")
</pallas_src>

<mosaic_0001>
module attributes {stable_mosaic.version = 11 : i64} {
  func.func @_layer_kernel(%arg0: i32, %arg1: i32, %arg2: memref<512x512xi8, #tpu.memory_space<vmem>>, %arg3: memref<512x1xf32, #tpu.memory_space<vmem>>, %arg4: memref<1536x128xbf16, #tpu.memory_space<vmem>>, %arg5: memref<512x128xf32, #tpu.memory_space<vmem>>, %arg6: memref<512x128xbf16, #tpu.memory_space<vmem>>, %arg7: memref<512x128xf32, #tpu.memory_space<vmem>>, %arg8: memref<512x128xf32, #tpu.memory_space<vmem>>) attributes {dimension_semantics = [#tpu.dimension_semantics<parallel>, #tpu.dimension_semantics<arbitrary>], iteration_bounds = array<i64: 3, 3>, scalar_prefetch = 0 : i64, scratch_operands = 1 : i64, tpu.core_type = #tpu.core_type<tc>, window_params = [{transform_indices = @transform_0, window_bounds = array<i64: 512, 512>}, {transform_indices = @transform_1, window_bounds = array<i64: 512, 1>}, {pipeline_mode = #tpu.pipeline_mode<synchronous>, transform_indices = @transform_2, window_bounds = array<i64: 1536, 128>}, {transform_indices = @transform_3, window_bounds = array<i64: 512, 128>}, {transform_indices = @transform_4, window_bounds = array<i64: 512, 128>}, {transform_indices = @transform_5, window_bounds = array<i64: 512, 128>}]} {
    %c0_i32 = arith.constant 0 : i32
    %0 = arith.cmpi eq, %arg1, %c0_i32 : i32
    %1 = arith.extui %0 : i1 to i32
    %c0_i32_0 = arith.constant 0 : i32
    %2 = arith.cmpi ne, %1, %c0_i32_0 : i32
    scf.if %2 {
      %cst_8 = arith.constant 0.000000e+00 : f32
      %17 = vector.broadcast %cst_8 : f32 to vector<512x128xf32>
      %c0_9 = arith.constant 0 : index
      %c0_10 = arith.constant 0 : index
      %18 = vector.load %arg8[%c0_9, %c0_10] : memref<512x128xf32, #tpu.memory_space<vmem>>, vector<512x128xf32>
      tpu.vector_store %arg8[%c0_9, %c0_10], %17 {strides = array<i32>} : memref<512x128xf32, #tpu.memory_space<vmem>>, vector<512x128xf32>,
    } else {
    }
    %c512_i32 = arith.constant 512 : i32
    %3 = arith.muli %arg1, %c512_i32 : i32
    %4 = tpu.assume_multiple %3, 512 : i32
    %5 = arith.index_cast %4 : i32 to index
    %c0 = arith.constant 0 : index
    %6 = vector.load %arg4[%5, %c0] : memref<1536x128xbf16, #tpu.memory_space<vmem>>, vector<512x128xbf16>
    %c0_1 = arith.constant 0 : index
    %c0_2 = arith.constant 0 : index
    %7 = vector.load %arg2[%c0_1, %c0_2] : memref<512x512xi8, #tpu.memory_space<vmem>>, vector<512x512xi8>
    %8 = arith.sitofp %7 : vector<512x512xi8> to vector<512x512xf32>
    %9 = arith.truncf %8 : vector<512x512xf32> to vector<512x512xbf16>
    %c0_3 = arith.constant 0 : index
    %c0_4 = arith.constant 0 : index
    %10 = vector.load %arg8[%c0_3, %c0_4] : memref<512x128xf32, #tpu.memory_space<vmem>>, vector<512x128xf32>
    %cst = arith.constant dense<0.000000e+00> : vector<512x128xf32>
    %11 = tpu.matmul %9, %6, %cst {dimension_numbers = #tpu.dot_dimension_numbers<[1], [0], [0], [1], [0, 0, 1, 1], [], []>} : vector<512x512xbf16>, vector<512x128xbf16>, vector<512x128xf32> -> vector<512x128xf32>
    %12 = arith.addf %10, %11 : vector<512x128xf32>
    %c0_5 = arith.constant 0 : index
    %c0_6 = arith.constant 0 : index
    %13 = vector.load %arg8[%c0_5, %c0_6] : memref<512x128xf32, #tpu.memory_space<vmem>>, vector<512x128xf32>
    tpu.vector_store %arg8[%c0_5, %c0_6], %12 {strides = array<i32>} : memref<512x128xf32, #tpu.memory_space<vmem>>, vector<512x128xf32>,
    %c2_i32 = arith.constant 2 : i32
    %14 = arith.cmpi eq, %arg1, %c2_i32 : i32
    %15 = arith.extui %14 : i1 to i32
    %c0_i32_7 = arith.constant 0 : i32
    %16 = arith.cmpi ne, %15, %c0_i32_7 : i32
    scf.if %16 {
      %c0_8 = arith.constant 0 : index
      %c0_9 = arith.constant 0 : index
      %17 = vector.load %arg3[%c0_8, %c0_9] : memref<512x1xf32, #tpu.memory_space<vmem>>, vector<512x1xf32>
      %c0_10 = arith.constant 0 : index
      %c0_11 = arith.constant 0 : index
      %18 = vector.load %arg8[%c0_10, %c0_11] : memref<512x128xf32, #tpu.memory_space<vmem>>, vector<512x128xf32>
      %19 = vector.broadcast %17 : vector<512x1xf32> to vector<512x128xf32>
      %20 = arith.mulf %18, %19 : vector<512x128xf32>
      %c0_12 = arith.constant 0 : index
      %c0_13 = arith.constant 0 : index
      %21 = vector.load %arg5[%c0_12, %c0_13] : memref<512x128xf32, #tpu.memory_space<vmem>>, vector<512x128xf32>
      %22 = arith.addf %21, %20 : vector<512x128xf32>
      %c0_14 = arith.constant 0 : index
      %c0_15 = arith.constant 0 : index
      %23 = vector.load %arg7[%c0_14, %c0_15] : memref<512x128xf32, #tpu.memory_space<vmem>>, vector<512x128xf32>
      tpu.vector_store %arg7[%c0_14, %c0_15], %22 {strides = array<i32>} : memref<512x128xf32, #tpu.memory_space<vmem>>, vector<512x128xf32>,
      %24 = vector.broadcast %17 : vector<512x1xf32> to vector<512x128xf32>
      %25 = arith.mulf %20, %24 : vector<512x128xf32>
      %26 = arith.truncf %25 : vector<512x128xf32> to vector<512x128xbf16>
      %c0_16 = arith.constant 0 : index
      %c0_17 = arith.constant 0 : index
      %27 = vector.load %arg6[%c0_16, %c0_17] : memref<512x128xbf16, #tpu.memory_space<vmem>>, vector<512x128xbf16>
      tpu.vector_store %arg6[%c0_16, %c0_17], %26 {strides = array<i32>} : memref<512x128xbf16, #tpu.memory_space<vmem>>, vector<512x128xbf16>,
    } else {
    }
    return
  }
  func.func @transform_0(%arg0: i32, %arg1: i32) -> (i32, i32) {
    %c0_i32 = arith.constant 0 : i32
    return %arg0, %arg1 : i32, i32
  }
  func.func @transform_1(%arg0: i32, %arg1: i32) -> (i32, i32) {
    %c0_i32 = arith.constant 0 : i32
    %c0_i32_0 = arith.constant 0 : i32
    return %arg0, %c0_i32 : i32, i32
  }
  func.func @transform_2(%arg0: i32, %arg1: i32) -> (i32, i32) {
    %c0_i32 = arith.constant 0 : i32
    %c0_i32_0 = arith.constant 0 : i32
    %c0_i32_1 = arith.constant 0 : i32
    return %c0_i32, %c0_i32_0 : i32, i32
  }
  func.func @transform_3(%arg0: i32, %arg1: i32) -> (i32, i32) {
    %c0_i32 = arith.constant 0 : i32
    %c0_i32_0 = arith.constant 0 : i32
    return %arg0, %c0_i32 : i32, i32
  }
  func.func @transform_4(%arg0: i32, %arg1: i32) -> (i32, i32) {
    %c0_i32 = arith.constant 0 : i32
    %c0_i32_0 = arith.constant 0 : i32
    return %arg0, %c0_i32 : i32, i32
  }
  func.func @transform_5(%arg0: i32, %arg1: i32) -> (i32, i32) {
    %c0_i32 = arith.constant 0 : i32
    %c0_i32_0 = arith.constant 0 : i32
    return %arg0, %c0_i32 : i32, i32
  }
}

module attributes {stable_mosaic.version = 11 : i64} {
  func.func @_layer_kernel(%arg0: i32, %arg1: i32, %arg2: memref<512x512xi8, #tpu.memory_space<vmem>>, %arg3: memref<512x1xf32, #tpu.memory_space<vmem>>, %arg4: memref<1536x128xbf16, #tpu.memory_space<vmem>>, %arg5: memref<512x128xf32, #tpu.memory_space<vmem>>, %arg6: memref<512x128xbf16, #tpu.memory_space<vmem>>, %arg7: memref<512x128xf32, #tpu.memory_space<vmem>>, %arg8: memref<512x128xf32, #tpu.memory_space<vmem>>) attributes {dimension_semantics = [#tpu.dimension_semantics<parallel>, #tpu.dimension_semantics<arbitrary>], iteration_bounds = array<i64: 3, 3>, scalar_prefetch = 0 : i64, scratch_operands = 1 : i64, tpu.core_type = #tpu.core_type<tc>, window_params = [{transform_indices = @transform_0, window_bounds = array<i64: 512, 512>}, {transform_indices = @transform_1, window_bounds = array<i64: 512, 1>}, {pipeline_mode = #tpu.pipeline_mode<synchronous>, transform_indices = @transform_2, window_bounds = array<i64: 1536, 128>}, {transform_indices = @transform_3, window_bounds = array<i64: 512, 128>}, {transform_indices = @transform_4, window_bounds = array<i64: 512, 128>}, {transform_indices = @transform_5, window_bounds = array<i64: 512, 128>}]} {
    %c0_i32 = arith.constant 0 : i32
    %0 = arith.cmpi eq, %arg1, %c0_i32 : i32
    %1 = arith.extui %0 : i1 to i32
    %c0_i32_0 = arith.constant 0 : i32
    %2 = arith.cmpi ne, %1, %c0_i32_0 : i32
    scf.if %2 {
      %cst_8 = arith.constant 0.000000e+00 : f32
      %17 = vector.broadcast %cst_8 : f32 to vector<512x128xf32>
      %c0_9 = arith.constant 0 : index
      %c0_10 = arith.constant 0 : index
      %18 = vector.load %arg8[%c0_9, %c0_10] : memref<512x128xf32, #tpu.memory_space<vmem>>, vector<512x128xf32>
      tpu.vector_store %arg8[%c0_9, %c0_10], %17 {strides = array<i32>} : memref<512x128xf32, #tpu.memory_space<vmem>>, vector<512x128xf32>,
    } else {
    }
    %c512_i32 = arith.constant 512 : i32
    %3 = arith.muli %arg1, %c512_i32 : i32
    %4 = tpu.assume_multiple %3, 512 : i32
    %5 = arith.index_cast %4 : i32 to index
    %c0 = arith.constant 0 : index
    %6 = vector.load %arg4[%5, %c0] : memref<1536x128xbf16, #tpu.memory_space<vmem>>, vector<512x128xbf16>
    %c0_1 = arith.constant 0 : index
    %c0_2 = arith.constant 0 : index
    %7 = vector.load %arg2[%c0_1, %c0_2] : memref<512x512xi8, #tpu.memory_space<vmem>>, vector<512x512xi8>
    %8 = arith.sitofp %7 : vector<512x512xi8> to vector<512x512xf32>
    %9 = arith.truncf %8 : vector<512x512xf32> to vector<512x512xbf16>
    %c0_3 = arith.constant 0 : index
    %c0_4 = arith.constant 0 : index
    %10 = vector.load %arg8[%c0_3, %c0_4] : memref<512x128xf32, #tpu.memory_space<vmem>>, vector<512x128xf32>
    %cst = arith.constant dense<0.000000e+00> : vector<512x128xf32>
    %11 = tpu.matmul %9, %6, %cst {dimension_numbers = #tpu.dot_dimension_numbers<[1], [0], [0], [1], [0, 0, 1, 1], [], []>} : vector<512x512xbf16>, vector<512x128xbf16>, vector<512x128xf32> -> vector<512x128xf32>
    %12 = arith.addf %10, %11 : vector<512x128xf32>
    %c0_5 = arith.constant 0 : index
    %c0_6 = arith.constant 0 : index
    %13 = vector.load %arg8[%c0_5, %c0_6] : memref<512x128xf32, #tpu.memory_space<vmem>>, vector<512x128xf32>
    tpu.vector_store %arg8[%c0_5, %c0_6], %12 {strides = array<i32>} : memref<512x128xf32, #tpu.memory_space<vmem>>, vector<512x128xf32>,
    %c2_i32 = arith.constant 2 : i32
    %14 = arith.cmpi eq, %arg1, %c2_i32 : i32
    %15 = arith.extui %14 : i1 to i32
    %c0_i32_7 = arith.constant 0 : i32
    %16 = arith.cmpi ne, %15, %c0_i32_7 : i32
    scf.if %16 {
      %c0_8 = arith.constant 0 : index
      %c0_9 = arith.constant 0 : index
      %17 = vector.load %arg3[%c0_8, %c0_9] : memref<512x1xf32, #tpu.memory_space<vmem>>, vector<512x1xf32>
      %c0_10 = arith.constant 0 : index
      %c0_11 = arith.constant 0 : index
      %18 = vector.load %arg8[%c0_10, %c0_11] : memref<512x128xf32, #tpu.memory_space<vmem>>, vector<512x128xf32>
      %19 = vector.broadcast %17 : vector<512x1xf32> to vector<512x128xf32>
      %20 = arith.mulf %18, %19 : vector<512x128xf32>
      %c0_12 = arith.constant 0 : index
      %c0_13 = arith.constant 0 : index
      %21 = vector.load %arg5[%c0_12, %c0_13] : memref<512x128xf32, #tpu.memory_space<vmem>>, vector<512x128xf32>
      %22 = arith.addf %21, %20 : vector<512x128xf32>
      %c0_14 = arith.constant 0 : index
      %c0_15 = arith.constant 0 : index
      %23 = vector.load %arg7[%c0_14, %c0_15] : memref<512x128xf32, #tpu.memory_space<vmem>>, vector<512x128xf32>
      tpu.vector_store %arg7[%c0_14, %c0_15], %22 {strides = array<i32>} : memref<512x128xf32, #tpu.memory_space<vmem>>, vector<512x128xf32>,
      %24 = vector.broadcast %17 : vector<512x1xf32> to vector<512x128xf32>
      %25 = arith.mulf %20, %24 : vector<512x128xf32>
      %26 = arith.truncf %25 : vector<512x128xf32> to vector<512x128xbf16>
      %c0_16 = arith.constant 0 : index
      %c0_17 = arith.constant 0 : index
      %27 = vector.load %arg6[%c0_16, %c0_17] : memref<512x128xbf16, #tpu.memory_space<vmem>>, vector<512x128xbf16>
      tpu.vector_store %arg6[%c0_16, %c0_17], %26 {strides = array<i32>} : memref<512x128xbf16, #tpu.memory_space<vmem>>, vector<512x128xbf16>,
    } else {
    }
    return
  }
  func.func @transform_0(%arg0: i32, %arg1: i32) -> (i32, i32) {
    %c0_i32 = arith.constant 0 : i32
    return %arg0, %arg1 : i32, i32
  }
  func.func @transform_1(%arg0: i32, %arg1: i32) -> (i32, i32) {
    %c0_i32 = arith.constant 0 : i32
    %c0_i32_0 = arith.constant 0 : i32
    return %arg0, %c0_i32 : i32, i32
  }
  func.func @transform_2(%arg0: i32, %arg1: i32) -> (i32, i32) {
    %c0_i32 = arith.constant 0 : i32
    %c0_i32_0 = arith.constant 0 : i32
    %c0_i32_1 = arith.constant 0 : i32
    return %c0_i32, %c0_i32_0 : i32, i32
  }
  func.func @transform_3(%arg0: i32, %arg1: i32) -> (i32, i32) {
    %c0_i32 = arith.constant 0 : i32
    %c0_i32_0 = arith.constant 0 : i32
    return %arg0, %c0_i32 : i32, i32
  }
  func.func @transform_4(%arg0: i32, %arg1: i32) -> (i32, i32) {
    %c0_i32 = arith.constant 0 : i32
    %c0_i32_0 = arith.constant 0 : i32
    return %arg0, %c0_i32 : i32, i32
  }
  func.func @transform_5(%arg0: i32, %arg1: i32) -> (i32, i32) {
    %c0_i32 = arith.constant 0 : i32
    %c0_i32_0 = arith.constant 0 : i32
    return %arg0, %c0_i32 : i32, i32
  }
}

</mosaic_0001>

<bundles_post_ra>
// kernel: lightgcn_propagate.5
= control target key start
LH: loop header
LB: loop body
LE: loop exit
PB: predicated region body
PF: predicated region fallthrough
CT: control target
= control target key end

     0   :  { %s4614_s0 = inlined_call_operand.vmem [shape: s8[1536,1536], index: 0, kind: input, shape index: {}]   ;;  %s4615_s1 = inlined_call_operand.vmem [shape: f32[1536,1], index: 1, kind: input, shape index: {}]   ;;  %s4616_s2 = inlined_call_operand.vmem [shape: bf16[1536,128], index: 2, kind: input, shape index: {}]   ;;  %s4617_s3 = inlined_call_operand.vmem [shape: f32[1536,128], index: 3, kind: input, shape index: {}, may-alias: {3,5}]   ;;  %s4618_s4 = inlined_call_operand.hbm [shape: bf16[1536,128], index: 4, kind: output, shape index: {0}]   ;;  %s4619_s5 = inlined_call_operand.vmem [shape: f32[1536,128], index: 5, kind: output, shape index: {1}, may-alias: {3,5}]  }
   0x1   :  { %4625 = sst [smem:[#allocation31_spill]] %s4614_s0 }
   0x2   :  { %11 = vsyncpa [#allocation5], 0 }
   0x3   :  { %13 = vsyncpa [#allocation5 + $0x1], 0  ;;  %s3639_s18 = smov 0   ;;  %s3641_s19 = smov 0  }
   0x4   :  { %s3643_s20 = smov 0   ;;  %s3645_s21 = smov 0  }
   0x5   :  { %s3647_s22 = smov 0   ;;  %s3649_s23 = smov 0  }
   0x6   :  { %s3651_s24 = smov 0   ;;  %s3653_s25 = smov 0  }
   0x7   :  { %s3655_s26 = smov 0   ;;  %s3657_s27 = smov 0  }
   0x8 LB: > { %4626 = sst [smem:[#allocation7_spill]] %s3593_s25  ;;  %s2987_s28 = sadd.s32 4294967295, %s3601_s27   ;;  %s3601_s27 = sphi %s3657_s27, %s19_s27   ;;  %s3597_s26 = sphi %s3655_s26, %s4678_s26   ;;  %s3593_s25 = sphi %s3653_s25, %s4677_s25   ;;  %s3589_s24 = sphi %s3651_s24, %s4676_s24   ;;  %s3585_s23 = sphi %s3649_s23, %s4675_s23   ;;  %s3581_s22 = sphi %s3647_s22, %s4683_s22   ;;  %s3577_s21 = sphi %s3645_s21, %s4682_s21   ;;  %s3573_s20 = sphi %s3643_s20, %s4681_s20   ;;  %s3569_s19 = sphi %s3641_s19, %s4680_s19   ;;  %s3565_s18 = sphi %s3639_s18, %s4679_s18  }
   0x9   : > { %4627 = sst [smem:[#allocation8_spill]] %s3597_s26  ;;  %s2988_s29 = sadd.s32 4294967294, %s3601_s27  }
   0xa   : > { %s28_s30 = sadd.s32 1, %s3593_s25  ;;  %s31_s6 = sadd.s32 1, %s3597_s26 }
   0xb   : > { %p29_p0 = scmp.ge.s32.totalorder %s28_s30, 3  ;;  %s40_s7 = sadd.s32 1, %s3581_s22 }
   0xc   : > { %p47_p1 = scmp.ne.s32.totalorder %s3581_s22, %s3577_s21  ;;  %p48_p2 = scmp.eq.s32.totalorder %s3601_s27, 0 }
   0xd   : > { %s4685_s30 = smov (%p29_p0, %s28_s30), 0  ;;  %s4687_s6 = smov (!%p29_p0, %s31_s6), %s3597_s26 }
   0xe   : > { %4628 = sst [smem:[#allocation9_spill]] %s4685_s30  ;;  %s36_s8 = ssub.s32 %s3593_s25, %s4685_s30 }
   0xf   : > { %p3702_p3 = por %p48_p2, %p47_p1  ;;  %p33_p4 = scmp.ge.s32.totalorder %s4687_s6, 3 }
  0x10   : > { %s139_s10 = sadd.s32 1, %s3573_s20  ;;  %p149_p5 = scmp.ne.s32.totalorder %s3573_s20, %s3569_s19 }
  0x11   : > { %p150_p6 = scmp.eq.s32.totalorder %s2987_s28, 8  ;;  %s4689_s6 = smov (%p33_p4, %s4687_s6), 0 }
  0x12   : > { %4630 = sst [smem:[#allocation10_spill]] %s4689_s6  ;;  %p155_p8 = scmp.ne.s32.totalorder %s3569_s19, %s3565_s18 }
  0x13   : > { %p3711_p7 = por %p150_p6, %p149_p5  ;;  %s35_s12 = ssub.s32 %s3597_s26, %s4689_s6 }
  0x14   : > { %p156_p9 = scmp.eq.s32.totalorder %s2988_s29, 8  ;;  %s37_s13 = sor.u32 %s36_s8, %s35_s12 }
  0x15   : > { %p137_p10 = scmp.eq.s32.totalorder %s35_s12, 0  ;;  %p38_p11 = scmp.eq.s32.totalorder %s37_s13, 0 }
  0x16   : > { %p3719_p12 = por %p156_p9, %p155_p8  ;;  %p2990_p13 = scmp.ge.s32.totalorder %s3601_s27, 9 }
  0x17   : > { %s3724_s15 = scalar_select %p137_p10, %s3573_s20, %s139_s10  }
  0x18   : > { %s3727_s16 = scalar_select %p38_p11, %s3581_s22, %s40_s7  }
  0x19   : > { %201 = sbr.rel (%p2990_p13) target bundleno = 72 (0x48), region = 20 }
  0x1e   : > { %204 = sbr.rel (!%p3702_p3) target bundleno = 72 (0x48), region = 24  ;;  %s206_s17 = sand.u32 (%p3702_p3), 1, %s3581_s22  }
  0x1f   : > { %s2993_s28 = sshll.u32 (%p3702_p3), %s3593_s25, 2  ;;  %s2991_s29 = sshll.u32 (%p3702_p3), %s206_s17, 9 }
  0x20   : > { %s3366_s8 = smul.u32 (%p3702_p3), 192, %s3597_s26  ;;  %s4633_s0 = sld [smem:[#allocation31_spill]] (%p3702_p3) }
  0x21   : > { %s3743_s9 = scalar_lea.vmem (%p3702_p3), [#allocation3], %s2991_s29 }
  0x22   : > { %s212_s12 = sadd.s32 (%p3702_p3), %s3366_s8, %s2993_s28 }
  0x23   : > { %s2995_s13 = sshll.u32 %s212_s12, 3 }
  0x26   : > { %s3738_s7 = scalar_lea.vmem %s4633_s0, %s2995_s13 }
  0x27   : > { %v227_v0 = vld [vmem:[%s3738_s7] sm:$0xff]  ;;  %v229_v1 = vld [vmem:[%s3738_s7 + $0x8] sm:$0xff]  ;;  %v231_v2 = vld [vmem:[%s3738_s7 + $0x10] sm:$0xff] }
  0x28   : > { %228 = vst [vmem:[%s3743_s9] sm:$0xff] %v227_v0  ;;  %230 = vst [vmem:[%s3743_s9 + $0x8] sm:$0xff] %v229_v1  ;;  %v233_v3 = vld [vmem:[%s3738_s7 + $0x18] sm:$0xff]  ;;  %v235_v4 = vld [vmem:[%s3738_s7 + $0x60] sm:$0xff] }
  0x29   : > { %232 = vst [vmem:[%s3743_s9 + $0x10] sm:$0xff] %v231_v2  ;;  %v237_v5 = vld [vmem:[%s3738_s7 + $0x68] sm:$0xff]  ;;  %234 = vst [vmem:[%s3743_s9 + $0x18] sm:$0xff] %v233_v3  ;;  %v239_v6 = vld [vmem:[%s3738_s7 + $0x70] sm:$0xff] }
  0x2a   : > { %236 = vst [vmem:[%s3743_s9 + $0x20] sm:$0xff] %v235_v4  ;;  %238 = vst [vmem:[%s3743_s9 + $0x28] sm:$0xff] %v237_v5  ;;  %v241_v7 = vld [vmem:[%s3738_s7 + $0x78] sm:$0xff]  ;;  %v243_v8 = vld [vmem:[%s3738_s7 + $0xc0] sm:$0xff] }
  0x2b   : > { %240 = vst [vmem:[%s3743_s9 + $0x30] sm:$0xff] %v239_v6  ;;  %242 = vst [vmem:[%s3743_s9 + $0x38] sm:$0xff] %v241_v7  ;;  %v245_v9 = vld [vmem:[%s3738_s7 + $0xc8] sm:$0xff]  ;;  %v247_v10 = vld [vmem:[%s3738_s7 + $0xd0] sm:$0xff] }
  0x2c   : > { %244 = vst [vmem:[%s3743_s9 + $0x40] sm:$0xff] %v243_v8  ;;  %v249_v11 = vld [vmem:[%s3738_s7 + $0xd8] sm:$0xff]  ;;  %246 = vst [vmem:[%s3743_s9 + $0x48] sm:$0xff] %v245_v9  ;;  %v251_v12 = vld [vmem:[%s3738_s7 + $0x120] sm:$0xff] }
  0x2d   : > { %248 = vst [vmem:[%s3743_s9 + $0x50] sm:$0xff] %v247_v10  ;;  %250 = vst [vmem:[%s3743_s9 + $0x58] sm:$0xff] %v249_v11  ;;  %v253_v13 = vld [vmem:[%s3738_s7 + $0x128] sm:$0xff]  ;;  %v255_v14 = vld [vmem:[%s3738_s7 + $0x130] sm:$0xff] }
  0x2e   : > { %252 = vst [vmem:[%s3743_s9 + $0x60] sm:$0xff] %v251_v12  ;;  %254 = vst [vmem:[%s3743_s9 + $0x68] sm:$0xff] %v253_v13  ;;  %v257_v15 = vld [vmem:[%s3738_s7 + $0x138] sm:$0xff]  ;;  %v259_v16 = vld [vmem:[%s3738_s7 + $0x180] sm:$0xff] }
  0x2f   : > { %256 = vst [vmem:[%s3743_s9 + $0x70] sm:$0xff] %v255_v14  ;;  %v261_v17 = vld [vmem:[%s3738_s7 + $0x188] sm:$0xff]  ;;  %258 = vst [vmem:[%s3743_s9 + $0x78] sm:$0xff] %v257_v15  ;;  %v263_v18 = vld [vmem:[%s3738_s7 + $0x190] sm:$0xff] }
  0x30   : > { %260 = vst [vmem:[%s3743_s9 + $0x80] sm:$0xff] %v259_v16  ;;  %262 = vst [vmem:[%s3743_s9 + $0x88] sm:$0xff] %v261_v17  ;;  %v265_v19 = vld [vmem:[%s3738_s7 + $0x198] sm:$0xff]  ;;  %v267_v20 = vld [vmem:[%s3738_s7 + $0x1e0] sm:$0xff] }
  0x31   : > { %264 = vst [vmem:[%s3743_s9 + $0x90] sm:$0xff] %v263_v18  ;;  %266 = vst [vmem:[%s3743_s9 + $0x98] sm:$0xff] %v265_v19  ;;  %v269_v21 = vld [vmem:[%s3738_s7 + $0x1e8] sm:$0xff]  ;;  %v271_v22 = vld [vmem:[%s3738_s7 + $0x1f0] sm:$0xff] }
  0x32   : > { %268 = vst [vmem:[%s3743_s9 + $0xa0] sm:$0xff] %v267_v20  ;;  %v273_v23 = vld [vmem:[%s3738_s7 + $0x1f8] sm:$0xff]  ;;  %270 = vst [vmem:[%s3743_s9 + $0xa8] sm:$0xff] %v269_v21  ;;  %v275_v24 = vld [vmem:[%s3738_s7 + $0x240] sm:$0xff] }
  0x33   : > { %272 = vst [vmem:[%s3743_s9 + $0xb0] sm:$0xff] %v271_v22  ;;  %274 = vst [vmem:[%s3743_s9 + $0xb8] sm:$0xff] %v273_v23  ;;  %v277_v25 = vld [vmem:[%s3738_s7 + $0x248] sm:$0xff]  ;;  %v279_v26 = vld [vmem:[%s3738_s7 + $0x250] sm:$0xff] }
  0x34   : > { %276 = vst [vmem:[%s3743_s9 + $0xc0] sm:$0xff] %v275_v24  ;;  %278 = vst [vmem:[%s3743_s9 + $0xc8] sm:$0xff] %v277_v25  ;;  %v281_v27 = vld [vmem:[%s3738_s7 + $0x258] sm:$0xff]  ;;  %v283_v28 = vld [vmem:[%s3738_s7 + $0x2a0] sm:$0xff] }
  0x35   : > { %280 = vst [vmem:[%s3743_s9 + $0xd0] sm:$0xff] %v279_v26  ;;  %v285_v29 = vld [vmem:[%s3738_s7 + $0x2a8] sm:$0xff]  ;;  %282 = vst [vmem:[%s3743_s9 + $0xd8] sm:$0xff] %v281_v27  ;;  %v287_v30 = vld [vmem:[%s3738_s7 + $0x2b0] sm:$0xff] }
  0x36   : > { %284 = vst [vmem:[%s3743_s9 + $0xe0] sm:$0xff] %v283_v28  ;;  %286 = vst [vmem:[%s3743_s9 + $0xe8] sm:$0xff] %v285_v29  ;;  %v289_v31 = vld [vmem:[%s3738_s7 + $0x2b8] sm:$0xff]  ;;  %v291_v32 = vld [vmem:[%s3738_s7 + $0x300] sm:$0xff] }
  0x37   : > { %288 = vst [vmem:[%s3743_s9 + $0xf0] sm:$0xff] %v287_v30  ;;  %290 = vst [vmem:[%s3743_s9 + $0xf8] sm:$0xff] %v289_v31  ;;  %v293_v33 = vld [vmem:[%s3738_s7 + $0x308] sm:$0xff]  ;;  %v295_v34 = vld [vmem:[%s3738_s7 + $0x310] sm:$0xff] }
  0x38   : > { %292 = vst [vmem:[%s3743_s9 + $0x100] sm:$0xff] %v291_v32  ;;  %v297_v35 = vld [vmem:[%s3738_s7 + $0x318] sm:$0xff]  ;;  %294 = vst [vmem:[%s3743_s9 + $0x108] sm:$0xff] %v293_v33  ;;  %v299_v36 = vld [vmem:[%s3738_s7 + $0x360] sm:$0xff] }
  0x39   : > { %296 = vst [vmem:[%s3743_s9 + $0x110] sm:$0xff] %v295_v34  ;;  %298 = vst [vmem:[%s3743_s9 + $0x118] sm:$0xff] %v297_v35  ;;  %v301_v37 = vld [vmem:[%s3738_s7 + $0x368] sm:$0xff]  ;;  %v303_v38 = vld [vmem:[%s3738_s7 + $0x370] sm:$0xff] }
  0x3a   : > { %300 = vst [vmem:[%s3743_s9 + $0x120] sm:$0xff] %v299_v36  ;;  %302 = vst [vmem:[%s3743_s9 + $0x128] sm:$0xff] %v301_v37  ;;  %v305_v39 = vld [vmem:[%s3738_s7 + $0x378] sm:$0xff]  ;;  %v307_v40 = vld [vmem:[%s3738_s7 + $0x3c0] sm:$0xff] }
  0x3b   : > { %304 = vst [vmem:[%s3743_s9 + $0x130] sm:$0xff] %v303_v38  ;;  %v309_v41 = vld [vmem:[%s3738_s7 + $0x3c8] sm:$0xff]  ;;  %306 = vst [vmem:[%s3743_s9 + $0x138] sm:$0xff] %v305_v39  ;;  %v311_v42 = vld [vmem:[%s3738_s7 + $0x3d0] sm:$0xff] }
  0x3c   : > { %308 = vst [vmem:[%s3743_s9 + $0x140] sm:$0xff] %v307_v40  ;;  %310 = vst [vmem:[%s3743_s9 + $0x148] sm:$0xff] %v309_v41  ;;  %v313_v43 = vld [vmem:[%s3738_s7 + $0x3d8] sm:$0xff]  ;;  %v315_v44 = vld [vmem:[%s3738_s7 + $0x420] sm:$0xff] }
  0x3d   : > { %312 = vst [vmem:[%s3743_s9 + $0x150] sm:$0xff] %v311_v42  ;;  %314 = vst [vmem:[%s3743_s9 + $0x158] sm:$0xff] %v313_v43  ;;  %v317_v45 = vld [vmem:[%s3738_s7 + $0x428] sm:$0xff]  ;;  %v319_v46 = vld [vmem:[%s3738_s7 + $0x430] sm:$0xff] }
  0x3e   : > { %316 = vst [vmem:[%s3743_s9 + $0x160] sm:$0xff] %v315_v44  ;;  %v321_v47 = vld [vmem:[%s3738_s7 + $0x438] sm:$0xff]  ;;  %318 = vst [vmem:[%s3743_s9 + $0x168] sm:$0xff] %v317_v45  ;;  %v323_v48 = vld [vmem:[%s3738_s7 + $0x480] sm:$0xff] }
  0x3f   : > { %320 = vst [vmem:[%s3743_s9 + $0x170] sm:$0xff] %v319_v46  ;;  %322 = vst [vmem:[%s3743_s9 + $0x178] sm:$0xff] %v321_v47  ;;  %v325_v49 = vld [vmem:[%s3738_s7 + $0x488] sm:$0xff]  ;;  %v327_v50 = vld [vmem:[%s3738_s7 + $0x490] sm:$0xff] }
  0x40   : > { %324 = vst [vmem:[%s3743_s9 + $0x180] sm:$0xff] %v323_v48  ;;  %326 = vst [vmem:[%s3743_s9 + $0x188] sm:$0xff] %v325_v49  ;;  %v329_v51 = vld [vmem:[%s3738_s7 + $0x498] sm:$0xff]  ;;  %v331_v52 = vld [vmem:[%s3738_s7 + $0x4e0] sm:$0xff] }
  0x41   : > { %328 = vst [vmem:[%s3743_s9 + $0x190] sm:$0xff] %v327_v50  ;;  %v333_v53 = vld [vmem:[%s3738_s7 + $0x4e8] sm:$0xff]  ;;  %330 = vst [vmem:[%s3743_s9 + $0x198] sm:$0xff] %v329_v51  ;;  %v335_v54 = vld [vmem:[%s3738_s7 + $0x4f0] sm:$0xff] }
  0x42   : > { %332 = vst [vmem:[%s3743_s9 + $0x1a0] sm:$0xff] %v331_v52  ;;  %334 = vst [vmem:[%s3743_s9 + $0x1a8] sm:$0xff] %v333_v53  ;;  %v337_v55 = vld [vmem:[%s3738_s7 + $0x4f8] sm:$0xff]  ;;  %v339_v56 = vld [vmem:[%s3738_s7 + $0x540] sm:$0xff] }
  0x43   : > { %336 = vst [vmem:[%s3743_s9 + $0x1b0] sm:$0xff] %v335_v54  ;;  %338 = vst [vmem:[%s3743_s9 + $0x1b8] sm:$0xff] %v337_v55  ;;  %v341_v57 = vld [vmem:[%s3738_s7 + $0x548] sm:$0xff]  ;;  %v343_v58 = vld [vmem:[%s3738_s7 + $0x550] sm:$0xff] }
  0x44   : > { %340 = vst [vmem:[%s3743_s9 + $0x1c0] sm:$0xff] %v339_v56  ;;  %v345_v59 = vld [vmem:[%s3738_s7 + $0x558] sm:$0xff]  ;;  %342 = vst [vmem:[%s3743_s9 + $0x1c8] sm:$0xff] %v341_v57  ;;  %v347_v60 = vld [vmem:[%s3738_s7 + $0x5a0] sm:$0xff] }
  0x45   : > { %344 = vst [vmem:[%s3743_s9 + $0x1d0] sm:$0xff] %v343_v58  ;;  %346 = vst [vmem:[%s3743_s9 + $0x1d8] sm:$0xff] %v345_v59  ;;  %v349_v61 = vld [vmem:[%s3738_s7 + $0x5a8] sm:$0xff]  ;;  %v351_v62 = vld [vmem:[%s3738_s7 + $0x5b0] sm:$0xff] }
  0x46   : > { %348 = vst [vmem:[%s3743_s9 + $0x1e0] sm:$0xff] %v347_v60  ;;  %350 = vst [vmem:[%s3743_s9 + $0x1e8] sm:$0xff] %v349_v61  ;;  %v353_v63 = vld [vmem:[%s3738_s7 + $0x5b8] sm:$0xff] }
  0x47   : > { %352 = vst [vmem:[%s3743_s9 + $0x1f0] sm:$0xff] %v351_v62  ;;  %354 = vst [vmem:[%s3743_s9 + $0x1f8] sm:$0xff] %v353_v63 }
  0x48 PF: > { %p2996_p0 = scmp.ge.s32.totalorder %s3601_s27, 1  ;;  %p377_p1 = scmp.lt.s32.totalorder %s3601_s27, 10 }
  0x4a   : > { %p378_p2 = pnand %p2996_p0, %p377_p1 }
  0x4b   : > { %s384_s6 = sand.u32 (!%p378_p2), 1, %s3577_s21   ;;  %s4623_s17 = sand.u32 (!%p378_p2), 1, %s3569_s19  }
  0x4c   : > { %381 = sbr.rel (%p378_p2) target bundleno = 920 (0x398), region = 55  ;;  %s2997_s28 = sshll.u32 (!%p378_p2), %s384_s6, 9 }
  0x4d   : > { %s2998_s29 = sshll.u32 (!%p378_p2), %s4623_s17, 8  ;;  %s2999_s8 = sshll.u32 (!%p378_p2), %s3589_s24, 6 }
  0x4e   : > { %p429_p3 = scmp.lt.s32.totalorder (!%p378_p2), %s2999_s8, 191  ;;  %s3892_s17 = scalar_lea.vmem (!%p378_p2), [#allocation3], %s2997_s28 }
  0x4f   : > { %s3894_s25 = scalar_lea.vmem (!%p378_p2), [#allocation4], %s2998_s29  ;;  %p3005_p4 = scmp.ne.s32.totalorder (!%p378_p2), %s3585_s23, 0 }
  0x51   : > { %s4691_s8 = smov (!%p429_p3, %s2999_s8), 191  ;;  %451 = sbr.rel (%p3005_p4) target bundleno = 119 (0x77), region = 63 }
  0x52   : > { %s3000_s12 = sshll.u32 %s4691_s8, 3 }
  0x53   : > { %s3880_s7 = scalar_lea.vmem %s4615_s1, %s3000_s12  ;;  %s3885_s30 = scalar_lea.vmem %s4617_s3, %s3000_s12 }
  0x54   : > { %s3890_s6 = scalar_lea.vmem %s4619_s5, %s3000_s12 }
  0x56   : > { %v3603_v0 = vmov 0.0  }
  0x57   : > { %452 = vst [vmem:[#allocation2 + $0xb0] sm:$0xff] %v3603_v0  ;;  %453 = vst [vmem:[#allocation2 + $0x1b0] sm:$0xff] %v3603_v0 }
  0x58   : > { %454 = vst [vmem:[#allocation2 + $0xd8] sm:$0xff] %v3603_v0  ;;  %455 = vst [vmem:[#allocation2 + $0x18] sm:$0xff] %v3603_v0 }
  0x59   : > { %456 = vst [vmem:[#allocation2 + $0x50] sm:$0xff] %v3603_v0  ;;  %457 = vst [vmem:[#allocation2 + $0x168] sm:$0xff] %v3603_v0 }
  0x5a   : > { %458 = vst [vmem:[#allocation2 + $0x130] sm:$0xff] %v3603_v0  ;;  %459 = vst [vmem:[#allocation2 + $0x48] sm:$0xff] %v3603_v0 }
  0x5b   : > { %460 = vst [vmem:[#allocation2 + $0x180] sm:$0xff] %v3603_v0  ;;  %461 = vst [vmem:[#allocation2 + $0x110] sm:$0xff] %v3603_v0 }
  0x5c   : > { %462 = vst [vmem:[#allocation2 + $0x118] sm:$0xff] %v3603_v0  ;;  %463 = vst [vmem:[#allocation2 + $0x98] sm:$0xff] %v3603_v0 }
  0x5d   : > { %464 = vst [vmem:[#allocation2 + $0x120] sm:$0xff] %v3603_v0  ;;  %465 = vst [vmem:[#allocation2 + $0x150] sm:$0xff] %v3603_v0 }
  0x5e   : > { %466 = vst [vmem:[#allocation2 + $0x108] sm:$0xff] %v3603_v0  ;;  %467 = vst [vmem:[#allocation2 + $0x60] sm:$0xff] %v3603_v0 }
  0x5f   : > { %468 = vst [vmem:[#allocation2 + $0xe0] sm:$0xff] %v3603_v0  ;;  %469 = vst [vmem:[#allocation2 + $0x188] sm:$0xff] %v3603_v0 }
  0x60   : > { %470 = vst [vmem:[#allocation2 + $0x138] sm:$0xff] %v3603_v0  ;;  %471 = vst [vmem:[#allocation2 + $0x140] sm:$0xff] %v3603_v0 }
  0x61   : > { %472 = vst [vmem:[#allocation2 + $0x80] sm:$0xff] %v3603_v0  ;;  %473 = vst [vmem:[#allocation2 + $0x1a8] sm:$0xff] %v3603_v0 }
  0x62   : > { %474 = vst [vmem:[#allocation2 + $0x1b8] sm:$0xff] %v3603_v0  ;;  %475 = vst [vmem:[#allocation2 + $0x28] sm:$0xff] %v3603_v0 }
  0x63   : > { %476 = vst [vmem:[#allocation2 + $0x1e8] sm:$0xff] %v3603_v0  ;;  %477 = vst [vmem:[#allocation2 + $0xf8] sm:$0xff] %v3603_v0 }
  0x64   : > { %478 = vst [vmem:[#allocation2 + $0x160] sm:$0xff] %v3603_v0  ;;  %479 = vst [vmem:[#allocation2 + $0x30] sm:$0xff] %v3603_v0 }
  0x65   : > { %480 = vst [vmem:[#allocation2 + $0x1e0] sm:$0xff] %v3603_v0  ;;  %481 = vst [vmem:[#allocation2] sm:$0xff] %v3603_v0 }
  0x66   : > { %482 = vst [vmem:[#allocation2 + $0xf0] sm:$0xff] %v3603_v0  ;;  %483 = vst [vmem:[#allocation2 + $0x8] sm:$0xff] %v3603_v0 }
  0x67   : > { %484 = vst [vmem:[#allocation2 + $0x148] sm:$0xff] %v3603_v0  ;;  %485 = vst [vmem:[#allocation2 + $0x1d0] sm:$0xff] %v3603_v0 }
  0x68   : > { %486 = vst [vmem:[#allocation2 + $0x100] sm:$0xff] %v3603_v0  ;;  %487 = vst [vmem:[#allocation2 + $0xc8] sm:$0xff] %v3603_v0 }
  0x69   : > { %488 = vst [vmem:[#allocation2 + $0x40] sm:$0xff] %v3603_v0  ;;  %489 = vst [vmem:[#allocation2 + $0x1f8] sm:$0xff] %v3603_v0 }
  0x6a   : > { %490 = vst [vmem:[#allocation2 + $0x20] sm:$0xff] %v3603_v0  ;;  %491 = vst [vmem:[#allocation2 + $0x128] sm:$0xff] %v3603_v0 }
  0x6b   : > { %492 = vst [vmem:[#allocation2 + $0x1a0] sm:$0xff] %v3603_v0  ;;  %493 = vst [vmem:[#allocation2 + $0x1f0] sm:$0xff] %v3603_v0 }
  0x6c   : > { %494 = vst [vmem:[#allocation2 + $0xe8] sm:$0xff] %v3603_v0  ;;  %495 = vst [vmem:[#allocation2 + $0x78] sm:$0xff] %v3603_v0 }
  0x6d   : > { %496 = vst [vmem:[#allocation2 + $0x70] sm:$0xff] %v3603_v0  ;;  %497 = vst [vmem:[#allocation2 + $0x90] sm:$0xff] %v3603_v0 }
  0x6e   : > { %498 = vst [vmem:[#allocation2 + $0x1d8] sm:$0xff] %v3603_v0  ;;  %499 = vst [vmem:[#allocation2 + $0xd0] sm:$0xff] %v3603_v0 }
  0x6f   : > { %500 = vst [vmem:[#allocation2 + $0xb8] sm:$0xff] %v3603_v0  ;;  %501 = vst [vmem:[#allocation2 + $0x88] sm:$0xff] %v3603_v0 }
  0x70   : > { %502 = vst [vmem:[#allocation2 + $0xa8] sm:$0xff] %v3603_v0  ;;  %503 = vst [vmem:[#allocation2 + $0x1c8] sm:$0xff] %v3603_v0 }
  0x71   : > { %504 = vst [vmem:[#allocation2 + $0x170] sm:$0xff] %v3603_v0  ;;  %505 = vst [vmem:[#allocation2 + $0x178] sm:$0xff] %v3603_v0 }
  0x72   : > { %506 = vst [vmem:[#allocation2 + $0x68] sm:$0xff] %v3603_v0  ;;  %507 = vst [vmem:[#allocation2 + $0x190] sm:$0xff] %v3603_v0 }
  0x73   : > { %508 = vst [vmem:[#allocation2 + $0x198] sm:$0xff] %v3603_v0  ;;  %509 = vst [vmem:[#allocation2 + $0x38] sm:$0xff] %v3603_v0 }
  0x74   : > { %510 = vst [vmem:[#allocation2 + $0xc0] sm:$0xff] %v3603_v0  ;;  %511 = vst [vmem:[#allocation2 + $0x1c0] sm:$0xff] %v3603_v0 }
  0x75   : > { %512 = vst [vmem:[#allocation2 + $0x158] sm:$0xff] %v3603_v0  ;;  %513 = vst [vmem:[#allocation2 + $0x10] sm:$0xff] %v3603_v0 }
  0x76   : > { %514 = vst [vmem:[#allocation2 + $0x58] sm:$0xff] %v3603_v0  ;;  %515 = vst [vmem:[#allocation2 + $0xa0] sm:$0xff] %v3603_v0 }
  0x77 PF: > { %s3006_s0 = sshll.u32 %s3585_s23, 9  ;;  %v3963_v1 = vld [vmem:[%s3892_s17 + $0x8] sm:$0xff]  ;;  %v3966_v2 = vld [vmem:[%s3892_s17 + $0x18] sm:$0xff]  ;;  %v3604_v3 = vmov 0   ;;  %v585_v37 = vld [vmem:[%s3892_s17] sm:$0xff]  ;;  %p3040_p5 = scmp.ne.s32.totalorder %s3585_s23, 2 }
  0x78   : > { %1033 = vmatprep.subr.bf16.mxu0 %v3604_v3  ;;  %1322 = vmatprep.subr.bf16.mxu1 %v3604_v3  ;;  %s517_s26 = sshra.s32 %s3006_s0, 3  ;;  %v650_v4 = vunpack.c.l.s8.bf16 %v3963_v1  ;;  %v652_v5 = vunpack.c.l.s8.bf16 %v3966_v2  ;;  %v587_v39 = vld [vmem:[%s3892_s17 + $0x10] sm:$0xff]  ;;  %v649_v40 = vunpack.c.l.s8.bf16 %v585_v37  ;;  %v654_v41 = vunpack.c.h.s8.bf16 %v3963_v1  ;;  %v590_v44 = vld [vmem:[%s3892_s17 + $0x28] sm:$0xff]  ;;  %v592_v45 = vld [vmem:[%s3892_s17 + $0x38] sm:$0xff] }
  0x79   : > { %s3007_s28 = sshll.u32 %s517_s26, 2  ;;  %v651_v42 = vunpack.c.l.s8.bf16 %v587_v39  ;;  %v656_v43 = vunpack.c.h.s8.bf16 %v3966_v2  ;;  %v653_v46 = vunpack.c.h.s8.bf16 %v585_v37  ;;  %v655_v47 = vunpack.c.h.s8.bf16 %v587_v39  ;;  %v589_v50 = vld [vmem:[%s3892_s17 + $0x20] sm:$0xff]  ;;  %v591_v51 = vld [vmem:[%s3892_s17 + $0x30] sm:$0xff]  ;;  %v594_v56 = vld [vmem:[%s3892_s17 + $0x48] sm:$0xff] }
  0x7a   : > { %s3975_s12 = scalar_lea.vmem %s4616_s2, %s3007_s28  ;;  %1065 = vmatprep.mubr.bf16.mxu0 %v650_v4  ;;  %1354 = vmatprep.mubr.bf16.mxu1 %v652_v5  ;;  %v658_v48 = vunpack.c.l.s8.bf16 %v590_v44  ;;  %v660_v49 = vunpack.c.l.s8.bf16 %v592_v45  ;;  %v657_v52 = vunpack.c.l.s8.bf16 %v589_v50  ;;  %v659_v53 = vunpack.c.l.s8.bf16 %v591_v51  ;;  %v596_v57 = vld [vmem:[%s3892_s17 + $0x58] sm:$0xff]  ;;  %v593_v62 = vld [vmem:[%s3892_s17 + $0x40] sm:$0xff]  ;;  %v595_v63 = vld [vmem:[%s3892_s17 + $0x50] sm:$0xff] }
  0x7b   : > { %v3459_v6 = vld [vmem:[%s3975_s12 + $0x38] sm:$0xff]   ;;  %v3461_v8 = vld [vmem:[%s3975_s12 + $0x30] sm:$0xff]   ;;  %v3463_v10 = vld [vmem:[%s3975_s12 + $0x28] sm:$0xff]   ;;  %v662_v54 = vunpack.c.h.s8.bf16 %v590_v44  ;;  %v664_v55 = vunpack.c.h.s8.bf16 %v592_v45  ;;  %v661_v58 = vunpack.c.h.s8.bf16 %v589_v50  ;;  %v663_v59 = vunpack.c.h.s8.bf16 %v591_v51 }
  0x7c   : > { %v3460_v7 = vld [vmem:[%s3975_s12 + $0xb8] sm:$0xff]   ;;  %1034 = vmatpush1.bf16.msra.mxu0 %v3459_v6  ;;  %v3462_v9 = vld [vmem:[%s3975_s12 + $0xb0] sm:$0xff]   ;;  %v3464_v11 = vld [vmem:[%s3975_s12 + $0xa8] sm:$0xff]   ;;  %v666_v60 = vunpack.c.l.s8.bf16 %v594_v56  ;;  %v668_v61 = vunpack.c.l.s8.bf16 %v596_v57  ;;  %v665_v0 = vunpack.c.l.s8.bf16 %v593_v62  ;;  %v667_v1 = vunpack.c.l.s8.bf16 %v595_v63 }
  0x7d   : > { %1323 = vmatpush1.bf16.msra.mxu1 %v3460_v7  ;;  %1035 = vmatprep.subr.bf16.mxu0 %v3604_v3  ;;  %v3465_v12 = vld [vmem:[%s3975_s12 + $0x20] sm:$0xff]   ;;  %v3467_v14 = vld [vmem:[%s3975_s12 + $0x18] sm:$0xff]   ;;  %v3469_v16 = vld [vmem:[%s3975_s12 + $0x10] sm:$0xff]   ;;  %v670_v2 = vunpack.c.h.s8.bf16 %v594_v56  ;;  %v669_v6 = vunpack.c.h.s8.bf16 %v593_v62  ;;  %v671_v7 = vunpack.c.h.s8.bf16 %v595_v63 }
  0x7e   : > { %1324 = vmatprep.subr.bf16.mxu1 %v3604_v3  ;;  %v3466_v13 = vld [vmem:[%s3975_s12 + $0xa0] sm:$0xff]   ;;  %v3468_v15 = vld [vmem:[%s3975_s12 + $0x98] sm:$0xff]   ;;  %v3470_v17 = vld [vmem:[%s3975_s12 + $0x90] sm:$0xff]  }
  0x7f   : > { %v3471_v18 = vld [vmem:[%s3975_s12 + $0x8] sm:$0xff]   ;;  %v3473_v20 = vld [vmem:[%s3975_s12] sm:$0xff]   ;;  %v3475_v22 = vld [vmem:[%s3975_s12 + $0x78] sm:$0xff]  }
  0x80   : > { %1036 = vmatpush1.bf16.msra.mxu0 %v3461_v8  ;;  %v3472_v19 = vld [vmem:[%s3975_s12 + $0x88] sm:$0xff]   ;;  %v3474_v21 = vld [vmem:[%s3975_s12 + $0x80] sm:$0xff]   ;;  %v3476_v23 = vld [vmem:[%s3975_s12 + $0xf8] sm:$0xff]  }
  0x81   : > { %1325 = vmatpush1.bf16.msra.mxu1 %v3462_v9  ;;  %1037 = vmatprep.subr.bf16.mxu0 %v3604_v3  ;;  %v3477_v24 = vld [vmem:[%s3975_s12 + $0x70] sm:$0xff]   ;;  %v3479_v26 = vld [vmem:[%s3975_s12 + $0x68] sm:$0xff]   ;;  %v3481_v28 = vld [vmem:[%s3975_s12 + $0x60] sm:$0xff]  }
  0x82   : > { %1326 = vmatprep.subr.bf16.mxu1 %v3604_v3  ;;  %v3478_v25 = vld [vmem:[%s3975_s12 + $0xf0] sm:$0xff]   ;;  %v3480_v27 = vld [vmem:[%s3975_s12 + $0xe8] sm:$0xff]   ;;  %v3482_v29 = vld [vmem:[%s3975_s12 + $0xe0] sm:$0xff]  }
  0x83   : > { %v3483_v30 = vld [vmem:[%s3975_s12 + $0x58] sm:$0xff]   ;;  %v3485_v32 = vld [vmem:[%s3975_s12 + $0x50] sm:$0xff]   ;;  %v3487_v34 = vld [vmem:[%s3975_s12 + $0x48] sm:$0xff]  }
  0x84   : > { %1038 = vmatpush1.bf16.msra.mxu0 %v3463_v10  ;;  %v3484_v31 = vld [vmem:[%s3975_s12 + $0xd8] sm:$0xff]   ;;  %v3486_v33 = vld [vmem:[%s3975_s12 + $0xd0] sm:$0xff]   ;;  %v3488_v35 = vld [vmem:[%s3975_s12 + $0xc8] sm:$0xff]  }
  0x85   : > { %1327 = vmatpush1.bf16.msra.mxu1 %v3464_v11  ;;  %1039 = vmatprep.subr.bf16.mxu0 %v3604_v3  ;;  %v3489_v36 = vld [vmem:[%s3975_s12 + $0x40] sm:$0xff]   ;;  %v598_v4 = vld [vmem:[%s3892_s17 + $0x68] sm:$0xff]  ;;  %v600_v5 = vld [vmem:[%s3892_s17 + $0x78] sm:$0xff] }
  0x86   : > { %1328 = vmatprep.subr.bf16.mxu1 %v3604_v3  ;;  %v3490_v38 = vld [vmem:[%s3975_s12 + $0xc0] sm:$0xff]   ;;  %v674_v8 = vunpack.c.l.s8.bf16 %v598_v4  ;;  %v676_v9 = vunpack.c.l.s8.bf16 %v600_v5  ;;  %v599_v11 = vld [vmem:[%s3892_s17 + $0x70] sm:$0xff] }
  0x87   : > { %v597_v10 = vld [vmem:[%s3892_s17 + $0x60] sm:$0xff] }
  0x88   : > { %1040 = vmatpush1.bf16.msra.mxu0 %v3465_v12  ;;  %v673_v12 = vunpack.c.l.s8.bf16 %v597_v10 }
  0x89   : > { %1329 = vmatpush1.bf16.msra.mxu1 %v3466_v13  ;;  %1041 = vmatprep.subr.bf16.mxu0 %v3604_v3  ;;  %v675_v13 = vunpack.c.l.s8.bf16 %v599_v11 }
  0x8a   : > { %1330 = vmatprep.subr.bf16.mxu1 %v3604_v3 }
  0x8c   : > { %1042 = vmatpush1.bf16.msra.mxu0 %v3467_v14  ;;  %v678_v14 = vunpack.c.h.s8.bf16 %v598_v4 }
  0x8d   : > { %1331 = vmatpush1.bf16.msra.mxu1 %v3468_v15  ;;  %1043 = vmatprep.subr.bf16.mxu0 %v3604_v3  ;;  %v680_v15 = vunpack.c.h.s8.bf16 %v600_v5 }
  0x8e   : > { %1332 = vmatprep.subr.bf16.mxu1 %v3604_v3 }
  0x90   : > { %1044 = vmatpush1.bf16.msra.mxu0 %v3469_v16  ;;  %v602_v16 = vld [vmem:[%s3892_s17 + $0x88] sm:$0xff] }
  0x91   : > { %1333 = vmatpush1.bf16.msra.mxu1 %v3470_v17  ;;  %1045 = vmatprep.subr.bf16.mxu0 %v3604_v3  ;;  %v604_v17 = vld [vmem:[%s3892_s17 + $0x98] sm:$0xff] }
  0x92   : > { %1334 = vmatprep.subr.bf16.mxu1 %v3604_v3 }
  0x94   : > { %1046 = vmatpush1.bf16.msra.mxu0 %v3471_v18  ;;  %v677_v18 = vunpack.c.h.s8.bf16 %v597_v10 }
  0x95   : > { %1335 = vmatpush1.bf16.msra.mxu1 %v3472_v19  ;;  %1047 = vmatprep.subr.bf16.mxu0 %v3604_v3  ;;  %v679_v19 = vunpack.c.h.s8.bf16 %v599_v11 }
  0x96   : > { %1336 = vmatprep.subr.bf16.mxu1 %v3604_v3 }
  0x98   : > { %1048 = vmatpush1.bf16.msra.mxu0 %v3473_v20  ;;  %v682_v20 = vunpack.c.l.s8.bf16 %v602_v16 }
  0x99   : > { %1337 = vmatpush1.bf16.msra.mxu1 %v3474_v21  ;;  %1049 = vmatprep.subr.bf16.mxu0 %v3604_v3  ;;  %v684_v21 = vunpack.c.l.s8.bf16 %v604_v17 }
  0x9a   : > { %1338 = vmatprep.subr.bf16.mxu1 %v3604_v3 }
  0x9c   : > { %1050 = vmatpush2.bf16.msra.mxu0 %v3475_v22  ;;  %v601_v22 = vld [vmem:[%s3892_s17 + $0x80] sm:$0xff] }
  0x9d   : > { %1339 = vmatpush2.bf16.msra.mxu1 %v3476_v23  ;;  %1051 = vmatprep.subr.bf16.mxu0 %v3604_v3  ;;  %v603_v23 = vld [vmem:[%s3892_s17 + $0x90] sm:$0xff] }
  0x9e   : > { %1340 = vmatprep.subr.bf16.mxu1 %v3604_v3 }
  0xa0   : > { %1052 = vmatpush2.bf16.msra.mxu0 %v3477_v24  ;;  %v681_v24 = vunpack.c.l.s8.bf16 %v601_v22 }
  0xa1   : > { %1341 = vmatpush2.bf16.msra.mxu1 %v3478_v25  ;;  %1053 = vmatprep.subr.bf16.mxu0 %v3604_v3  ;;  %v683_v25 = vunpack.c.l.s8.bf16 %v603_v23 }
  0xa2   : > { %1342 = vmatprep.subr.bf16.mxu1 %v3604_v3 }
  0xa4   : > { %1054 = vmatpush2.bf16.msra.mxu0 %v3479_v26  ;;  %v686_v26 = vunpack.c.h.s8.bf16 %v602_v16 }
  0xa5   : > { %1343 = vmatpush2.bf16.msra.mxu1 %v3480_v27  ;;  %1055 = vmatprep.subr.bf16.mxu0 %v3604_v3  ;;  %v688_v27 = vunpack.c.h.s8.bf16 %v604_v17 }
  0xa6   : > { %1344 = vmatprep.subr.bf16.mxu1 %v3604_v3 }
  0xa8   : > { %1056 = vmatpush2.bf16.msra.mxu0 %v3481_v28  ;;  %v606_v28 = vld [vmem:[%s3892_s17 + $0xa8] sm:$0xff] }
  0xa9   : > { %1345 = vmatpush2.bf16.msra.mxu1 %v3482_v29  ;;  %1057 = vmatprep.subr.bf16.mxu0 %v3604_v3  ;;  %v608_v29 = vld [vmem:[%s3892_s17 + $0xb8] sm:$0xff] }
  0xaa   : > { %1346 = vmatprep.subr.bf16.mxu1 %v3604_v3  ;;  %v696_v39 = vunpack.c.h.s8.bf16 %v608_v29 }
  0xac   : > { %1058 = vmatpush2.bf16.msra.mxu0 %v3483_v30  ;;  %v685_v30 = vunpack.c.h.s8.bf16 %v601_v22 }
  0xad   : > { %1347 = vmatpush2.bf16.msra.mxu1 %v3484_v31  ;;  %1059 = vmatprep.subr.bf16.mxu0 %v3604_v3  ;;  %v687_v31 = vunpack.c.h.s8.bf16 %v603_v23 }
  0xae   : > { %1348 = vmatprep.subr.bf16.mxu1 %v3604_v3 }
  0xb0   : > { %1060 = vmatpush2.bf16.msra.mxu0 %v3485_v32  ;;  %v690_v32 = vunpack.c.l.s8.bf16 %v606_v28 }
  0xb1   : > { %1349 = vmatpush2.bf16.msra.mxu1 %v3486_v33  ;;  %1061 = vmatprep.subr.bf16.mxu0 %v3604_v3  ;;  %v692_v33 = vunpack.c.l.s8.bf16 %v608_v29 }
  0xb2   : > { %1350 = vmatprep.subr.bf16.mxu1 %v3604_v3 }
  0xb4   : > { %1062 = vmatpush2.bf16.msra.mxu0 %v3487_v34  ;;  %v605_v34 = vld [vmem:[%s3892_s17 + $0xa0] sm:$0xff] }
  0xb5   : > { %1351 = vmatpush2.bf16.msra.mxu1 %v3488_v35  ;;  %1063 = vmatprep.subr.bf16.mxu0 %v3604_v3  ;;  %v607_v35 = vld [vmem:[%s3892_s17 + $0xb0] sm:$0xff] }
  0xb6   : > { %1352 = vmatprep.subr.bf16.mxu1 %v3604_v3  ;;  %v672_v3 = vunpack.c.h.s8.bf16 %v596_v57  ;;  %v691_v37 = vunpack.c.l.s8.bf16 %v607_v35 }
  0xb8   : > { %1064 = vmatpush2.bf16.msra.mxu0 %v3489_v36  ;;  %v689_v36 = vunpack.c.l.s8.bf16 %v605_v34 }
  0xb9   : > { %1353 = vmatpush2.bf16.msra.mxu1 %v3490_v38  ;;  %v694_v38 = vunpack.c.h.s8.bf16 %v606_v28 }
  0xbb   : > { %1066 = vmatmul.mubr.bf16.vlgmr.msra.gmra.mxu0 %v649_v40  ;;  %v610_v40 = vld [vmem:[%s3892_s17 + $0xc8] sm:$0xff] }
  0xbc   : > { %1355 = vmatmul.mubr.bf16.vlgmr.msra.gmra.mxu1 %v651_v42  ;;  %1073 = vmatprep.mubr.bf16.mxu0 %v654_v41  ;;  %v612_v41 = vld [vmem:[%s3892_s17 + $0xd8] sm:$0xff]  ;;  %v693_v42 = vunpack.c.h.s8.bf16 %v605_v34  ;;  %v698_v44 = vunpack.c.l.s8.bf16 %v610_v40  ;;  %v702_v50 = vunpack.c.h.s8.bf16 %v610_v40 }
  0xbd   : > { %1362 = vmatprep.mubr.bf16.mxu1 %v656_v43  ;;  %v695_v43 = vunpack.c.h.s8.bf16 %v607_v35  ;;  %v700_v45 = vunpack.c.l.s8.bf16 %v612_v41  ;;  %v704_v51 = vunpack.c.h.s8.bf16 %v612_v41 }
  0xc3   : > { %1074 = vmatmul.mubr.bf16.gmra.mxu0 %v653_v46  ;;  %v609_v46 = vld [vmem:[%s3892_s17 + $0xc0] sm:$0xff] }
  0xc4   : > { %1363 = vmatmul.mubr.bf16.gmra.mxu1 %v655_v47  ;;  %1081 = vmatprep.mubr.bf16.mxu0 %v658_v48  ;;  %v611_v47 = vld [vmem:[%s3892_s17 + $0xd0] sm:$0xff]  ;;  %v697_v48 = vunpack.c.l.s8.bf16 %v609_v46 }
  0xc5   : > { %1370 = vmatprep.mubr.bf16.mxu1 %v660_v49  ;;  %v699_v49 = vunpack.c.l.s8.bf16 %v611_v47 }
  0xcb   : > { %1082 = vmatmul.mubr.bf16.gmra.mxu0 %v657_v52  ;;  %v614_v52 = vld [vmem:[%s3892_s17 + $0xe8] sm:$0xff] }
  0xcc   : > { %1371 = vmatmul.mubr.bf16.gmra.mxu1 %v659_v53  ;;  %1089 = vmatprep.mubr.bf16.mxu0 %v662_v54  ;;  %v616_v53 = vld [vmem:[%s3892_s17 + $0xf8] sm:$0xff]  ;;  %v701_v54 = vunpack.c.h.s8.bf16 %v609_v46  ;;  %v706_v56 = vunpack.c.l.s8.bf16 %v614_v52  ;;  %v710_v62 = vunpack.c.h.s8.bf16 %v614_v52 }
  0xcd   : > { %1378 = vmatprep.mubr.bf16.mxu1 %v664_v55  ;;  %v703_v55 = vunpack.c.h.s8.bf16 %v611_v47  ;;  %v708_v57 = vunpack.c.l.s8.bf16 %v616_v53  ;;  %v712_v63 = vunpack.c.h.s8.bf16 %v616_v53 }
  0xd3   : > { %1090 = vmatmul.mubr.bf16.gmra.mxu0 %v661_v58  ;;  %v613_v58 = vld [vmem:[%s3892_s17 + $0xe0] sm:$0xff] }
  0xd4   : > { %1379 = vmatmul.mubr.bf16.gmra.mxu1 %v663_v59  ;;  %1097 = vmatprep.mubr.bf16.mxu0 %v666_v60  ;;  %v615_v59 = vld [vmem:[%s3892_s17 + $0xf0] sm:$0xff]  ;;  %v705_v60 = vunpack.c.l.s8.bf16 %v613_v58 }
  0xd5   : > { %1386 = vmatprep.mubr.bf16.mxu1 %v668_v61  ;;  %v707_v61 = vunpack.c.l.s8.bf16 %v615_v59 }
  0xdb   : > { %1098 = vmatmul.mubr.bf16.gmra.mxu0 %v665_v0  ;;  %v618_v0 = vld [vmem:[%s3892_s17 + $0x108] sm:$0xff] }
  0xdc   : > { %1387 = vmatmul.mubr.bf16.gmra.mxu1 %v667_v1  ;;  %1105 = vmatprep.mubr.bf16.mxu0 %v670_v2  ;;  %v620_v1 = vld [vmem:[%s3892_s17 + $0x118] sm:$0xff]  ;;  %v709_v2 = vunpack.c.h.s8.bf16 %v613_v58  ;;  %v714_v4 = vunpack.c.l.s8.bf16 %v618_v0  ;;  %v718_v10 = vunpack.c.h.s8.bf16 %v618_v0 }
  0xdd   : > { %1394 = vmatprep.mubr.bf16.mxu1 %v672_v3  ;;  %v711_v3 = vunpack.c.h.s8.bf16 %v615_v59  ;;  %v716_v5 = vunpack.c.l.s8.bf16 %v620_v1  ;;  %v720_v11 = vunpack.c.h.s8.bf16 %v620_v1  ;;  %v638_v1 = vld [vmem:[%s3892_s17 + $0x1a8] sm:$0xff] }
  0xe3   : > { %1106 = vmatmul.mubr.bf16.gmra.mxu0 %v669_v6  ;;  %v617_v6 = vld [vmem:[%s3892_s17 + $0x100] sm:$0xff] }
  0xe4   : > { %1395 = vmatmul.mubr.bf16.gmra.mxu1 %v671_v7  ;;  %1113 = vmatprep.mubr.bf16.mxu0 %v674_v8  ;;  %v619_v7 = vld [vmem:[%s3892_s17 + $0x110] sm:$0xff]  ;;  %v713_v8 = vunpack.c.l.s8.bf16 %v617_v6 }
  0xe5   : > { %1402 = vmatprep.mubr.bf16.mxu1 %v676_v9  ;;  %v715_v9 = vunpack.c.l.s8.bf16 %v619_v7 }
  0xeb   : > { %1114 = vmatmul.mubr.bf16.gmra.mxu0 %v673_v12  ;;  %v622_v12 = vld [vmem:[%s3892_s17 + $0x128] sm:$0xff] }
  0xec   : > { %1403 = vmatmul.mubr.bf16.gmra.mxu1 %v675_v13  ;;  %1121 = vmatprep.mubr.bf16.mxu0 %v678_v14  ;;  %v624_v13 = vld [vmem:[%s3892_s17 + $0x138] sm:$0xff]  ;;  %v717_v14 = vunpack.c.h.s8.bf16 %v617_v6  ;;  %v722_v16 = vunpack.c.l.s8.bf16 %v622_v12  ;;  %v726_v22 = vunpack.c.h.s8.bf16 %v622_v12 }
  0xed   : > { %1410 = vmatprep.mubr.bf16.mxu1 %v680_v15  ;;  %v719_v15 = vunpack.c.h.s8.bf16 %v619_v7  ;;  %v724_v17 = vunpack.c.l.s8.bf16 %v624_v13  ;;  %v728_v23 = vunpack.c.h.s8.bf16 %v624_v13  ;;  %v778_v7 = vld [vmem:[#allocation2 + $0x1b0] sm:$0xff] }
  0xf3   : > { %1122 = vmatmul.mubr.bf16.gmra.mxu0 %v677_v18  ;;  %v621_v18 = vld [vmem:[%s3892_s17 + $0x120] sm:$0xff] }
  0xf4   : > { %1411 = vmatmul.mubr.bf16.gmra.mxu1 %v679_v19  ;;  %1129 = vmatprep.mubr.bf16.mxu0 %v682_v20  ;;  %v623_v19 = vld [vmem:[%s3892_s17 + $0x130] sm:$0xff]  ;;  %v721_v20 = vunpack.c.l.s8.bf16 %v621_v18 }
  0xf5   : > { %1418 = vmatprep.mubr.bf16.mxu1 %v684_v21  ;;  %v723_v21 = vunpack.c.l.s8.bf16 %v623_v19 }
  0xfb   : > { %1130 = vmatmul.mubr.bf16.gmra.mxu0 %v681_v24  ;;  %v626_v24 = vld [vmem:[%s3892_s17 + $0x148] sm:$0xff] }
  0xfc   : > { %1419 = vmatmul.mubr.bf16.gmra.mxu1 %v683_v25  ;;  %1137 = vmatprep.mubr.bf16.mxu0 %v686_v26  ;;  %v628_v25 = vld [vmem:[%s3892_s17 + $0x158] sm:$0xff]  ;;  %v725_v26 = vunpack.c.h.s8.bf16 %v621_v18  ;;  %v730_v28 = vunpack.c.l.s8.bf16 %v626_v24  ;;  %v734_v34 = vunpack.c.h.s8.bf16 %v626_v24 }
  0xfd   : > { %1426 = vmatprep.mubr.bf16.mxu1 %v688_v27  ;;  %v727_v27 = vunpack.c.h.s8.bf16 %v623_v19  ;;  %v732_v29 = vunpack.c.l.s8.bf16 %v628_v25  ;;  %v736_v35 = vunpack.c.h.s8.bf16 %v628_v25  ;;  %v637_v19 = vld [vmem:[%s3892_s17 + $0x1a0] sm:$0xff] }
 0x103   : > { %1138 = vmatmul.mubr.bf16.gmra.mxu0 %v685_v30  ;;  %v625_v30 = vld [vmem:[%s3892_s17 + $0x140] sm:$0xff] }
 0x104   : > { %1427 = vmatmul.mubr.bf16.gmra.mxu1 %v687_v31  ;;  %1145 = vmatprep.mubr.bf16.mxu0 %v690_v32  ;;  %v627_v31 = vld [vmem:[%s3892_s17 + $0x150] sm:$0xff]  ;;  %v729_v32 = vunpack.c.l.s8.bf16 %v625_v30 }
 0x105   : > { %1434 = vmatprep.mubr.bf16.mxu1 %v692_v33  ;;  %v731_v33 = vunpack.c.l.s8.bf16 %v627_v31 }
 0x10b   : > { %1146 = vmatmul.mubr.bf16.gmra.mxu0 %v689_v36  ;;  %v630_v36 = vld [vmem:[%s3892_s17 + $0x168] sm:$0xff] }
 0x10c   : > { %1435 = vmatmul.mubr.bf16.gmra.mxu1 %v691_v37  ;;  %1153 = vmatprep.mubr.bf16.mxu0 %v694_v38  ;;  %v632_v37 = vld [vmem:[%s3892_s17 + $0x178] sm:$0xff]  ;;  %v733_v38 = vunpack.c.h.s8.bf16 %v625_v30  ;;  %v738_v40 = vunpack.c.l.s8.bf16 %v630_v36  ;;  %v742_v46 = vunpack.c.h.s8.bf16 %v630_v36  ;;  %v758_v30 = vunpack.c.h.s8.bf16 %v638_v1 }
 0x10d   : > { %1442 = vmatprep.mubr.bf16.mxu1 %v696_v39  ;;  %v735_v39 = vunpack.c.h.s8.bf16 %v627_v31  ;;  %v740_v41 = vunpack.c.l.s8.bf16 %v632_v37  ;;  %v744_v47 = vunpack.c.h.s8.bf16 %v632_v37  ;;  %v781_v37 = vld [vmem:[#allocation2 + $0x50] sm:$0xff] }
 0x113   : > { %1154 = vmatmul.mubr.bf16.gmra.mxu0 %v693_v42  ;;  %v629_v42 = vld [vmem:[%s3892_s17 + $0x160] sm:$0xff] }
 0x114   : > { %1443 = vmatmul.mubr.bf16.gmra.mxu1 %v695_v43  ;;  %1161 = vmatprep.mubr.bf16.mxu0 %v698_v44  ;;  %v631_v43 = vld [vmem:[%s3892_s17 + $0x170] sm:$0xff]  ;;  %v737_v44 = vunpack.c.l.s8.bf16 %v629_v42 }
 0x115   : > { %1450 = vmatprep.mubr.bf16.mxu1 %v700_v45  ;;  %v739_v45 = vunpack.c.l.s8.bf16 %v631_v43 }
 0x11b   : > { %1162 = vmatmul.mubr.bf16.gmra.mxu0 %v697_v48  ;;  %v634_v48 = vld [vmem:[%s3892_s17 + $0x188] sm:$0xff] }
 0x11c   : > { %1451 = vmatmul.mubr.bf16.gmra.mxu1 %v699_v49  ;;  %1169 = vmatprep.mubr.bf16.mxu0 %v702_v50  ;;  %v636_v49 = vld [vmem:[%s3892_s17 + $0x198] sm:$0xff]  ;;  %v741_v50 = vunpack.c.h.s8.bf16 %v629_v42  ;;  %v746_v52 = vunpack.c.l.s8.bf16 %v634_v48  ;;  %v750_v58 = vunpack.c.h.s8.bf16 %v634_v48 }
 0x11d   : > { %1458 = vmatprep.mubr.bf16.mxu1 %v704_v51  ;;  %v743_v51 = vunpack.c.h.s8.bf16 %v631_v43  ;;  %v748_v53 = vunpack.c.l.s8.bf16 %v636_v49  ;;  %v752_v59 = vunpack.c.h.s8.bf16 %v636_v49  ;;  %v644_v43 = vld [vmem:[%s3892_s17 + $0x1d8] sm:$0xff] }
 0x123   : > { %1170 = vmatmul.mubr.bf16.gmra.mxu0 %v701_v54  ;;  %v633_v54 = vld [vmem:[%s3892_s17 + $0x180] sm:$0xff] }
 0x124   : > { %1459 = vmatmul.mubr.bf16.gmra.mxu1 %v703_v55  ;;  %1177 = vmatprep.mubr.bf16.mxu0 %v706_v56  ;;  %v635_v55 = vld [vmem:[%s3892_s17 + $0x190] sm:$0xff]  ;;  %v745_v56 = vunpack.c.l.s8.bf16 %v633_v54  ;;  %v749_v6 = vunpack.c.h.s8.bf16 %v633_v54 }
 0x125   : > { %1466 = vmatprep.mubr.bf16.mxu1 %v708_v57  ;;  %v747_v57 = vunpack.c.l.s8.bf16 %v635_v55 }
 0x12b   : > { %1178 = vmatmul.mubr.bf16.gmra.mxu0 %v705_v60 }
 0x12c   : > { %1467 = vmatmul.mubr.bf16.gmra.mxu1 %v707_v61  ;;  %1185 = vmatprep.mubr.bf16.mxu0 %v710_v62  ;;  %v777_v61 = vld [vmem:[#allocation2 + $0xb0] sm:$0xff] }
 0x12d   : > { %1474 = vmatprep.mubr.bf16.mxu1 %v712_v63 }
 0x133   : > { %1186 = vmatmul.mubr.bf16.gmra.mxu0 %v709_v2 }
 0x134   : > { %1475 = vmatmul.mubr.bf16.gmra.mxu1 %v711_v3  ;;  %1193 = vmatprep.mubr.bf16.mxu0 %v714_v4  ;;  %v640_v3 = vld [vmem:[%s3892_s17 + $0x1b8] sm:$0xff] }
 0x135   : > { %1482 = vmatprep.mubr.bf16.mxu1 %v716_v5  ;;  %v756_v13 = vunpack.c.l.s8.bf16 %v640_v3 }
 0x13b   : > { %1194 = vmatmul.mubr.bf16.gmra.mxu0 %v713_v8 }
 0x13c   : > { %1483 = vmatmul.mubr.bf16.gmra.mxu1 %v715_v9  ;;  %1201 = vmatprep.mubr.bf16.mxu0 %v718_v10  ;;  %v751_v9 = vunpack.c.h.s8.bf16 %v635_v55  ;;  %v754_v10 = vunpack.c.l.s8.bf16 %v638_v1 }
 0x13d   : > { %1490 = vmatprep.mubr.bf16.mxu1 %v720_v11 }
 0x143   : > { %1202 = vmatmul.mubr.bf16.gmra.mxu0 %v717_v14 }
 0x144   : > { %1491 = vmatmul.mubr.bf16.gmra.mxu1 %v719_v15  ;;  %1209 = vmatprep.mubr.bf16.mxu0 %v722_v16 }
 0x145   : > { %1498 = vmatprep.mubr.bf16.mxu1 %v724_v17  ;;  %v779_v17 = vld [vmem:[#allocation2 + $0xd8] sm:$0xff] }
 0x14b   : > { %1210 = vmatmul.mubr.bf16.gmra.mxu0 %v721_v20 }
 0x14c   : > { %1499 = vmatmul.mubr.bf16.gmra.mxu1 %v723_v21  ;;  %1217 = vmatprep.mubr.bf16.mxu0 %v726_v22  ;;  %v639_v22 = vld [vmem:[%s3892_s17 + $0x1b0] sm:$0xff] }
 0x14d   : > { %1506 = vmatprep.mubr.bf16.mxu1 %v728_v23  ;;  %v759_v49 = vunpack.c.h.s8.bf16 %v639_v22 }
 0x153   : > { %1218 = vmatmul.mubr.bf16.gmra.mxu0 %v725_v26  ;;  %v753_v26 = vunpack.c.l.s8.bf16 %v637_v19 }
 0x154   : > { %1507 = vmatmul.mubr.bf16.gmra.mxu1 %v727_v27  ;;  %1225 = vmatprep.mubr.bf16.mxu0 %v730_v28  ;;  %v780_v27 = vld [vmem:[#allocation2 + $0x18] sm:$0xff] }
 0x155   : > { %1514 = vmatprep.mubr.bf16.mxu1 %v732_v29  ;;  %v755_v29 = vunpack.c.l.s8.bf16 %v639_v22 }
 0x15b   : > { %1226 = vmatmul.mubr.bf16.gmra.mxu0 %v729_v32 }
 0x15c   : > { %1515 = vmatmul.mubr.bf16.gmra.mxu1 %v731_v33  ;;  %1233 = vmatprep.mubr.bf16.mxu0 %v734_v34  ;;  %v760_v33 = vunpack.c.h.s8.bf16 %v640_v3  ;;  %v784_v3 = vld [vmem:[#allocation2 + $0x48] sm:$0xff] }
 0x15d   : > { %1522 = vmatprep.mubr.bf16.mxu1 %v736_v35 }
 0x163   : > { %1234 = vmatmul.mubr.bf16.gmra.mxu0 %v733_v38 }
 0x164   : > { %1523 = vmatmul.mubr.bf16.gmra.mxu1 %v735_v39  ;;  %1241 = vmatprep.mubr.bf16.mxu0 %v738_v40 }
 0x165   : > { %1530 = vmatprep.mubr.bf16.mxu1 %v740_v41  ;;  %v642_v41 = vld [vmem:[%s3892_s17 + $0x1c8] sm:$0xff] }
 0x16b   : > { %1242 = vmatmul.mubr.bf16.gmra.mxu0 %v737_v44 }
 0x16c   : > { %1531 = vmatmul.mubr.bf16.gmra.mxu1 %v739_v45  ;;  %1249 = vmatprep.mubr.bf16.mxu0 %v742_v46  ;;  %v757_v46 = vunpack.c.h.s8.bf16 %v637_v19  ;;  %v648_v19 = vld [vmem:[%s3892_s17 + $0x1f8] sm:$0xff] }
 0x16d   : > { %1538 = vmatprep.mubr.bf16.mxu1 %v744_v47  ;;  %v782_v47 = vld [vmem:[#allocation2 + $0x168] sm:$0xff] }
 0x173   : > { %1250 = vmatmul.mubr.bf16.gmra.mxu0 %v741_v50  ;;  %v762_v50 = vunpack.c.l.s8.bf16 %v642_v41 }
 0x174   : > { %1539 = vmatmul.mubr.bf16.gmra.mxu1 %v743_v51  ;;  %1257 = vmatprep.mubr.bf16.mxu0 %v746_v52 }
 0x175   : > { %1546 = vmatprep.mubr.bf16.mxu1 %v748_v53  ;;  %v764_v53 = vunpack.c.l.s8.bf16 %v644_v43 }
 0x17b   : > { %v1067_v60 = vpop.f32.mrf.mxu0  ;;  %1258 = vmatmul.mubr.bf16.gmra.mxu0 %v745_v56 }
 0x17c   : > { %v1356_v62 = vpop.f32.mrf.mxu1  ;;  %1547 = vmatmul.mubr.bf16.gmra.mxu1 %v747_v57  ;;  %1265 = vmatprep.mubr.bf16.mxu0 %v750_v58  ;;  %v783_v57 = vld [vmem:[#allocation2 + $0x130] sm:$0xff] }
 0x17d   : > { %v1357_v63 = vadd.f32 %v1356_v62, %v1067_v60  ;;  %v1069_v0 = vpop.f32.mrf.mxu0  ;;  %1554 = vmatprep.mubr.bf16.mxu1 %v752_v59  ;;  %v641_v59 = vld [vmem:[%s3892_s17 + $0x1c0] sm:$0xff]  ;;  %v643_v62 = vld [vmem:[%s3892_s17 + $0x1d0] sm:$0xff] }
 0x17e   : > { %v1358_v2 = vpop.f32.mrf.mxu1  ;;  %v765_v22 = vunpack.c.h.s8.bf16 %v641_v59 }
 0x17f   : > { %v1611_v4 = vadd.f32 %v1357_v63, %v777_v61  ;;  %v1070_v5 = vpop.f32.mrf.mxu0  ;;  %v761_v2 = vunpack.c.l.s8.bf16 %v641_v59 }
 0x180   : > { %v1359_v8 = vpop.f32.mrf.mxu1 }
 0x181   : > { %1675 = vst [vmem:[#allocation2 + $0xb0] sm:$0xff] %v1611_v4  ;;  %v1360_v11 = vadd.f32 %v1359_v8, %v1070_v5  ;;  %v1072_v12 = vpop.f32.mrf.mxu0  ;;  %v763_v5 = vunpack.c.l.s8.bf16 %v643_v62 }
 0x182   : > { %v1361_v14 = vpop.f32.mrf.mxu1 }
 0x183   : > { %v1612_v15 = vadd.f32 %v1360_v11, %v778_v7  ;;  %v1075_v16 = vpop.f32.mrf.mxu0  ;;  %1266 = vmatmul.mubr.bf16.gmra.mxu0 %v749_v6  ;;  %v766_v6 = vunpack.c.h.s8.bf16 %v642_v41 }
 0x184   : > { %v1364_v18 = vpop.f32.mrf.mxu1  ;;  %1555 = vmatmul.mubr.bf16.gmra.mxu1 %v751_v9  ;;  %1273 = vmatprep.mubr.bf16.mxu0 %v754_v10  ;;  %v768_v9 = vunpack.c.h.s8.bf16 %v644_v43  ;;  %v788_v43 = vld [vmem:[#allocation2 + $0x98] sm:$0xff] }
 0x185   : > { %1676 = vst [vmem:[#allocation2 + $0x1b0] sm:$0xff] %v1612_v15  ;;  %v1365_v20 = vadd.f32 %v1364_v18, %v1075_v16  ;;  %v1077_v21 = vpop.f32.mrf.mxu0  ;;  %1562 = vmatprep.mubr.bf16.mxu1 %v756_v13  ;;  %v785_v13 = vld [vmem:[#allocation2 + $0x180] sm:$0xff] }
 0x186   : > { %v1366_v23 = vpop.f32.mrf.mxu1 }
 0x187   : > { %v1613_v24 = vadd.f32 %v1365_v20, %v779_v17  ;;  %v1078_v25 = vpop.f32.mrf.mxu0  ;;  %v646_v17 = vld [vmem:[%s3892_s17 + $0x1e8] sm:$0xff]  ;;  %v786_v23 = vld [vmem:[#allocation2 + $0x110] sm:$0xff] }
 0x188   : > { %v1367_v28 = vpop.f32.mrf.mxu1 }
 0x189   : > { %1677 = vst [vmem:[#allocation2 + $0xd8] sm:$0xff] %v1613_v24  ;;  %v1368_v31 = vadd.f32 %v1367_v28, %v1078_v25  ;;  %v1080_v32 = vpop.f32.mrf.mxu0  ;;  %v767_v25 = vunpack.c.h.s8.bf16 %v643_v62 }
 0x18a   : > { %v1369_v34 = vpop.f32.mrf.mxu1 }
 0x18b   : > { %v1614_v35 = vadd.f32 %v1368_v31, %v780_v27  ;;  %v1083_v36 = vpop.f32.mrf.mxu0  ;;  %1274 = vmatmul.mubr.bf16.gmra.mxu0 %v753_v26  ;;  %v770_v26 = vunpack.c.l.s8.bf16 %v646_v17 }
 0x18c   : > { %v1372_v38 = vpop.f32.mrf.mxu1  ;;  %1563 = vmatmul.mubr.bf16.gmra.mxu1 %v755_v29  ;;  %1281 = vmatprep.mubr.bf16.mxu0 %v758_v30  ;;  %v772_v29 = vunpack.c.l.s8.bf16 %v648_v19 }
 0x18d   : > { %1678 = vst [vmem:[#allocation2 + $0x18] sm:$0xff] %v1614_v35  ;;  %v1373_v39 = vadd.f32 %v1372_v38, %v1083_v36  ;;  %v1085_v40 = vpop.f32.mrf.mxu0  ;;  %1570 = vmatprep.mubr.bf16.mxu1 %v760_v33  ;;  %v787_v33 = vld [vmem:[#allocation2 + $0x118] sm:$0xff]  ;;  %v645_v35 = vld [vmem:[%s3892_s17 + $0x1e0] sm:$0xff]  ;;  %v647_v38 = vld [vmem:[%s3892_s17 + $0x1f0] sm:$0xff] }
 0x18e   : > { %v1374_v42 = vpop.f32.mrf.mxu1 }
 0x18f   : > { %v1615_v44 = vadd.f32 %v1373_v39, %v781_v37  ;;  %v1086_v45 = vpop.f32.mrf.mxu0  ;;  %v769_v42 = vunpack.c.l.s8.bf16 %v645_v35 }
 0x190   : > { %v1375_v48 = vpop.f32.mrf.mxu1 }
 0x191   : > { %1679 = vst [vmem:[#allocation2 + $0x50] sm:$0xff] %v1615_v44  ;;  %v1376_v51 = vadd.f32 %v1375_v48, %v1086_v45  ;;  %v1088_v52 = vpop.f32.mrf.mxu0  ;;  %v771_v45 = vunpack.c.l.s8.bf16 %v647_v38 }
 0x192   : > { %v1377_v54 = vpop.f32.mrf.mxu1 }
 0x193   : > { %v1616_v55 = vadd.f32 %v1376_v51, %v782_v47  ;;  %v1091_v56 = vpop.f32.mrf.mxu0  ;;  %1282 = vmatmul.mubr.bf16.gmra.mxu0 %v757_v46  ;;  %v774_v46 = vunpack.c.h.s8.bf16 %v646_v17 }
 0x194   : > { %v1380_v58 = vpop.f32.mrf.mxu1  ;;  %1571 = vmatmul.mubr.bf16.gmra.mxu1 %v759_v49  ;;  %1289 = vmatprep.mubr.bf16.mxu0 %v762_v50  ;;  %v776_v49 = vunpack.c.h.s8.bf16 %v648_v19  ;;  %v793_v19 = vld [vmem:[#allocation2 + $0xe0] sm:$0xff] }
 0x195   : > { %1680 = vst [vmem:[#allocation2 + $0x168] sm:$0xff] %v1616_v55  ;;  %v1381_v60 = vadd.f32 %v1380_v58, %v1091_v56  ;;  %v1093_v61 = vpop.f32.mrf.mxu0  ;;  %1578 = vmatprep.mubr.bf16.mxu1 %v764_v53  ;;  %v789_v53 = vld [vmem:[#allocation2 + $0x120] sm:$0xff] }
 0x196   : > { %v1382_v63 = vpop.f32.mrf.mxu1  ;;  %v790_v61 = vld [vmem:[#allocation2 + $0x150] sm:$0xff] }
 0x197   : > { %v1617_v0 = vadd.f32 %v1381_v60, %v783_v57  ;;  %v1094_v1 = vpop.f32.mrf.mxu0  ;;  %v773_v60 = vunpack.c.h.s8.bf16 %v645_v35  ;;  %v775_v63 = vunpack.c.h.s8.bf16 %v647_v38 }
 0x198   : > { %v1383_v4 = vpop.f32.mrf.mxu1 }
 0x199   : > { %1681 = vst [vmem:[#allocation2 + $0x130] sm:$0xff] %v1617_v0  ;;  %v1384_v7 = vadd.f32 %v1383_v4, %v1094_v1  ;;  %v1096_v8 = vpop.f32.mrf.mxu0 }
 0x19a   : > { %v1385_v10 = vpop.f32.mrf.mxu1 }
 0x19b   : > { %v1618_v11 = vadd.f32 %v1384_v7, %v784_v3  ;;  %v1099_v12 = vpop.f32.mrf.mxu0  ;;  %1290 = vmatmul.mubr.bf16.gmra.mxu0 %v761_v2 }
 0x19c   : > { %v1388_v14 = vpop.f32.mrf.mxu1  ;;  %1579 = vmatmul.mubr.bf16.gmra.mxu1 %v763_v5  ;;  %1297 = vmatprep.mubr.bf16.mxu0 %v766_v6  ;;  %v791_v5 = vld [vmem:[#allocation2 + $0x108] sm:$0xff] }
 0x19d   : > { %1682 = vst [vmem:[#allocation2 + $0x48] sm:$0xff] %v1618_v11  ;;  %v1389_v15 = vadd.f32 %v1388_v14, %v1099_v12  ;;  %v1101_v16 = vpop.f32.mrf.mxu0  ;;  %1586 = vmatprep.mubr.bf16.mxu1 %v768_v9  ;;  %v792_v12 = vld [vmem:[#allocation2 + $0x60] sm:$0xff] }
 0x19e   : > { %v1390_v18 = vpop.f32.mrf.mxu1 }
 0x19f   : > { %v1619_v20 = vadd.f32 %v1389_v15, %v785_v13  ;;  %v1102_v21 = vpop.f32.mrf.mxu0 }
 0x1a0   : > { %v1391_v24 = vpop.f32.mrf.mxu1 }
 0x1a1   : > { %1683 = vst [vmem:[#allocation2 + $0x180] sm:$0xff] %v1619_v20  ;;  %v1392_v27 = vadd.f32 %v1391_v24, %v1102_v21  ;;  %v1104_v28 = vpop.f32.mrf.mxu0 }
 0x1a2   : > { %v1393_v30 = vpop.f32.mrf.mxu1 }
 0x1a3   : > { %v1620_v31 = vadd.f32 %v1392_v27, %v786_v23  ;;  %v1107_v32 = vpop.f32.mrf.mxu0  ;;  %1298 = vmatmul.mubr.bf16.gmra.mxu0 %v765_v22 }
 0x1a4   : > { %v1396_v34 = vpop.f32.mrf.mxu1  ;;  %1587 = vmatmul.mubr.bf16.gmra.mxu1 %v767_v25  ;;  %1305 = vmatprep.mubr.bf16.mxu0 %v770_v26  ;;  %v794_v26 = vld [vmem:[#allocation2 + $0x188] sm:$0xff] }
 0x1a5   : > { %1684 = vst [vmem:[#allocation2 + $0x110] sm:$0xff] %v1620_v31  ;;  %v1397_v36 = vadd.f32 %v1396_v34, %v1107_v32  ;;  %v1109_v37 = vpop.f32.mrf.mxu0  ;;  %1594 = vmatprep.mubr.bf16.mxu1 %v772_v29 }
 0x1a6   : > { %v1398_v39 = vpop.f32.mrf.mxu1 }
 0x1a7   : > { %v1621_v40 = vadd.f32 %v1397_v36, %v787_v33  ;;  %v1110_v41 = vpop.f32.mrf.mxu0  ;;  %v795_v33 = vld [vmem:[#allocation2 + $0x138] sm:$0xff] }
 0x1a8   : > { %v1399_v44 = vpop.f32.mrf.mxu1 }
 0x1a9   : > { %1685 = vst [vmem:[#allocation2 + $0x118] sm:$0xff] %v1621_v40  ;;  %v1400_v47 = vadd.f32 %v1399_v44, %v1110_v41  ;;  %v1112_v48 = vpop.f32.mrf.mxu0  ;;  %v796_v40 = vld [vmem:[#allocation2 + $0x140] sm:$0xff] }
 0x1aa   : > { %v1401_v50 = vpop.f32.mrf.mxu1 }
 0x1ab   : > { %v1622_v51 = vadd.f32 %v1400_v47, %v788_v43  ;;  %v1115_v52 = vpop.f32.mrf.mxu0  ;;  %1306 = vmatmul.mubr.bf16.gmra.mxu0 %v769_v42  ;;  %v797_v47 = vld [vmem:[#allocation2 + $0x80] sm:$0xff] }
 0x1ac   : > { %v1404_v54 = vpop.f32.mrf.mxu1  ;;  %1595 = vmatmul.mubr.bf16.gmra.mxu1 %v771_v45  ;;  %1313 = vmatprep.mubr.bf16.mxu0 %v774_v46 }
 0x1ad   : > { %1686 = vst [vmem:[#allocation2 + $0x98] sm:$0xff] %v1622_v51  ;;  %v1405_v55 = vadd.f32 %v1404_v54, %v1115_v52  ;;  %v1117_v56 = vpop.f32.mrf.mxu0  ;;  %1602 = vmatprep.mubr.bf16.mxu1 %v776_v49  ;;  %v798_v54 = vld [vmem:[#allocation2 + $0x1a8] sm:$0xff] }
 0x1ae   : > { %v1406_v57 = vpop.f32.mrf.mxu1 }
 0x1af   : > { %v1623_v58 = vadd.f32 %v1405_v55, %v789_v53  ;;  %v1118_v59 = vpop.f32.mrf.mxu0 }
 0x1b0   : > { %v1407_v62 = vpop.f32.mrf.mxu1 }
 0x1b1   : > { %1687 = vst [vmem:[#allocation2 + $0x120] sm:$0xff] %v1623_v58  ;;  %v1408_v0 = vadd.f32 %v1407_v62, %v1118_v59  ;;  %v1120_v1 = vpop.f32.mrf.mxu0 }
 0x1b2   : > { %v1409_v2 = vpop.f32.mrf.mxu1 }
 0x1b3   : > { %v1624_v3 = vadd.f32 %v1408_v0, %v790_v61  ;;  %v1123_v4 = vpop.f32.mrf.mxu0  ;;  %1314 = vmatmul.mubr.bf16.gmra.mxu0 %v773_v60  ;;  %v799_v61 = vld [vmem:[#allocation2 + $0x1b8] sm:$0xff] }
 0x1b4   : > { %v1412_v6 = vpop.f32.mrf.mxu1  ;;  %1603 = vmatmul.mubr.bf16.gmra.mxu1 %v775_v63 }
 0x1b5   : > { %1688 = vst [vmem:[#allocation2 + $0x150] sm:$0xff] %v1624_v3  ;;  %v1413_v7 = vadd.f32 %v1412_v6, %v1123_v4  ;;  %v1125_v8 = vpop.f32.mrf.mxu0  ;;  %v800_v4 = vld [vmem:[#allocation2 + $0x28] sm:$0xff] }
 0x1b6   : > { %v1414_v9 = vpop.f32.mrf.mxu1 }
 0x1b7   : > { %v1625_v10 = vadd.f32 %v1413_v7, %v791_v5  ;;  %v1126_v11 = vpop.f32.mrf.mxu0 }
 0x1b8   : > { %v1415_v13 = vpop.f32.mrf.mxu1 }
 0x1b9   : > { %1689 = vst [vmem:[#allocation2 + $0x108] sm:$0xff] %v1625_v10  ;;  %v1416_v14 = vadd.f32 %v1415_v13, %v1126_v11  ;;  %v1128_v15 = vpop.f32.mrf.mxu0  ;;  %v801_v11 = vld [vmem:[#allocation2 + $0x1e8] sm:$0xff] }
 0x1ba   : > { %v1417_v16 = vpop.f32.mrf.mxu1 }
 0x1bb   : > { %v1626_v17 = vadd.f32 %v1416_v14, %v792_v12  ;;  %v1131_v18 = vpop.f32.mrf.mxu0 }
 0x1bc   : > { %v1420_v20 = vpop.f32.mrf.mxu1 }
 0x1bd   : > { %1690 = vst [vmem:[#allocation2 + $0x60] sm:$0xff] %v1626_v17  ;;  %v1421_v21 = vadd.f32 %v1420_v20, %v1131_v18  ;;  %v1133_v22 = vpop.f32.mrf.mxu0  ;;  %v802_v18 = vld [vmem:[#allocation2 + $0xf8] sm:$0xff] }
 0x1be   : > { %v1422_v23 = vpop.f32.mrf.mxu1 }
 0x1bf   : > { %v1627_v24 = vadd.f32 %v1421_v21, %v793_v19  ;;  %v1134_v25 = vpop.f32.mrf.mxu0 }
 0x1c0   : > { %v1423_v27 = vpop.f32.mrf.mxu1 }
 0x1c1   : > { %1691 = vst [vmem:[#allocation2 + $0xe0] sm:$0xff] %v1627_v24  ;;  %v1424_v28 = vadd.f32 %v1423_v27, %v1134_v25  ;;  %v1136_v29 = vpop.f32.mrf.mxu0  ;;  %v803_v25 = vld [vmem:[#allocation2 + $0x160] sm:$0xff] }
 0x1c2   : > { %v1425_v30 = vpop.f32.mrf.mxu1 }
 0x1c3   : > { %v1628_v31 = vadd.f32 %v1424_v28, %v794_v26  ;;  %v1139_v32 = vpop.f32.mrf.mxu0 }
 0x1c4   : > { %v1428_v34 = vpop.f32.mrf.mxu1 }
 0x1c5   : > { %1692 = vst [vmem:[#allocation2 + $0x188] sm:$0xff] %v1628_v31  ;;  %v1429_v35 = vadd.f32 %v1428_v34, %v1139_v32  ;;  %v1141_v36 = vpop.f32.mrf.mxu0  ;;  %v804_v32 = vld [vmem:[#allocation2 + $0x30] sm:$0xff] }
 0x1c6   : > { %v1430_v37 = vpop.f32.mrf.mxu1 }
 0x1c7   : > { %v1629_v38 = vadd.f32 %v1429_v35, %v795_v33  ;;  %v1142_v39 = vpop.f32.mrf.mxu0 }
 0x1c8   : > { %v1431_v41 = vpop.f32.mrf.mxu1 }
 0x1c9   : > { %1693 = vst [vmem:[#allocation2 + $0x138] sm:$0xff] %v1629_v38  ;;  %v1432_v42 = vadd.f32 %v1431_v41, %v1142_v39  ;;  %v1144_v43 = vpop.f32.mrf.mxu0  ;;  %v805_v39 = vld [vmem:[#allocation2 + $0x1e0] sm:$0xff] }
 0x1ca   : > { %v1433_v44 = vpop.f32.mrf.mxu1 }
 0x1cb   : > { %v1630_v45 = vadd.f32 %v1432_v42, %v796_v40  ;;  %v1147_v46 = vpop.f32.mrf.mxu0 }
 0x1cc   : > { %v1436_v48 = vpop.f32.mrf.mxu1 }
 0x1cd   : > { %1694 = vst [vmem:[#allocation2 + $0x140] sm:$0xff] %v1630_v45  ;;  %v1437_v49 = vadd.f32 %v1436_v48, %v1147_v46  ;;  %v1149_v50 = vpop.f32.mrf.mxu0  ;;  %v806_v46 = vld [vmem:[#allocation2] sm:$0xff] }
 0x1ce   : > { %v1438_v51 = vpop.f32.mrf.mxu1 }
 0x1cf   : > { %v1631_v52 = vadd.f32 %v1437_v49, %v797_v47  ;;  %v1150_v53 = vpop.f32.mrf.mxu0 }
 0x1d0   : > { %v1439_v55 = vpop.f32.mrf.mxu1 }
 0x1d1   : > { %1695 = vst [vmem:[#allocation2 + $0x80] sm:$0xff] %v1631_v52  ;;  %v1440_v56 = vadd.f32 %v1439_v55, %v1150_v53  ;;  %v1152_v57 = vpop.f32.mrf.mxu0  ;;  %v807_v53 = vld [vmem:[#allocation2 + $0xf0] sm:$0xff] }
 0x1d2   : > { %v1441_v58 = vpop.f32.mrf.mxu1 }
 0x1d3   : > { %v1632_v59 = vadd.f32 %v1440_v56, %v798_v54  ;;  %v1155_v60 = vpop.f32.mrf.mxu0 }
 0x1d4   : > { %v1444_v62 = vpop.f32.mrf.mxu1 }
 0x1d5   : > { %1696 = vst [vmem:[#allocation2 + $0x1a8] sm:$0xff] %v1632_v59  ;;  %v1445_v63 = vadd.f32 %v1444_v62, %v1155_v60  ;;  %v1157_v0 = vpop.f32.mrf.mxu0  ;;  %v808_v60 = vld [vmem:[#allocation2 + $0x8] sm:$0xff] }
 0x1d6   : > { %v1446_v1 = vpop.f32.mrf.mxu1 }
 0x1d7   : > { %v1633_v2 = vadd.f32 %v1445_v63, %v799_v61  ;;  %v1158_v3 = vpop.f32.mrf.mxu0 }
 0x1d8   : > { %v1447_v5 = vpop.f32.mrf.mxu1 }
 0x1d9   : > { %1697 = vst [vmem:[#allocation2 + $0x1b8] sm:$0xff] %v1633_v2  ;;  %v1448_v6 = vadd.f32 %v1447_v5, %v1158_v3  ;;  %v1160_v7 = vpop.f32.mrf.mxu0  ;;  %v809_v3 = vld [vmem:[#allocation2 + $0x148] sm:$0xff] }
 0x1da   : > { %v1449_v8 = vpop.f32.mrf.mxu1 }
 0x1db   : > { %v1634_v9 = vadd.f32 %v1448_v6, %v800_v4  ;;  %v1163_v10 = vpop.f32.mrf.mxu0 }
 0x1dc   : > { %v1452_v12 = vpop.f32.mrf.mxu1 }
 0x1dd   : > { %1698 = vst [vmem:[#allocation2 + $0x28] sm:$0xff] %v1634_v9  ;;  %v1453_v13 = vadd.f32 %v1452_v12, %v1163_v10  ;;  %v1165_v14 = vpop.f32.mrf.mxu0  ;;  %v810_v10 = vld [vmem:[#allocation2 + $0x1d0] sm:$0xff] }
 0x1de   : > { %v1454_v15 = vpop.f32.mrf.mxu1 }
 0x1df   : > { %v1635_v16 = vadd.f32 %v1453_v13, %v801_v11  ;;  %v1166_v17 = vpop.f32.mrf.mxu0 }
 0x1e0   : > { %v1455_v19 = vpop.f32.mrf.mxu1 }
 0x1e1   : > { %1699 = vst [vmem:[#allocation2 + $0x1e8] sm:$0xff] %v1635_v16  ;;  %v1456_v20 = vadd.f32 %v1455_v19, %v1166_v17  ;;  %v1168_v21 = vpop.f32.mrf.mxu0  ;;  %v811_v17 = vld [vmem:[#allocation2 + $0x100] sm:$0xff] }
 0x1e2   : > { %v1457_v22 = vpop.f32.mrf.mxu1 }
 0x1e3   : > { %v1636_v23 = vadd.f32 %v1456_v20, %v802_v18  ;;  %v1171_v24 = vpop.f32.mrf.mxu0 }
 0x1e4   : > { %v1460_v26 = vpop.f32.mrf.mxu1 }
 0x1e5   : > { %1700 = vst [vmem:[#allocation2 + $0xf8] sm:$0xff] %v1636_v23  ;;  %v1461_v27 = vadd.f32 %v1460_v26, %v1171_v24  ;;  %v1173_v28 = vpop.f32.mrf.mxu0  ;;  %v812_v24 = vld [vmem:[#allocation2 + $0xc8] sm:$0xff] }
 0x1e6   : > { %v1462_v29 = vpop.f32.mrf.mxu1 }
 0x1e7   : > { %v1637_v30 = vadd.f32 %v1461_v27, %v803_v25  ;;  %v1174_v31 = vpop.f32.mrf.mxu0 }
 0x1e8   : > { %v1463_v33 = vpop.f32.mrf.mxu1 }
 0x1e9   : > { %1701 = vst [vmem:[#allocation2 + $0x160] sm:$0xff] %v1637_v30  ;;  %v1464_v34 = vadd.f32 %v1463_v33, %v1174_v31  ;;  %v1176_v35 = vpop.f32.mrf.mxu0  ;;  %v813_v31 = vld [vmem:[#allocation2 + $0x40] sm:$0xff] }
 0x1ea   : > { %v1465_v36 = vpop.f32.mrf.mxu1 }
 0x1eb   : > { %v1638_v37 = vadd.f32 %v1464_v34, %v804_v32  ;;  %v1179_v38 = vpop.f32.mrf.mxu0 }
 0x1ec   : > { %v1468_v40 = vpop.f32.mrf.mxu1 }
 0x1ed   : > { %1702 = vst [vmem:[#allocation2 + $0x30] sm:$0xff] %v1638_v37  ;;  %v1469_v41 = vadd.f32 %v1468_v40, %v1179_v38  ;;  %v1181_v42 = vpop.f32.mrf.mxu0  ;;  %v814_v38 = vld [vmem:[#allocation2 + $0x1f8] sm:$0xff] }
 0x1ee   : > { %v1470_v43 = vpop.f32.mrf.mxu1 }
 0x1ef   : > { %v1639_v44 = vadd.f32 %v1469_v41, %v805_v39  ;;  %v1182_v45 = vpop.f32.mrf.mxu0 }
 0x1f0   : > { %v1471_v47 = vpop.f32.mrf.mxu1 }
 0x1f1   : > { %1703 = vst [vmem:[#allocation2 + $0x1e0] sm:$0xff] %v1639_v44  ;;  %v1472_v48 = vadd.f32 %v1471_v47, %v1182_v45  ;;  %v1184_v49 = vpop.f32.mrf.mxu0  ;;  %v815_v45 = vld [vmem:[#allocation2 + $0x20] sm:$0xff] }
 0x1f2   : > { %v1473_v50 = vpop.f32.mrf.mxu1 }
 0x1f3   : > { %v1640_v51 = vadd.f32 %v1472_v48, %v806_v46  ;;  %v1187_v52 = vpop.f32.mrf.mxu0 }
 0x1f4   : > { %v1476_v54 = vpop.f32.mrf.mxu1 }
 0x1f5   : > { %1704 = vst [vmem:[#allocation2] sm:$0xff] %v1640_v51  ;;  %v1477_v55 = vadd.f32 %v1476_v54, %v1187_v52  ;;  %v1189_v56 = vpop.f32.mrf.mxu0  ;;  %v816_v52 = vld [vmem:[#allocation2 + $0x128] sm:$0xff] }
 0x1f6   : > { %v1478_v57 = vpop.f32.mrf.mxu1 }
 0x1f7   : > { %v1641_v58 = vadd.f32 %v1477_v55, %v807_v53  ;;  %v1190_v59 = vpop.f32.mrf.mxu0 }
 0x1f8   : > { %v1479_v61 = vpop.f32.mrf.mxu1 }
 0x1f9   : > { %1705 = vst [vmem:[#allocation2 + $0xf0] sm:$0xff] %v1641_v58  ;;  %v1480_v62 = vadd.f32 %v1479_v61, %v1190_v59  ;;  %v1192_v63 = vpop.f32.mrf.mxu0  ;;  %v817_v59 = vld [vmem:[#allocation2 + $0x1a0] sm:$0xff] }
 0x1fa   : > { %v1481_v0 = vpop.f32.mrf.mxu1 }
 0x1fb   : > { %v1642_v1 = vadd.f32 %v1480_v62, %v808_v60  ;;  %v1195_v2 = vpop.f32.mrf.mxu0 }
 0x1fc   : > { %v1484_v4 = vpop.f32.mrf.mxu1 }
 0x1fd   : > { %1706 = vst [vmem:[#allocation2 + $0x8] sm:$0xff] %v1642_v1  ;;  %v1485_v5 = vadd.f32 %v1484_v4, %v1195_v2  ;;  %v1197_v6 = vpop.f32.mrf.mxu0  ;;  %v818_v2 = vld [vmem:[#allocation2 + $0x1f0] sm:$0xff] }
 0x1fe   : > { %v1486_v7 = vpop.f32.mrf.mxu1 }
 0x1ff   : > { %v1643_v8 = vadd.f32 %v1485_v5, %v809_v3  ;;  %v1198_v9 = vpop.f32.mrf.mxu0 }
 0x200   : > { %v1487_v11 = vpop.f32.mrf.mxu1 }
 0x201   : > { %1707 = vst [vmem:[#allocation2 + $0x148] sm:$0xff] %v1643_v8  ;;  %v1488_v12 = vadd.f32 %v1487_v11, %v1198_v9  ;;  %v1200_v13 = vpop.f32.mrf.mxu0  ;;  %v819_v9 = vld [vmem:[#allocation2 + $0xe8] sm:$0xff] }
 0x202   : > { %v1489_v14 = vpop.f32.mrf.mxu1 }
 0x203   : > { %v1644_v15 = vadd.f32 %v1488_v12, %v810_v10  ;;  %v1203_v16 = vpop.f32.mrf.mxu0 }
 0x204   : > { %v1492_v18 = vpop.f32.mrf.mxu1 }
 0x205   : > { %1708 = vst [vmem:[#allocation2 + $0x1d0] sm:$0xff] %v1644_v15  ;;  %v1493_v19 = vadd.f32 %v1492_v18, %v1203_v16  ;;  %v1205_v20 = vpop.f32.mrf.mxu0  ;;  %v820_v16 = vld [vmem:[#allocation2 + $0x78] sm:$0xff] }
 0x206   : > { %v1494_v21 = vpop.f32.mrf.mxu1 }
 0x207   : > { %v1645_v22 = vadd.f32 %v1493_v19, %v811_v17  ;;  %v1206_v23 = vpop.f32.mrf.mxu0 }
 0x208   : > { %v1495_v25 = vpop.f32.mrf.mxu1 }
 0x209   : > { %1709 = vst [vmem:[#allocation2 + $0x100] sm:$0xff] %v1645_v22  ;;  %v1496_v26 = vadd.f32 %v1495_v25, %v1206_v23  ;;  %v1208_v27 = vpop.f32.mrf.mxu0  ;;  %v821_v23 = vld [vmem:[#allocation2 + $0x70] sm:$0xff] }
 0x20a   : > { %v1497_v28 = vpop.f32.mrf.mxu1 }
 0x20b   : > { %v1646_v29 = vadd.f32 %v1496_v26, %v812_v24  ;;  %v1211_v30 = vpop.f32.mrf.mxu0 }
 0x20c   : > { %v1500_v32 = vpop.f32.mrf.mxu1 }
 0x20d   : > { %1710 = vst [vmem:[#allocation2 + $0xc8] sm:$0xff] %v1646_v29  ;;  %v1501_v33 = vadd.f32 %v1500_v32, %v1211_v30  ;;  %v1213_v34 = vpop.f32.mrf.mxu0  ;;  %v822_v30 = vld [vmem:[#allocation2 + $0x90] sm:$0xff] }
 0x20e   : > { %v1502_v35 = vpop.f32.mrf.mxu1 }
 0x20f   : > { %v1647_v36 = vadd.f32 %v1501_v33, %v813_v31  ;;  %v1214_v37 = vpop.f32.mrf.mxu0 }
 0x210   : > { %v1503_v39 = vpop.f32.mrf.mxu1 }
 0x211   : > { %1711 = vst [vmem:[#allocation2 + $0x40] sm:$0xff] %v1647_v36  ;;  %v1504_v40 = vadd.f32 %v1503_v39, %v1214_v37  ;;  %v1216_v41 = vpop.f32.mrf.mxu0  ;;  %v823_v37 = vld [vmem:[#allocation2 + $0x1d8] sm:$0xff] }
 0x212   : > { %v1505_v42 = vpop.f32.mrf.mxu1 }
 0x213   : > { %v1648_v43 = vadd.f32 %v1504_v40, %v814_v38  ;;  %v1219_v44 = vpop.f32.mrf.mxu0 }
 0x214   : > { %v1508_v46 = vpop.f32.mrf.mxu1 }
 0x215   : > { %1712 = vst [vmem:[#allocation2 + $0x1f8] sm:$0xff] %v1648_v43  ;;  %v1509_v47 = vadd.f32 %v1508_v46, %v1219_v44  ;;  %v1221_v48 = vpop.f32.mrf.mxu0  ;;  %v824_v44 = vld [vmem:[#allocation2 + $0xd0] sm:$0xff] }
 0x216   : > { %v1510_v49 = vpop.f32.mrf.mxu1 }
 0x217   : > { %v1649_v50 = vadd.f32 %v1509_v47, %v815_v45  ;;  %v1222_v51 = vpop.f32.mrf.mxu0 }
 0x218   : > { %v1511_v53 = vpop.f32.mrf.mxu1 }
 0x219   : > { %1713 = vst [vmem:[#allocation2 + $0x20] sm:$0xff] %v1649_v50  ;;  %v1512_v54 = vadd.f32 %v1511_v53, %v1222_v51  ;;  %v1224_v55 = vpop.f32.mrf.mxu0  ;;  %v825_v51 = vld [vmem:[#allocation2 + $0xb8] sm:$0xff] }
 0x21a   : > { %v1513_v56 = vpop.f32.mrf.mxu1 }
 0x21b   : > { %v1650_v57 = vadd.f32 %v1512_v54, %v816_v52  ;;  %v1227_v58 = vpop.f32.mrf.mxu0 }
 0x21c   : > { %v1516_v60 = vpop.f32.mrf.mxu1 }
 0x21d   : > { %1714 = vst [vmem:[#allocation2 + $0x128] sm:$0xff] %v1650_v57  ;;  %v1517_v61 = vadd.f32 %v1516_v60, %v1227_v58  ;;  %v1229_v62 = vpop.f32.mrf.mxu0  ;;  %v826_v58 = vld [vmem:[#allocation2 + $0x88] sm:$0xff] }
 0x21e   : > { %v1518_v63 = vpop.f32.mrf.mxu1 }
 0x21f   : > { %v1651_v0 = vadd.f32 %v1517_v61, %v817_v59  ;;  %v1230_v1 = vpop.f32.mrf.mxu0 }
 0x220   : > { %v1519_v3 = vpop.f32.mrf.mxu1 }
 0x221   : > { %1715 = vst [vmem:[#allocation2 + $0x1a0] sm:$0xff] %v1651_v0  ;;  %v1520_v4 = vadd.f32 %v1519_v3, %v1230_v1  ;;  %v1232_v5 = vpop.f32.mrf.mxu0  ;;  %v827_v1 = vld [vmem:[#allocation2 + $0xa8] sm:$0xff] }
 0x222   : > { %v1521_v6 = vpop.f32.mrf.mxu1 }
 0x223   : > { %v1652_v7 = vadd.f32 %v1520_v4, %v818_v2  ;;  %v1235_v8 = vpop.f32.mrf.mxu0 }
 0x224   : > { %v1524_v10 = vpop.f32.mrf.mxu1 }
 0x225   : > { %1716 = vst [vmem:[#allocation2 + $0x1f0] sm:$0xff] %v1652_v7  ;;  %v1525_v11 = vadd.f32 %v1524_v10, %v1235_v8  ;;  %v1237_v12 = vpop.f32.mrf.mxu0  ;;  %v828_v8 = vld [vmem:[#allocation2 + $0x1c8] sm:$0xff] }
 0x226   : > { %v1526_v13 = vpop.f32.mrf.mxu1 }
 0x227   : > { %v1653_v14 = vadd.f32 %v1525_v11, %v819_v9  ;;  %v1238_v15 = vpop.f32.mrf.mxu0 }
 0x228   : > { %v1527_v17 = vpop.f32.mrf.mxu1 }
 0x229   : > { %1717 = vst [vmem:[#allocation2 + $0xe8] sm:$0xff] %v1653_v14  ;;  %v1528_v18 = vadd.f32 %v1527_v17, %v1238_v15  ;;  %v1240_v19 = vpop.f32.mrf.mxu0  ;;  %v829_v15 = vld [vmem:[#allocation2 + $0x170] sm:$0xff] }
 0x22a   : > { %v1529_v20 = vpop.f32.mrf.mxu1 }
 0x22b   : > { %v1654_v21 = vadd.f32 %v1528_v18, %v820_v16  ;;  %v1243_v22 = vpop.f32.mrf.mxu0 }
 0x22c   : > { %v1532_v24 = vpop.f32.mrf.mxu1 }
 0x22d   : > { %1718 = vst [vmem:[#allocation2 + $0x78] sm:$0xff] %v1654_v21  ;;  %v1533_v25 = vadd.f32 %v1532_v24, %v1243_v22  ;;  %v1245_v26 = vpop.f32.mrf.mxu0  ;;  %v830_v22 = vld [vmem:[#allocation2 + $0x178] sm:$0xff] }
 0x22e   : > { %v1534_v27 = vpop.f32.mrf.mxu1 }
 0x22f   : > { %v1655_v28 = vadd.f32 %v1533_v25, %v821_v23  ;;  %v1246_v29 = vpop.f32.mrf.mxu0 }
 0x230   : > { %v1535_v31 = vpop.f32.mrf.mxu1 }
 0x231   : > { %1719 = vst [vmem:[#allocation2 + $0x70] sm:$0xff] %v1655_v28  ;;  %v1536_v32 = vadd.f32 %v1535_v31, %v1246_v29  ;;  %v1248_v33 = vpop.f32.mrf.mxu0  ;;  %v831_v29 = vld [vmem:[#allocation2 + $0x68] sm:$0xff] }
 0x232   : > { %v1537_v34 = vpop.f32.mrf.mxu1 }
 0x233   : > { %v1656_v35 = vadd.f32 %v1536_v32, %v822_v30  ;;  %v1251_v36 = vpop.f32.mrf.mxu0 }
 0x234   : > { %v1540_v38 = vpop.f32.mrf.mxu1 }
 0x235   : > { %1720 = vst [vmem:[#allocation2 + $0x90] sm:$0xff] %v1656_v35  ;;  %v1541_v39 = vadd.f32 %v1540_v38, %v1251_v36  ;;  %v1253_v40 = vpop.f32.mrf.mxu0  ;;  %v832_v36 = vld [vmem:[#allocation2 + $0x190] sm:$0xff] }
 0x236   : > { %v1542_v41 = vpop.f32.mrf.mxu1 }
 0x237   : > { %v1657_v42 = vadd.f32 %v1541_v39, %v823_v37  ;;  %v1254_v43 = vpop.f32.mrf.mxu0 }
 0x238   : > { %v1543_v45 = vpop.f32.mrf.mxu1 }
 0x239   : > { %1721 = vst [vmem:[#allocation2 + $0x1d8] sm:$0xff] %v1657_v42  ;;  %v1544_v46 = vadd.f32 %v1543_v45, %v1254_v43  ;;  %v1256_v47 = vpop.f32.mrf.mxu0  ;;  %v833_v43 = vld [vmem:[#allocation2 + $0x198] sm:$0xff] }
 0x23a   : > { %v1545_v48 = vpop.f32.mrf.mxu1 }
 0x23b   : > { %v1658_v49 = vadd.f32 %v1544_v46, %v824_v44  ;;  %v1259_v50 = vpop.f32.mrf.mxu0 }
 0x23c   : > { %v1548_v52 = vpop.f32.mrf.mxu1 }
 0x23d   : > { %1722 = vst [vmem:[#allocation2 + $0xd0] sm:$0xff] %v1658_v49  ;;  %v1549_v53 = vadd.f32 %v1548_v52, %v1259_v50  ;;  %v1261_v54 = vpop.f32.mrf.mxu0  ;;  %v834_v50 = vld [vmem:[#allocation2 + $0x38] sm:$0xff] }
 0x23e   : > { %v1550_v55 = vpop.f32.mrf.mxu1 }
 0x23f   : > { %v1659_v56 = vadd.f32 %v1549_v53, %v825_v51  ;;  %v1262_v57 = vpop.f32.mrf.mxu0 }
 0x240   : > { %v1551_v59 = vpop.f32.mrf.mxu1 }
 0x241   : > { %1723 = vst [vmem:[#allocation2 + $0xb8] sm:$0xff] %v1659_v56  ;;  %v1552_v60 = vadd.f32 %v1551_v59, %v1262_v57  ;;  %v1264_v61 = vpop.f32.mrf.mxu0  ;;  %v835_v57 = vld [vmem:[#allocation2 + $0xc0] sm:$0xff] }
 0x242   : > { %v1553_v62 = vpop.f32.mrf.mxu1 }
 0x243   : > { %v1660_v63 = vadd.f32 %v1552_v60, %v826_v58  ;;  %v1267_v0 = vpop.f32.mrf.mxu0 }
 0x244   : > { %v1556_v2 = vpop.f32.mrf.mxu1 }
 0x245   : > { %1724 = vst [vmem:[#allocation2 + $0x88] sm:$0xff] %v1660_v63  ;;  %v1557_v3 = vadd.f32 %v1556_v2, %v1267_v0  ;;  %v1269_v4 = vpop.f32.mrf.mxu0  ;;  %v836_v0 = vld [vmem:[#allocation2 + $0x1c0] sm:$0xff] }
 0x246   : > { %v1558_v5 = vpop.f32.mrf.mxu1 }
 0x247   : > { %v1661_v6 = vadd.f32 %v1557_v3, %v827_v1  ;;  %v1270_v7 = vpop.f32.mrf.mxu0 }
 0x248   : > { %v1559_v9 = vpop.f32.mrf.mxu1 }
 0x249   : > { %1725 = vst [vmem:[#allocation2 + $0xa8] sm:$0xff] %v1661_v6  ;;  %v1560_v10 = vadd.f32 %v1559_v9, %v1270_v7  ;;  %v1272_v11 = vpop.f32.mrf.mxu0  ;;  %v837_v7 = vld [vmem:[#allocation2 + $0x158] sm:$0xff] }
 0x24a   : > { %v1561_v12 = vpop.f32.mrf.mxu1 }
 0x24b   : > { %v1662_v13 = vadd.f32 %v1560_v10, %v828_v8  ;;  %v1275_v14 = vpop.f32.mrf.mxu0 }
 0x24c   : > { %v1564_v16 = vpop.f32.mrf.mxu1 }
 0x24d   : > { %1726 = vst [vmem:[#allocation2 + $0x1c8] sm:$0xff] %v1662_v13  ;;  %v1565_v17 = vadd.f32 %v1564_v16, %v1275_v14  ;;  %v1277_v18 = vpop.f32.mrf.mxu0  ;;  %v838_v14 = vld [vmem:[#allocation2 + $0x10] sm:$0xff] }
 0x24e   : > { %v1566_v19 = vpop.f32.mrf.mxu1 }
 0x24f   : > { %v1663_v20 = vadd.f32 %v1565_v17, %v829_v15  ;;  %v1278_v21 = vpop.f32.mrf.mxu0 }
 0x250   : > { %v1567_v23 = vpop.f32.mrf.mxu1 }
 0x251   : > { %1727 = vst [vmem:[#allocation2 + $0x170] sm:$0xff] %v1663_v20  ;;  %v1568_v24 = vadd.f32 %v1567_v23, %v1278_v21  ;;  %v1280_v25 = vpop.f32.mrf.mxu0  ;;  %v839_v21 = vld [vmem:[#allocation2 + $0x58] sm:$0xff] }
 0x252   : > { %v1569_v26 = vpop.f32.mrf.mxu1 }
 0x253   : > { %v1664_v27 = vadd.f32 %v1568_v24, %v830_v22  ;;  %v1283_v28 = vpop.f32.mrf.mxu0 }
 0x254   : > { %v1572_v30 = vpop.f32.mrf.mxu1 }
 0x255   : > { %1728 = vst [vmem:[#allocation2 + $0x178] sm:$0xff] %v1664_v27  ;;  %v1573_v31 = vadd.f32 %v1572_v30, %v1283_v28  ;;  %v1285_v32 = vpop.f32.mrf.mxu0  ;;  %v840_v28 = vld [vmem:[#allocation2 + $0xa0] sm:$0xff] }
 0x256   : > { %v1574_v33 = vpop.f32.mrf.mxu1 }
 0x257   : > { %v1665_v34 = vadd.f32 %v1573_v31, %v831_v29  ;;  %v1286_v35 = vpop.f32.mrf.mxu0 }
 0x258   : > { %v1575_v37 = vpop.f32.mrf.mxu1 }
 0x259   : > { %1729 = vst [vmem:[#allocation2 + $0x68] sm:$0xff] %v1665_v34  ;;  %v1576_v38 = vadd.f32 %v1575_v37, %v1286_v35  ;;  %v1288_v39 = vpop.f32.mrf.mxu0 }
 0x25a   : > { %v1577_v40 = vpop.f32.mrf.mxu1 }
 0x25b   : > { %v1666_v41 = vadd.f32 %v1576_v38, %v832_v36  ;;  %v1291_v42 = vpop.f32.mrf.mxu0 }
 0x25c   : > { %v1580_v44 = vpop.f32.mrf.mxu1 }
 0x25d   : > { %1730 = vst [vmem:[#allocation2 + $0x190] sm:$0xff] %v1666_v41  ;;  %v1581_v45 = vadd.f32 %v1580_v44, %v1291_v42  ;;  %v1293_v46 = vpop.f32.mrf.mxu0 }
 0x25e   : > { %v1582_v47 = vpop.f32.mrf.mxu1 }
 0x25f   : > { %v1667_v48 = vadd.f32 %v1581_v45, %v833_v43  ;;  %v1294_v49 = vpop.f32.mrf.mxu0 }
 0x260   : > { %v1583_v51 = vpop.f32.mrf.mxu1 }
 0x261   : > { %1731 = vst [vmem:[#allocation2 + $0x198] sm:$0xff] %v1667_v48  ;;  %v1584_v52 = vadd.f32 %v1583_v51, %v1294_v49  ;;  %v1296_v53 = vpop.f32.mrf.mxu0 }
 0x262   : > { %v1585_v54 = vpop.f32.mrf.mxu1 }
 0x263   : > { %v1668_v55 = vadd.f32 %v1584_v52, %v834_v50  ;;  %v1299_v56 = vpop.f32.mrf.mxu0 }
 0x264   : > { %v1588_v58 = vpop.f32.mrf.mxu1 }
 0x265   : > { %1732 = vst [vmem:[#allocation2 + $0x38] sm:$0xff] %v1668_v55  ;;  %v1589_v59 = vadd.f32 %v1588_v58, %v1299_v56  ;;  %v1301_v60 = vpop.f32.mrf.mxu0 }
 0x266   : > { %v1590_v61 = vpop.f32.mrf.mxu1 }
 0x267   : > { %v1669_v62 = vadd.f32 %v1589_v59, %v835_v57  ;;  %v1302_v63 = vpop.f32.mrf.mxu0 }
 0x268   : > { %v1591_v1 = vpop.f32.mrf.mxu1 }
 0x269   : > { %1733 = vst [vmem:[#allocation2 + $0xc0] sm:$0xff] %v1669_v62  ;;  %v1592_v2 = vadd.f32 %v1591_v1, %v1302_v63  ;;  %v1304_v3 = vpop.f32.mrf.mxu0 }
 0x26a   : > { %v1593_v4 = vpop.f32.mrf.mxu1 }
 0x26b   : > { %v1670_v5 = vadd.f32 %v1592_v2, %v836_v0  ;;  %v1307_v6 = vpop.f32.mrf.mxu0 }
 0x26c   : > { %v1596_v8 = vpop.f32.mrf.mxu1 }
 0x26d   : > { %1734 = vst [vmem:[#allocation2 + $0x1c0] sm:$0xff] %v1670_v5  ;;  %v1597_v9 = vadd.f32 %v1596_v8, %v1307_v6  ;;  %v1309_v10 = vpop.f32.mrf.mxu0 }
 0x26e   : > { %v1598_v11 = vpop.f32.mrf.mxu1 }
 0x26f   : > { %v1671_v12 = vadd.f32 %v1597_v9, %v837_v7  ;;  %v1310_v13 = vpop.f32.mrf.mxu0 }
 0x270   : > { %v1599_v15 = vpop.f32.mrf.mxu1 }
 0x271   : > { %1735 = vst [vmem:[#allocation2 + $0x158] sm:$0xff] %v1671_v12  ;;  %v1600_v16 = vadd.f32 %v1599_v15, %v1310_v13  ;;  %v1312_v17 = vpop.f32.mrf.mxu0 }
 0x272   : > { %v1601_v18 = vpop.f32.mrf.mxu1 }
 0x273   : > { %v1672_v19 = vadd.f32 %v1600_v16, %v838_v14  ;;  %v1315_v20 = vpop.f32.mrf.mxu0 }
 0x274   : > { %v1604_v22 = vpop.f32.mrf.mxu1 }
 0x275   : > { %1736 = vst [vmem:[#allocation2 + $0x10] sm:$0xff] %v1672_v19  ;;  %v1605_v23 = vadd.f32 %v1604_v22, %v1315_v20  ;;  %v1317_v24 = vpop.f32.mrf.mxu0 }
 0x276   : > { %v1606_v25 = vpop.f32.mrf.mxu1 }
 0x277   : > { %v1673_v26 = vadd.f32 %v1605_v23, %v839_v21  ;;  %v1318_v27 = vpop.f32.mrf.mxu0 }
 0x278   : > { %v1607_v29 = vpop.f32.mrf.mxu1 }
 0x279   : > { %1737 = vst [vmem:[#allocation2 + $0x58] sm:$0xff] %v1673_v26  ;;  %v1608_v30 = vadd.f32 %v1607_v29, %v1318_v27  ;;  %v1320_v31 = vpop.f32.mrf.mxu0  ;;  %1742 = sbr.rel (%p3040_p5) target bundleno = 895 (0x37f), region = 67 }
 0x27a   : > { %v1609_v32 = vpop.f32.mrf.mxu1 }
 0x27b   : > { %v1674_v33 = vadd.f32 %v1608_v30, %v840_v28 }
 0x27d   : > { %1738 = vst [vmem:[#allocation2 + $0xa0] sm:$0xff] %v1674_v33 }
 0x27e   : > { %v1745_v34 = vld [vmem:[%s3880_s7 + $0x10] sm:$0xff]  ;;  %v1743_v35 = vld [vmem:[%s3880_s7] sm:$0xff]  ;;  %v3605_v36 = vmov 0   ;;  %v1746_v37 = vld [vmem:[%s3880_s7 + $0x18] sm:$0xff] }
 0x27f   : > { %3492 = vset.pattern.permute.xlu1 %v3605_v36  ;;  %3491 = vset.pattern.permute.xlu0 %v3605_v36  ;;  %v1744_v38 = vld [vmem:[%s3880_s7 + $0x8] sm:$0xff]  ;;  %v1747_v40 = vld [vmem:[%s3880_s7 + $0x20] sm:$0xff]  ;;  %v1750_v41 = vld [vmem:[%s3880_s7 + $0x38] sm:$0xff] }
 0x280   : > { %1883 = vperm.xlu1 %3492, %v1745_v34   ;;  %1873 = vperm.xlu0 %3491, %v1743_v35   ;;  %v1748_v39 = vld [vmem:[%s3880_s7 + $0x28] sm:$0xff]  ;;  %v1749_v42 = vld [vmem:[%s3880_s7 + $0x30] sm:$0xff]  ;;  %v1751_v44 = vld [vmem:[%s3880_s7 + $0x40] sm:$0xff] }
 0x281   : > { %v1752_v43 = vld [vmem:[%s3880_s7 + $0x48] sm:$0xff]  ;;  %v1754_v45 = vld [vmem:[%s3880_s7 + $0x58] sm:$0xff]  ;;  %v1753_v46 = vld [vmem:[%s3880_s7 + $0x50] sm:$0xff] }
 0x282   : > { %v1756_v47 = vld [vmem:[%s3880_s7 + $0x68] sm:$0xff]  ;;  %v1755_v48 = vld [vmem:[%s3880_s7 + $0x60] sm:$0xff]  ;;  %v1758_v49 = vld [vmem:[%s3880_s7 + $0x78] sm:$0xff] }
 0x283   : > { %v1757_v50 = vld [vmem:[%s3880_s7 + $0x70] sm:$0xff]  ;;  %v1760_v51 = vld [vmem:[%s3880_s7 + $0x88] sm:$0xff]  ;;  %v1759_v52 = vld [vmem:[%s3880_s7 + $0x80] sm:$0xff] }
 0x284   : > { %1888 = vperm.xlu1 %3492, %v1746_v37   ;;  %1878 = vperm.xlu0 %3491, %v1744_v38   ;;  %v1762_v53 = vld [vmem:[%s3880_s7 + $0x98] sm:$0xff]  ;;  %v1761_v54 = vld [vmem:[%s3880_s7 + $0x90] sm:$0xff]  ;;  %v1764_v55 = vld [vmem:[%s3880_s7 + $0xa8] sm:$0xff] }
 0x285   : > { %v1763_v56 = vld [vmem:[%s3880_s7 + $0xa0] sm:$0xff]  ;;  %v1766_v57 = vld [vmem:[%s3880_s7 + $0xb8] sm:$0xff]  ;;  %v1765_v58 = vld [vmem:[%s3880_s7 + $0xb0] sm:$0xff] }
 0x286   : > { %v1768_v59 = vld [vmem:[%s3880_s7 + $0xc8] sm:$0xff]  ;;  %v1767_v60 = vld [vmem:[%s3880_s7 + $0xc0] sm:$0xff]  ;;  %v1770_v61 = vld [vmem:[%s3880_s7 + $0xd8] sm:$0xff] }
 0x287   : > { %v1769_v62 = vld [vmem:[%s3880_s7 + $0xd0] sm:$0xff]  ;;  %v1772_v63 = vld [vmem:[%s3880_s7 + $0xe8] sm:$0xff]  ;;  %v1771_v0 = vld [vmem:[%s3880_s7 + $0xe0] sm:$0xff] }
 0x288   : > { %1898 = vperm.xlu1 %3492, %v1748_v39   ;;  %1893 = vperm.xlu0 %3491, %v1747_v40   ;;  %v1774_v1 = vld [vmem:[%s3880_s7 + $0xf8] sm:$0xff]  ;;  %v1773_v2 = vld [vmem:[%s3880_s7 + $0xf0] sm:$0xff]  ;;  %v1776_v3 = vld [vmem:[%s3880_s7 + $0x108] sm:$0xff] }
 0x289   : > { %v1775_v4 = vld [vmem:[%s3880_s7 + $0x100] sm:$0xff]  ;;  %v1778_v5 = vld [vmem:[%s3880_s7 + $0x118] sm:$0xff]  ;;  %v1777_v6 = vld [vmem:[%s3880_s7 + $0x110] sm:$0xff] }
 0x28a   : > { %v1780_v7 = vld [vmem:[%s3880_s7 + $0x128] sm:$0xff]  ;;  %v1779_v8 = vld [vmem:[%s3880_s7 + $0x120] sm:$0xff]  ;;  %v1782_v9 = vld [vmem:[%s3880_s7 + $0x138] sm:$0xff] }
 0x28b   : > { %v1781_v10 = vld [vmem:[%s3880_s7 + $0x130] sm:$0xff]  ;;  %v1784_v11 = vld [vmem:[%s3880_s7 + $0x148] sm:$0xff]  ;;  %v1783_v12 = vld [vmem:[%s3880_s7 + $0x140] sm:$0xff] }
 0x28c   : > { %1908 = vperm.xlu1 %3492, %v1750_v41   ;;  %1903 = vperm.xlu0 %3491, %v1749_v42   ;;  %v1786_v13 = vld [vmem:[%s3880_s7 + $0x158] sm:$0xff]  ;;  %v1785_v14 = vld [vmem:[%s3880_s7 + $0x150] sm:$0xff]  ;;  %v1788_v15 = vld [vmem:[%s3880_s7 + $0x168] sm:$0xff] }
 0x28d   : > { %v1787_v16 = vld [vmem:[%s3880_s7 + $0x160] sm:$0xff]  ;;  %v1790_v17 = vld [vmem:[%s3880_s7 + $0x178] sm:$0xff]  ;;  %v1789_v18 = vld [vmem:[%s3880_s7 + $0x170] sm:$0xff] }
 0x28e   : > { %v1792_v19 = vld [vmem:[%s3880_s7 + $0x188] sm:$0xff]  ;;  %v1791_v20 = vld [vmem:[%s3880_s7 + $0x180] sm:$0xff]  ;;  %v1794_v21 = vld [vmem:[%s3880_s7 + $0x198] sm:$0xff] }
 0x28f   : > { %v1793_v22 = vld [vmem:[%s3880_s7 + $0x190] sm:$0xff]  ;;  %v1796_v23 = vld [vmem:[%s3880_s7 + $0x1a8] sm:$0xff]  ;;  %v1795_v24 = vld [vmem:[%s3880_s7 + $0x1a0] sm:$0xff] }
 0x290   : > { %1918 = vperm.xlu1 %3492, %v1752_v43   ;;  %1913 = vperm.xlu0 %3491, %v1751_v44   ;;  %v1798_v25 = vld [vmem:[%s3880_s7 + $0x1b8] sm:$0xff]  ;;  %v1797_v26 = vld [vmem:[%s3880_s7 + $0x1b0] sm:$0xff]  ;;  %v1800_v27 = vld [vmem:[%s3880_s7 + $0x1c8] sm:$0xff] }
 0x291   : > { %v1799_v28 = vld [vmem:[%s3880_s7 + $0x1c0] sm:$0xff]  ;;  %v1802_v29 = vld [vmem:[%s3880_s7 + $0x1d8] sm:$0xff]  ;;  %v1801_v30 = vld [vmem:[%s3880_s7 + $0x1d0] sm:$0xff] }
 0x292   : > { %v1804_v31 = vld [vmem:[%s3880_s7 + $0x1e8] sm:$0xff]  ;;  %v1803_v32 = vld [vmem:[%s3880_s7 + $0x1e0] sm:$0xff]  ;;  %v4166_v33 = vld [vmem:[#allocation2 + $0xd8] sm:$0xff] }
 0x293   : > { %v4168_v34 = vld [vmem:[#allocation2 + $0xb0] sm:$0xff]  ;;  %v4171_v35 = vld [vmem:[%s3880_s7 + $0x1f8] sm:$0xff]  ;;  %v4180_v38 = vld [vmem:[%s3885_s30] sm:$0xff] }
 0x294   : > { %1928 = vperm.xlu1 %3492, %v1754_v45   ;;  %1923 = vperm.xlu0 %3491, %v1753_v46   ;;  %v4174_v36 = vld [vmem:[%s3880_s7 + $0x1f0] sm:$0xff]  ;;  %v4186_v41 = vld [vmem:[#allocation2 + $0x18] sm:$0xff]  ;;  %v4194_v44 = vld [vmem:[%s3885_s30 + $0x8] sm:$0xff] }
 0x295   : > { %v4177_v37 = vld [vmem:[%s3885_s30 + $0x10] sm:$0xff]  ;;  %v4189_v42 = vld [vmem:[%s3885_s30 + $0x18] sm:$0xff]  ;;  %v4197_v45 = vld [vmem:[%s3885_s30 + $0x28] sm:$0xff] }
 0x296   : > { %v4191_v43 = vld [vmem:[#allocation2 + $0x1b0] sm:$0xff]  ;;  %v4200_v46 = vld [vmem:[%s3885_s30 + $0x20] sm:$0xff] }
 0x298   : > { %1938 = vperm.xlu1 %3492, %v1756_v47   ;;  %1933 = vperm.xlu0 %3491, %v1755_v48   ;;  %v4203_v47 = vld [vmem:[%s3885_s30 + $0x38] sm:$0xff]  ;;  %v4206_v48 = vld [vmem:[%s3885_s30 + $0x30] sm:$0xff] }
 0x29c   : > { %1948 = vperm.xlu1 %3492, %v1758_v49   ;;  %1943 = vperm.xlu0 %3491, %v1757_v50   ;;  %v4209_v49 = vld [vmem:[%s3885_s30 + $0x48] sm:$0xff]  ;;  %v4212_v50 = vld [vmem:[%s3885_s30 + $0x40] sm:$0xff] }
 0x2a0   : > { %1958 = vperm.xlu1 %3492, %v1760_v51   ;;  %1953 = vperm.xlu0 %3491, %v1759_v52   ;;  %v4215_v51 = vld [vmem:[%s3885_s30 + $0x58] sm:$0xff]  ;;  %v4218_v52 = vld [vmem:[%s3885_s30 + $0x50] sm:$0xff] }
 0x2a4   : > { %1968 = vperm.xlu1 %3492, %v1762_v53   ;;  %1963 = vperm.xlu0 %3491, %v1761_v54   ;;  %v4221_v53 = vld [vmem:[%s3885_s30 + $0x68] sm:$0xff]  ;;  %v4224_v54 = vld [vmem:[%s3885_s30 + $0x60] sm:$0xff] }
 0x2a8   : > { %1978 = vperm.xlu1 %3492, %v1764_v55   ;;  %1973 = vperm.xlu0 %3491, %v1763_v56   ;;  %v4227_v55 = vld [vmem:[%s3885_s30 + $0x78] sm:$0xff]  ;;  %v4230_v56 = vld [vmem:[%s3885_s30 + $0x70] sm:$0xff] }
 0x2ac   : > { %1988 = vperm.xlu1 %3492, %v1766_v57   ;;  %1983 = vperm.xlu0 %3491, %v1765_v58   ;;  %v4233_v57 = vld [vmem:[%s3885_s30 + $0x88] sm:$0xff]  ;;  %v4236_v58 = vld [vmem:[%s3885_s30 + $0x80] sm:$0xff] }
 0x2b0   : > { %1998 = vperm.xlu1 %3492, %v1768_v59   ;;  %1993 = vperm.xlu0 %3491, %v1767_v60   ;;  %v4239_v59 = vld [vmem:[%s3885_s30 + $0x98] sm:$0xff]  ;;  %v4242_v60 = vld [vmem:[%s3885_s30 + $0x90] sm:$0xff] }
 0x2b4   : > { %2008 = vperm.xlu1 %3492, %v1770_v61   ;;  %2003 = vperm.xlu0 %3491, %v1769_v62   ;;  %v4245_v61 = vld [vmem:[%s3885_s30 + $0xa8] sm:$0xff]  ;;  %v4248_v62 = vld [vmem:[%s3885_s30 + $0xa0] sm:$0xff] }
 0x2b8   : > { %2018 = vperm.xlu1 %3492, %v1772_v63   ;;  %2013 = vperm.xlu0 %3491, %v1771_v0   ;;  %v4251_v63 = vld [vmem:[%s3885_s30 + $0xb8] sm:$0xff]  ;;  %v4254_v0 = vld [vmem:[%s3885_s30 + $0xb0] sm:$0xff] }
 0x2bc   : > { %2028 = vperm.xlu1 %3492, %v1774_v1   ;;  %2023 = vperm.xlu0 %3491, %v1773_v2   ;;  %v4257_v1 = vld [vmem:[%s3885_s30 + $0xc8] sm:$0xff]  ;;  %v4260_v2 = vld [vmem:[%s3885_s30 + $0xc0] sm:$0xff] }
 0x2c0   : > { %2038 = vperm.xlu1 %3492, %v1776_v3   ;;  %2033 = vperm.xlu0 %3491, %v1775_v4   ;;  %v4263_v3 = vld [vmem:[%s3885_s30 + $0xd8] sm:$0xff]  ;;  %v4266_v4 = vld [vmem:[%s3885_s30 + $0xd0] sm:$0xff] }
 0x2c4   : > { %2048 = vperm.xlu1 %3492, %v1778_v5   ;;  %2043 = vperm.xlu0 %3491, %v1777_v6   ;;  %v4269_v5 = vld [vmem:[%s3885_s30 + $0xe8] sm:$0xff]  ;;  %v4272_v6 = vld [vmem:[%s3885_s30 + $0xe0] sm:$0xff] }
 0x2c8   : > { %2058 = vperm.xlu1 %3492, %v1780_v7   ;;  %2053 = vperm.xlu0 %3491, %v1779_v8   ;;  %v4275_v7 = vld [vmem:[%s3885_s30 + $0xf8] sm:$0xff]  ;;  %v4278_v8 = vld [vmem:[%s3885_s30 + $0xf0] sm:$0xff] }
 0x2cc   : > { %2068 = vperm.xlu1 %3492, %v1782_v9   ;;  %2063 = vperm.xlu0 %3491, %v1781_v10   ;;  %v4281_v9 = vld [vmem:[%s3885_s30 + $0x108] sm:$0xff]  ;;  %v4284_v10 = vld [vmem:[%s3885_s30 + $0x100] sm:$0xff] }
 0x2d0   : > { %2078 = vperm.xlu1 %3492, %v1784_v11   ;;  %2073 = vperm.xlu0 %3491, %v1783_v12   ;;  %v4287_v11 = vld [vmem:[%s3885_s30 + $0x118] sm:$0xff]  ;;  %v4290_v12 = vld [vmem:[%s3885_s30 + $0x110] sm:$0xff] }
 0x2d4   : > { %2088 = vperm.xlu1 %3492, %v1786_v13   ;;  %2083 = vperm.xlu0 %3491, %v1785_v14   ;;  %v4293_v13 = vld [vmem:[%s3885_s30 + $0x128] sm:$0xff]  ;;  %v4296_v14 = vld [vmem:[%s3885_s30 + $0x120] sm:$0xff] }
 0x2d8   : > { %2098 = vperm.xlu1 %3492, %v1788_v15   ;;  %2093 = vperm.xlu0 %3491, %v1787_v16   ;;  %v4299_v15 = vld [vmem:[%s3885_s30 + $0x138] sm:$0xff]  ;;  %v4302_v16 = vld [vmem:[%s3885_s30 + $0x130] sm:$0xff] }
 0x2dc   : > { %2108 = vperm.xlu1 %3492, %v1790_v17   ;;  %2103 = vperm.xlu0 %3491, %v1789_v18   ;;  %v4305_v17 = vld [vmem:[%s3885_s30 + $0x148] sm:$0xff]  ;;  %v4308_v18 = vld [vmem:[%s3885_s30 + $0x140] sm:$0xff] }
 0x2e0   : > { %2118 = vperm.xlu1 %3492, %v1792_v19   ;;  %2113 = vperm.xlu0 %3491, %v1791_v20   ;;  %v4311_v19 = vld [vmem:[%s3885_s30 + $0x158] sm:$0xff]  ;;  %v4314_v20 = vld [vmem:[%s3885_s30 + $0x150] sm:$0xff] }
 0x2e4   : > { %2128 = vperm.xlu1 %3492, %v1794_v21   ;;  %2123 = vperm.xlu0 %3491, %v1793_v22   ;;  %v4317_v21 = vld [vmem:[%s3885_s30 + $0x168] sm:$0xff]  ;;  %v4320_v22 = vld [vmem:[%s3885_s30 + $0x160] sm:$0xff] }
 0x2e5   : > { %4634 = vst [vmem:[#allocation11_spill] sm:$0xff] %v4317_v21  ;;  %4635 = vst [vmem:[#allocation12_spill] sm:$0xff] %v4320_v22 }
 0x2e8   : > { %2138 = vperm.xlu1 %3492, %v1796_v23   ;;  %2133 = vperm.xlu0 %3491, %v1795_v24   ;;  %v4323_v23 = vld [vmem:[%s3885_s30 + $0x178] sm:$0xff]  ;;  %v4326_v24 = vld [vmem:[%s3885_s30 + $0x170] sm:$0xff] }
 0x2e9   : > { %4636 = vst [vmem:[#allocation13_spill] sm:$0xff] %v4323_v23  ;;  %4637 = vst [vmem:[#allocation14_spill] sm:$0xff] %v4326_v24  ;;  %v4353_v24 = vld [vmem:[%s3885_s30 + $0x1c8] sm:$0xff] }
 0x2ea   : > { %4646 = vst [vmem:[#allocation23_spill] sm:$0xff] %v4353_v24  ;;  %v4374_v24 = vld [vmem:[%s3885_s30 + $0x1e0] sm:$0xff] }
 0x2eb   : > { %4651 = vst [vmem:[#allocation28_spill] sm:$0xff] %v4374_v24 }
 0x2ec   : > { %2148 = vperm.xlu1 %3492, %v1798_v25   ;;  %2143 = vperm.xlu0 %3491, %v1797_v26   ;;  %v4329_v25 = vld [vmem:[%s3885_s30 + $0x188] sm:$0xff]  ;;  %v4332_v26 = vld [vmem:[%s3885_s30 + $0x180] sm:$0xff] }
 0x2ed   : > { %4638 = vst [vmem:[#allocation15_spill] sm:$0xff] %v4329_v25  ;;  %4639 = vst [vmem:[#allocation16_spill] sm:$0xff] %v4332_v26  ;;  %v4356_v25 = vld [vmem:[%s3885_s30 + $0x1c0] sm:$0xff] }
 0x2ee   : > { %4647 = vst [vmem:[#allocation24_spill] sm:$0xff] %v4356_v25  ;;  %v4377_v25 = vld [vmem:[%s3885_s30 + $0x1f8] sm:$0xff] }
 0x2ef   : > { %4652 = vst [vmem:[#allocation29_spill] sm:$0xff] %v4377_v25 }
 0x2f0   : > { %2158 = vperm.xlu1 %3492, %v1800_v27   ;;  %2153 = vperm.xlu0 %3491, %v1799_v28   ;;  %v4335_v27 = vld [vmem:[%s3885_s30 + $0x198] sm:$0xff]  ;;  %v4338_v28 = vld [vmem:[%s3885_s30 + $0x190] sm:$0xff] }
 0x2f1   : > { %4640 = vst [vmem:[#allocation17_spill] sm:$0xff] %v4335_v27  ;;  %4641 = vst [vmem:[#allocation18_spill] sm:$0xff] %v4338_v28 }
 0x2f4   : > { %2168 = vperm.xlu1 %3492, %v1802_v29   ;;  %2163 = vperm.xlu0 %3491, %v1801_v30   ;;  %v4341_v29 = vld [vmem:[%s3885_s30 + $0x1a8] sm:$0xff]  ;;  %v4344_v30 = vld [vmem:[%s3885_s30 + $0x1a0] sm:$0xff] }
 0x2f5   : > { %4642 = vst [vmem:[#allocation19_spill] sm:$0xff] %v4341_v29  ;;  %4643 = vst [vmem:[#allocation20_spill] sm:$0xff] %v4344_v30  ;;  %v4365_v30 = vld [vmem:[%s3885_s30 + $0x1d8] sm:$0xff] }
 0x2f6   : > { %4648 = vst [vmem:[#allocation25_spill] sm:$0xff] %v4365_v30 }
 0x2f8   : > { %2178 = vperm.xlu1 %3492, %v1804_v31   ;;  %2173 = vperm.xlu0 %3491, %v1803_v32   ;;  %v4347_v31 = vld [vmem:[%s3885_s30 + $0x1b8] sm:$0xff]  ;;  %v4350_v32 = vld [vmem:[%s3885_s30 + $0x1b0] sm:$0xff] }
 0x2f9   : > { %4644 = vst [vmem:[#allocation21_spill] sm:$0xff] %v4347_v31  ;;  %4645 = vst [vmem:[#allocation22_spill] sm:$0xff] %v4350_v32  ;;  %v4368_v31 = vld [vmem:[%s3885_s30 + $0x1d0] sm:$0xff]  ;;  %v4371_v32 = vld [vmem:[%s3885_s30 + $0x1e8] sm:$0xff] }
 0x2fa   : > { %4649 = vst [vmem:[#allocation26_spill] sm:$0xff] %v4368_v31  ;;  %4650 = vst [vmem:[#allocation27_spill] sm:$0xff] %v4371_v32  ;;  %v1812_v32 = vld [vmem:[#allocation2 + $0x168] sm:$0xff] }
 0x2fb   : > { %v4182_v39 = vpop.permute.xlu1 %1883  ;;  %v4184_v40 = vpop.permute.xlu0 %1873 }
 0x2fc   : > { %v2193_v26 = vmul.f32 %v4182_v39, %v4166_v33  ;;  %v2191_v28 = vmul.f32 %v4184_v40, %v4168_v34  ;;  %2188 = vperm.xlu1 %3492, %v4171_v35   ;;  %2183 = vperm.xlu0 %3491, %v4174_v36   ;;  %v4380_v33 = vld [vmem:[%s3885_s30 + $0x1f0] sm:$0xff] }
 0x2fd   : > { %4653 = vst [vmem:[#allocation30_spill] sm:$0xff] %v4380_v33  ;;  %v1811_v33 = vld [vmem:[#allocation2 + $0x50] sm:$0xff] }
 0x2fe   : > { %v2321_v29 = vadd.f32 %v4177_v37, %v2193_v26  ;;  %v2319_v34 = vadd.f32 %v4180_v38, %v2191_v28  ;;  %v2449_v24 = vmul.f32 %v2193_v26, %v4182_v39  ;;  %v2447_v25 = vmul.f32 %v2191_v28, %v4184_v40  ;;  %v1814_v39 = vld [vmem:[#allocation2 + $0x48] sm:$0xff]  ;;  %v1813_v40 = vld [vmem:[#allocation2 + $0x130] sm:$0xff] }
 0x2ff   : > { %v1889_v27 = vpop.permute.xlu1 %1888  ;;  %v1879_v35 = vpop.permute.xlu0 %1878 }
 0x300   : > { %v2194_v36 = vmul.f32 %v1889_v27, %v4186_v41  ;;  %v2192_v30 = vmul.f32 %v1879_v35, %v4191_v43  ;;  %2383 = vst [vmem:[%s3890_s6] sm:$0xff] %v2319_v34  ;;  %2385 = vst [vmem:[%s3890_s6 + $0x10] sm:$0xff] %v2321_v29 }
 0x302   : > { %v2322_v37 = vadd.f32 %v4189_v42, %v2194_v36  ;;  %v2450_v38 = vmul.f32 %v2194_v36, %v1889_v27  ;;  %v2320_v31 = vadd.f32 %v4194_v44, %v2192_v30  ;;  %v2448_v41 = vmul.f32 %v2192_v30, %v1879_v35 }
 0x303   : > { %v1899_v23 = vpop.permute.xlu1 %1898  ;;  %v1894_v43 = vpop.permute.xlu0 %1893 }
 0x304   : > { %v3183_v34 = vpack.c.bf16 %v2450_v38, %v2449_v24  ;;  %v3178_v22 = vpack.c.bf16 %v2448_v41, %v2447_v25  ;;  %v2196_v29 = vmul.f32 %v1899_v23, %v1812_v32  ;;  %v2195_v21 = vmul.f32 %v1894_v43, %v1811_v33  ;;  %2384 = vst [vmem:[%s3890_s6 + $0x8] sm:$0xff] %v2320_v31  ;;  %v1816_v31 = vld [vmem:[#allocation2 + $0x110] sm:$0xff]  ;;  %v1815_v33 = vld [vmem:[#allocation2 + $0x180] sm:$0xff]  ;;  %v1818_v41 = vld [vmem:[#allocation2 + $0x98] sm:$0xff] }
 0x305   : > { %2386 = vst [vmem:[%s3890_s6 + $0x18] sm:$0xff] %v2322_v37 }
 0x306   : > { %3335 = vst [vmem:[%s3894_s25 + $0x8] sm:$0xff] %v3183_v34   ;;  %3179 = vst [vmem:[%s3894_s25] sm:$0xff] %v3178_v22   ;;  %v2324_v42 = vadd.f32 %v4197_v45, %v2196_v29  ;;  %v2452_v26 = vmul.f32 %v2196_v29, %v1899_v23  ;;  %v2323_v44 = vadd.f32 %v4200_v46, %v2195_v21 }
 0x307   : > { %v2451_v27 = vmul.f32 %v2195_v21, %v1894_v43  ;;  %v1909_v28 = vpop.permute.xlu1 %1908  ;;  %v1904_v24 = vpop.permute.xlu0 %1903  ;;  %v1817_v43 = vld [vmem:[#allocation2 + $0x118] sm:$0xff] }
 0x308   : > { %v2198_v30 = vmul.f32 %v1909_v28, %v1814_v39  ;;  %v2197_v32 = vmul.f32 %v1904_v24, %v1813_v40  ;;  %2387 = vst [vmem:[%s3890_s6 + $0x20] sm:$0xff] %v2323_v44  ;;  %2388 = vst [vmem:[%s3890_s6 + $0x28] sm:$0xff] %v2324_v42 }
 0x309   : > { %v3188_v25 = vpack.c.bf16 %v2452_v26, %v2451_v27  ;;  %v1820_v27 = vld [vmem:[#allocation2 + $0x150] sm:$0xff] }
 0x30a   : > { %v2326_v22 = vadd.f32 %v4203_v47, %v2198_v30  ;;  %v2454_v45 = vmul.f32 %v2198_v30, %v1909_v28  ;;  %v2325_v23 = vadd.f32 %v4206_v48, %v2197_v32  ;;  %v2453_v46 = vmul.f32 %v2197_v32, %v1904_v24  ;;  %v1819_v28 = vld [vmem:[#allocation2 + $0x120] sm:$0xff] }
 0x30b   : > { %3336 = vst [vmem:[%s3894_s25 + $0x10] sm:$0xff] %v3188_v25   ;;  %v1919_v21 = vpop.permute.xlu1 %1918  ;;  %v1914_v35 = vpop.permute.xlu0 %1913 }
 0x30c   : > { %v3193_v36 = vpack.c.bf16 %v2454_v45, %v2453_v46  ;;  %v2200_v37 = vmul.f32 %v1919_v21, %v1816_v31  ;;  %v2199_v38 = vmul.f32 %v1914_v35, %v1815_v33  ;;  %2389 = vst [vmem:[%s3890_s6 + $0x30] sm:$0xff] %v2325_v23  ;;  %2390 = vst [vmem:[%s3890_s6 + $0x38] sm:$0xff] %v2326_v22  ;;  %v1822_v45 = vld [vmem:[#allocation2 + $0x60] sm:$0xff]  ;;  %v1821_v23 = vld [vmem:[#allocation2 + $0x108] sm:$0xff] }
 0x30e   : > { %3337 = vst [vmem:[%s3894_s25 + $0x18] sm:$0xff] %v3193_v36   ;;  %v2328_v34 = vadd.f32 %v4209_v49, %v2200_v37  ;;  %v2456_v47 = vmul.f32 %v2200_v37, %v1919_v21  ;;  %v2327_v29 = vadd.f32 %v4212_v50, %v2199_v38  ;;  %v2455_v48 = vmul.f32 %v2199_v38, %v1914_v35 }
 0x30f   : > { %v1929_v39 = vpop.permute.xlu1 %1928  ;;  %v1924_v40 = vpop.permute.xlu0 %1923 }
 0x310   : > { %v3198_v42 = vpack.c.bf16 %v2456_v47, %v2455_v48  ;;  %v2202_v26 = vmul.f32 %v1929_v39, %v1818_v41  ;;  %v2201_v44 = vmul.f32 %v1924_v40, %v1817_v43  ;;  %2391 = vst [vmem:[%s3890_s6 + $0x40] sm:$0xff] %v2327_v29  ;;  %2392 = vst [vmem:[%s3890_s6 + $0x48] sm:$0xff] %v2328_v34  ;;  %v1824_v43 = vld [vmem:[#allocation2 + $0x188] sm:$0xff]  ;;  %v1823_v34 = vld [vmem:[#allocation2 + $0xe0] sm:$0xff] }
 0x312   : > { %3338 = vst [vmem:[%s3894_s25 + $0x20] sm:$0xff] %v3198_v42   ;;  %v2330_v24 = vadd.f32 %v4215_v51, %v2202_v26  ;;  %v2458_v49 = vmul.f32 %v2202_v26, %v1929_v39  ;;  %v2329_v25 = vadd.f32 %v4218_v52, %v2201_v44  ;;  %v2457_v50 = vmul.f32 %v2201_v44, %v1924_v40  ;;  %v1826_v44 = vld [vmem:[#allocation2 + $0x140] sm:$0xff] }
 0x313   : > { %v1939_v30 = vpop.permute.xlu1 %1938  ;;  %v1934_v32 = vpop.permute.xlu0 %1933 }
 0x314   : > { %v3203_v31 = vpack.c.bf16 %v2458_v49, %v2457_v50  ;;  %v2204_v33 = vmul.f32 %v1939_v30, %v1820_v27  ;;  %v2203_v22 = vmul.f32 %v1934_v32, %v1819_v28  ;;  %2393 = vst [vmem:[%s3890_s6 + $0x50] sm:$0xff] %v2329_v25  ;;  %2394 = vst [vmem:[%s3890_s6 + $0x58] sm:$0xff] %v2330_v24  ;;  %v1825_v27 = vld [vmem:[#allocation2 + $0x138] sm:$0xff] }
 0x316   : > { %3339 = vst [vmem:[%s3894_s25 + $0x28] sm:$0xff] %v3203_v31   ;;  %v2332_v46 = vadd.f32 %v4221_v53, %v2204_v33  ;;  %v2460_v51 = vmul.f32 %v2204_v33, %v1939_v30  ;;  %v2331_v21 = vadd.f32 %v4224_v54, %v2203_v22  ;;  %v2459_v52 = vmul.f32 %v2203_v22, %v1934_v32  ;;  %v1828_v31 = vld [vmem:[#allocation2 + $0x1a8] sm:$0xff]  ;;  %v1827_v33 = vld [vmem:[#allocation2 + $0x80] sm:$0xff] }
 0x317   : > { %v1949_v35 = vpop.permute.xlu1 %1948  ;;  %v1944_v36 = vpop.permute.xlu0 %1943 }
 0x318   : > { %v3208_v37 = vpack.c.bf16 %v2460_v51, %v2459_v52  ;;  %v2206_v38 = vmul.f32 %v1949_v35, %v1822_v45  ;;  %v2205_v41 = vmul.f32 %v1944_v36, %v1821_v23  ;;  %2395 = vst [vmem:[%s3890_s6 + $0x60] sm:$0xff] %v2331_v21  ;;  %2396 = vst [vmem:[%s3890_s6 + $0x68] sm:$0xff] %v2332_v46 }
 0x31a   : > { %3340 = vst [vmem:[%s3894_s25 + $0x30] sm:$0xff] %v3208_v37   ;;  %v2334_v47 = vadd.f32 %v4227_v55, %v2206_v38  ;;  %v2462_v53 = vmul.f32 %v2206_v38, %v1949_v35  ;;  %v2333_v29 = vadd.f32 %v4230_v56, %v2205_v41  ;;  %v2461_v54 = vmul.f32 %v2205_v41, %v1944_v36  ;;  %v1830_v35 = vld [vmem:[#allocation2 + $0x28] sm:$0xff]  ;;  %v1829_v36 = vld [vmem:[#allocation2 + $0x1b8] sm:$0xff] }
 0x31b   : > { %v1959_v48 = vpop.permute.xlu1 %1958  ;;  %v1954_v39 = vpop.permute.xlu0 %1953 }
 0x31c   : > { %v3213_v40 = vpack.c.bf16 %v2462_v53, %v2461_v54  ;;  %v2208_v42 = vmul.f32 %v1959_v48, %v1824_v43  ;;  %v2207_v26 = vmul.f32 %v1954_v39, %v1823_v34  ;;  %2397 = vst [vmem:[%s3890_s6 + $0x70] sm:$0xff] %v2333_v29  ;;  %2398 = vst [vmem:[%s3890_s6 + $0x78] sm:$0xff] %v2334_v47  ;;  %v1832_v29 = vld [vmem:[#allocation2 + $0xf8] sm:$0xff]  ;;  %v1831_v54 = vld [vmem:[#allocation2 + $0x1e8] sm:$0xff] }
 0x31e   : > { %3341 = vst [vmem:[%s3894_s25 + $0x38] sm:$0xff] %v3213_v40   ;;  %v2336_v28 = vadd.f32 %v4233_v57, %v2208_v42  ;;  %v2464_v55 = vmul.f32 %v2208_v42, %v1959_v48  ;;  %v2335_v24 = vadd.f32 %v4236_v58, %v2207_v26  ;;  %v2463_v56 = vmul.f32 %v2207_v26, %v1954_v39 }
 0x31f   : > { %v1969_v49 = vpop.permute.xlu1 %1968  ;;  %v1964_v25 = vpop.permute.xlu0 %1963 }
 0x320   : > { %v3218_v50 = vpack.c.bf16 %v2464_v55, %v2463_v56  ;;  %v2210_v30 = vmul.f32 %v1969_v49, %v1826_v44  ;;  %v2209_v32 = vmul.f32 %v1964_v25, %v1825_v27  ;;  %2399 = vst [vmem:[%s3890_s6 + $0x80] sm:$0xff] %v2335_v24  ;;  %2400 = vst [vmem:[%s3890_s6 + $0x88] sm:$0xff] %v2336_v28  ;;  %v1834_v28 = vld [vmem:[#allocation2 + $0x30] sm:$0xff]  ;;  %v1833_v55 = vld [vmem:[#allocation2 + $0x160] sm:$0xff] }
 0x322   : > { %3342 = vst [vmem:[%s3894_s25 + $0x40] sm:$0xff] %v3218_v50   ;;  %v2338_v22 = vadd.f32 %v4239_v59, %v2210_v30  ;;  %v2466_v57 = vmul.f32 %v2210_v30, %v1969_v49  ;;  %v2337_v45 = vadd.f32 %v4242_v60, %v2209_v32  ;;  %v2465_v58 = vmul.f32 %v2209_v32, %v1964_v25 }
 0x323   : > { %v1979_v23 = vpop.permute.xlu1 %1978  ;;  %v1974_v46 = vpop.permute.xlu0 %1973 }
 0x324   : > { %v3223_v51 = vpack.c.bf16 %v2466_v57, %v2465_v58  ;;  %v2212_v21 = vmul.f32 %v1979_v23, %v1828_v31  ;;  %v2211_v52 = vmul.f32 %v1974_v46, %v1827_v33  ;;  %2401 = vst [vmem:[%s3890_s6 + $0x90] sm:$0xff] %v2337_v45  ;;  %2402 = vst [vmem:[%s3890_s6 + $0x98] sm:$0xff] %v2338_v22  ;;  %v1836_v31 = vld [vmem:[#allocation2] sm:$0xff] }
 0x325   : > { %v1835_v33 = vld [vmem:[#allocation2 + $0x1e0] sm:$0xff] }
 0x326   : > { %3343 = vst [vmem:[%s3894_s25 + $0x48] sm:$0xff] %v3223_v51   ;;  %v2340_v37 = vadd.f32 %v4245_v61, %v2212_v21  ;;  %v2468_v59 = vmul.f32 %v2212_v21, %v1979_v23  ;;  %v2339_v38 = vadd.f32 %v4248_v62, %v2211_v52  ;;  %v2467_v60 = vmul.f32 %v2211_v52, %v1974_v46  ;;  %v1838_v21 = vld [vmem:[#allocation2 + $0x8] sm:$0xff]  ;;  %v1837_v52 = vld [vmem:[#allocation2 + $0xf0] sm:$0xff] }
 0x327   : > { %v1989_v41 = vpop.permute.xlu1 %1988  ;;  %v1984_v43 = vpop.permute.xlu0 %1983 }
 0x328   : > { %v3228_v34 = vpack.c.bf16 %v2468_v59, %v2467_v60  ;;  %v2214_v47 = vmul.f32 %v1989_v41, %v1830_v35  ;;  %v2213_v53 = vmul.f32 %v1984_v43, %v1829_v36  ;;  %2403 = vst [vmem:[%s3890_s6 + $0xa0] sm:$0xff] %v2339_v38  ;;  %2404 = vst [vmem:[%s3890_s6 + $0xa8] sm:$0xff] %v2340_v37 }
 0x32a   : > { %3344 = vst [vmem:[%s3894_s25 + $0x50] sm:$0xff] %v3228_v34   ;;  %v2342_v48 = vadd.f32 %v4251_v63, %v2214_v47  ;;  %v2470_v61 = vmul.f32 %v2214_v47, %v1989_v41  ;;  %v2341_v39 = vadd.f32 %v4254_v0, %v2213_v53  ;;  %v2469_v62 = vmul.f32 %v2213_v53, %v1984_v43  ;;  %v1840_v43 = vld [vmem:[#allocation2 + $0x1d0] sm:$0xff]  ;;  %v1839_v34 = vld [vmem:[#allocation2 + $0x148] sm:$0xff] }
 0x32b   : > { %v1999_v40 = vpop.permute.xlu1 %1998  ;;  %v1994_v42 = vpop.permute.xlu0 %1993 }
 0x32c   : > { %v3233_v26 = vpack.c.bf16 %v2470_v61, %v2469_v62  ;;  %v2216_v44 = vmul.f32 %v1999_v40, %v1832_v29  ;;  %v2215_v27 = vmul.f32 %v1994_v42, %v1831_v54  ;;  %2405 = vst [vmem:[%s3890_s6 + $0xb0] sm:$0xff] %v2341_v39  ;;  %2406 = vst [vmem:[%s3890_s6 + $0xb8] sm:$0xff] %v2342_v48  ;;  %v1842_v62 = vld [vmem:[#allocation2 + $0xc8] sm:$0xff] }
 0x32e   : > { %3345 = vst [vmem:[%s3894_s25 + $0x58] sm:$0xff] %v3233_v26   ;;  %v2344_v24 = vadd.f32 %v4257_v1, %v2216_v44  ;;  %v2472_v63 = vmul.f32 %v2216_v44, %v1999_v40  ;;  %v2343_v56 = vadd.f32 %v4260_v2, %v2215_v27  ;;  %v2471_v0 = vmul.f32 %v2215_v27, %v1994_v42  ;;  %v1841_v40 = vld [vmem:[#allocation2 + $0x100] sm:$0xff] }
 0x32f   : > { %v2009_v49 = vpop.permute.xlu1 %2008  ;;  %v2004_v25 = vpop.permute.xlu0 %2003 }
 0x330   : > { %v3238_v50 = vpack.c.bf16 %v2472_v63, %v2471_v0  ;;  %v2218_v30 = vmul.f32 %v2009_v49, %v1834_v28  ;;  %v2217_v32 = vmul.f32 %v2004_v25, %v1833_v55  ;;  %2407 = vst [vmem:[%s3890_s6 + $0xc0] sm:$0xff] %v2343_v56  ;;  %2408 = vst [vmem:[%s3890_s6 + $0xc8] sm:$0xff] %v2344_v24  ;;  %v1844_v63 = vld [vmem:[#allocation2 + $0x1f8] sm:$0xff]  ;;  %v1843_v56 = vld [vmem:[#allocation2 + $0x40] sm:$0xff] }
 0x332   : > { %3346 = vst [vmem:[%s3894_s25 + $0x60] sm:$0xff] %v3238_v50   ;;  %v2346_v22 = vadd.f32 %v4263_v3, %v2218_v30  ;;  %v2474_v1 = vmul.f32 %v2218_v30, %v2009_v49  ;;  %v2345_v57 = vadd.f32 %v4266_v4, %v2217_v32  ;;  %v2473_v2 = vmul.f32 %v2217_v32, %v2004_v25 }
 0x333   : > { %v2019_v45 = vpop.permute.xlu1 %2018  ;;  %v2014_v58 = vpop.permute.xlu0 %2013 }
 0x334   : > { %v3243_v23 = vpack.c.bf16 %v2474_v1, %v2473_v2  ;;  %v2220_v46 = vmul.f32 %v2019_v45, %v1836_v31  ;;  %v2219_v51 = vmul.f32 %v2014_v58, %v1835_v33  ;;  %2409 = vst [vmem:[%s3890_s6 + $0xd0] sm:$0xff] %v2345_v57  ;;  %2410 = vst [vmem:[%s3890_s6 + $0xd8] sm:$0xff] %v2346_v22  ;;  %v1846_v33 = vld [vmem:[#allocation2 + $0x128] sm:$0xff]  ;;  %v1845_v22 = vld [vmem:[#allocation2 + $0x20] sm:$0xff] }
 0x336   : > { %3347 = vst [vmem:[%s3894_s25 + $0x68] sm:$0xff] %v3243_v23   ;;  %v2348_v35 = vadd.f32 %v4269_v5, %v2220_v46  ;;  %v2476_v3 = vmul.f32 %v2220_v46, %v2019_v45  ;;  %v2347_v36 = vadd.f32 %v4272_v6, %v2219_v51  ;;  %v2475_v4 = vmul.f32 %v2219_v51, %v2014_v58  ;;  %v1848_v51 = vld [vmem:[#allocation2 + $0x1f0] sm:$0xff] }
 0x337   : > { %v2029_v37 = vpop.permute.xlu1 %2028  ;;  %v2024_v59 = vpop.permute.xlu0 %2023 }
 0x338   : > { %v3248_v38 = vpack.c.bf16 %v2476_v3, %v2475_v4  ;;  %v2222_v60 = vmul.f32 %v2029_v37, %v1838_v21  ;;  %v2221_v41 = vmul.f32 %v2024_v59, %v1837_v52  ;;  %2411 = vst [vmem:[%s3890_s6 + $0xe0] sm:$0xff] %v2347_v36  ;;  %2412 = vst [vmem:[%s3890_s6 + $0xe8] sm:$0xff] %v2348_v35  ;;  %v1847_v21 = vld [vmem:[#allocation2 + $0x1a0] sm:$0xff] }
 0x33a   : > { %3348 = vst [vmem:[%s3894_s25 + $0x70] sm:$0xff] %v3248_v38   ;;  %v2350_v47 = vadd.f32 %v4275_v7, %v2222_v60  ;;  %v2478_v5 = vmul.f32 %v2222_v60, %v2029_v37  ;;  %v2349_v53 = vadd.f32 %v4278_v8, %v2221_v41  ;;  %v2477_v6 = vmul.f32 %v2221_v41, %v2024_v59  ;;  %v1850_v38 = vld [vmem:[#allocation2 + $0x78] sm:$0xff]  ;;  %v1849_v60 = vld [vmem:[#allocation2 + $0xe8] sm:$0xff] }
 0x33b   : > { %v2039_v29 = vpop.permute.xlu1 %2038  ;;  %v2034_v54 = vpop.permute.xlu0 %2033 }
 0x33c   : > { %v3253_v48 = vpack.c.bf16 %v2478_v5, %v2477_v6  ;;  %v2224_v61 = vmul.f32 %v2039_v29, %v1840_v43  ;;  %v2223_v39 = vmul.f32 %v2034_v54, %v1839_v34  ;;  %2413 = vst [vmem:[%s3890_s6 + $0xf0] sm:$0xff] %v2349_v53  ;;  %2414 = vst [vmem:[%s3890_s6 + $0xf8] sm:$0xff] %v2350_v47 }
 0x33e   : > { %3349 = vst [vmem:[%s3894_s25 + $0x78] sm:$0xff] %v3253_v48   ;;  %v2352_v42 = vadd.f32 %v4281_v9, %v2224_v61  ;;  %v2480_v7 = vmul.f32 %v2224_v61, %v2039_v29  ;;  %v2351_v26 = vadd.f32 %v4284_v10, %v2223_v39  ;;  %v2479_v8 = vmul.f32 %v2223_v39, %v2034_v54  ;;  %v1852_v29 = vld [vmem:[#allocation2 + $0x90] sm:$0xff] }
 0x33f   : > { %v2049_v44 = vpop.permute.xlu1 %2048  ;;  %v2044_v27 = vpop.permute.xlu0 %2043  ;;  %v1851_v54 = vld [vmem:[#allocation2 + $0x70] sm:$0xff] }
 0x340   : > { %v3258_v28 = vpack.c.bf16 %v2480_v7, %v2479_v8  ;;  %v2226_v55 = vmul.f32 %v2049_v44, %v1842_v62  ;;  %v2225_v24 = vmul.f32 %v2044_v27, %v1841_v40  ;;  %2415 = vst [vmem:[%s3890_s6 + $0x100] sm:$0xff] %v2351_v26  ;;  %2416 = vst [vmem:[%s3890_s6 + $0x108] sm:$0xff] %v2352_v42  ;;  %v1854_v26 = vld [vmem:[#allocation2 + $0xd0] sm:$0xff]  ;;  %v1853_v8 = vld [vmem:[#allocation2 + $0x1d8] sm:$0xff] }
 0x342   : > { %3350 = vst [vmem:[%s3894_s25 + $0x80] sm:$0xff] %v3258_v28   ;;  %v2354_v0 = vadd.f32 %v4287_v11, %v2226_v55  ;;  %v2482_v9 = vmul.f32 %v2226_v55, %v2049_v44  ;;  %v2353_v49 = vadd.f32 %v4290_v12, %v2225_v24  ;;  %v2481_v10 = vmul.f32 %v2225_v24, %v2044_v27  ;;  %v4654_v44 = vld [vmem:[#allocation11_spill] sm:$0xff]  ;;  %v4655_v28 = vld [vmem:[#allocation12_spill] sm:$0xff] }
 0x343   : > { %v2059_v25 = vpop.permute.xlu1 %2058  ;;  %v2054_v50 = vpop.permute.xlu0 %2053 }
 0x344   : > { %v3263_v30 = vpack.c.bf16 %v2482_v9, %v2481_v10  ;;  %v2228_v32 = vmul.f32 %v2059_v25, %v1844_v63  ;;  %v2227_v31 = vmul.f32 %v2054_v50, %v1843_v56  ;;  %2417 = vst [vmem:[%s3890_s6 + $0x110] sm:$0xff] %v2353_v49  ;;  %2418 = vst [vmem:[%s3890_s6 + $0x118] sm:$0xff] %v2354_v0  ;;  %v1856_v49 = vld [vmem:[#allocation2 + $0x88] sm:$0xff]  ;;  %v1855_v10 = vld [vmem:[#allocation2 + $0xb8] sm:$0xff] }
 0x346   : > { %3351 = vst [vmem:[%s3894_s25 + $0x88] sm:$0xff] %v3263_v30   ;;  %v2356_v1 = vadd.f32 %v4293_v13, %v2228_v32  ;;  %v2484_v11 = vmul.f32 %v2228_v32, %v2059_v25  ;;  %v2355_v57 = vadd.f32 %v4296_v14, %v2227_v31  ;;  %v2483_v12 = vmul.f32 %v2227_v31, %v2054_v50  ;;  %v4656_v25 = vld [vmem:[#allocation13_spill] sm:$0xff]  ;;  %v4657_v32 = vld [vmem:[#allocation14_spill] sm:$0xff] }
 0x347   : > { %v2069_v2 = vpop.permute.xlu1 %2068  ;;  %v2064_v45 = vpop.permute.xlu0 %2063 }
 0x348   : > { %v3268_v58 = vpack.c.bf16 %v2484_v11, %v2483_v12  ;;  %v2230_v23 = vmul.f32 %v2069_v2, %v1846_v33  ;;  %v2229_v46 = vmul.f32 %v2064_v45, %v1845_v22  ;;  %2419 = vst [vmem:[%s3890_s6 + $0x120] sm:$0xff] %v2355_v57  ;;  %2420 = vst [vmem:[%s3890_s6 + $0x128] sm:$0xff] %v2356_v1 }
 0x34a   : > { %3352 = vst [vmem:[%s3894_s25 + $0x90] sm:$0xff] %v3268_v58   ;;  %v2358_v52 = vadd.f32 %v4299_v15, %v2230_v23  ;;  %v2486_v13 = vmul.f32 %v2230_v23, %v2069_v2  ;;  %v2357_v35 = vadd.f32 %v4302_v16, %v2229_v46  ;;  %v2485_v14 = vmul.f32 %v2229_v46, %v2064_v45  ;;  %v1858_v2 = vld [vmem:[#allocation2 + $0x1c8] sm:$0xff]  ;;  %v4658_v58 = vld [vmem:[#allocation15_spill] sm:$0xff] }
 0x34b   : > { %v2079_v3 = vpop.permute.xlu1 %2078  ;;  %v2074_v36 = vpop.permute.xlu0 %2073  ;;  %v1857_v45 = vld [vmem:[#allocation2 + $0xa8] sm:$0xff] }
 0x34c   : > { %v3273_v4 = vpack.c.bf16 %v2486_v13, %v2485_v14  ;;  %v2232_v37 = vmul.f32 %v2079_v3, %v1848_v51  ;;  %v2231_v59 = vmul.f32 %v2074_v36, %v1847_v21  ;;  %2421 = vst [vmem:[%s3890_s6 + $0x130] sm:$0xff] %v2357_v35  ;;  %2422 = vst [vmem:[%s3890_s6 + $0x138] sm:$0xff] %v2358_v52  ;;  %v4659_v51 = vld [vmem:[#allocation16_spill] sm:$0xff] }
 0x34e   : > { %3353 = vst [vmem:[%s3894_s25 + $0x98] sm:$0xff] %v3273_v4   ;;  %v2360_v41 = vadd.f32 %v4305_v17, %v2232_v37  ;;  %v2488_v15 = vmul.f32 %v2232_v37, %v2079_v3  ;;  %v2359_v43 = vadd.f32 %v4308_v18, %v2231_v59  ;;  %v2487_v16 = vmul.f32 %v2231_v59, %v2074_v36  ;;  %v1860_v4 = vld [vmem:[#allocation2 + $0x178] sm:$0xff]  ;;  %v1859_v37 = vld [vmem:[#allocation2 + $0x170] sm:$0xff] }
 0x34f   : > { %v2089_v34 = vpop.permute.xlu1 %2088  ;;  %v2084_v47 = vpop.permute.xlu0 %2083  ;;  %v4660_v59 = vld [vmem:[#allocation17_spill] sm:$0xff] }
 0x350   : > { %v3278_v5 = vpack.c.bf16 %v2488_v15, %v2487_v16  ;;  %v2234_v53 = vmul.f32 %v2089_v34, %v1850_v38  ;;  %v2233_v6 = vmul.f32 %v2084_v47, %v1849_v60  ;;  %2423 = vst [vmem:[%s3890_s6 + $0x140] sm:$0xff] %v2359_v43  ;;  %2424 = vst [vmem:[%s3890_s6 + $0x148] sm:$0xff] %v2360_v41  ;;  %v4661_v41 = vld [vmem:[#allocation18_spill] sm:$0xff] }
 0x352   : > { %3354 = vst [vmem:[%s3894_s25 + $0xa0] sm:$0xff] %v3278_v5   ;;  %v2362_v48 = vadd.f32 %v4311_v19, %v2234_v53  ;;  %v2490_v17 = vmul.f32 %v2234_v53, %v2089_v34  ;;  %v2361_v61 = vadd.f32 %v4314_v20, %v2233_v6  ;;  %v2489_v18 = vmul.f32 %v2233_v6, %v2084_v47  ;;  %v1862_v6 = vld [vmem:[#allocation2 + $0x190] sm:$0xff] }
 0x353   : > { %v2099_v39 = vpop.permute.xlu1 %2098  ;;  %v2094_v62 = vpop.permute.xlu0 %2093 }
 0x354   : > { %v3283_v40 = vpack.c.bf16 %v2490_v17, %v2489_v18  ;;  %v2236_v42 = vmul.f32 %v2099_v39, %v1852_v29  ;;  %v2235_v7 = vmul.f32 %v2094_v62, %v1851_v54  ;;  %2425 = vst [vmem:[%s3890_s6 + $0x150] sm:$0xff] %v2361_v61  ;;  %2426 = vst [vmem:[%s3890_s6 + $0x158] sm:$0xff] %v2362_v48  ;;  %v1861_v29 = vld [vmem:[#allocation2 + $0x68] sm:$0xff]  ;;  %v4662_v54 = vld [vmem:[#allocation19_spill] sm:$0xff] }
 0x355   : > { %v4663_v61 = vld [vmem:[#allocation20_spill] sm:$0xff] }
 0x356   : > { %3355 = vst [vmem:[%s3894_s25 + $0xa8] sm:$0xff] %v3283_v40   ;;  %v2364_v27 = vadd.f32 %v4654_v44, %v2236_v42  ;;  %v2492_v19 = vmul.f32 %v2236_v42, %v2099_v39  ;;  %v2363_v55 = vadd.f32 %v4655_v28, %v2235_v7  ;;  %v2491_v20 = vmul.f32 %v2235_v7, %v2094_v62  ;;  %v1863_v44 = vld [vmem:[#allocation2 + $0x198] sm:$0xff] }
 0x357   : > { %v2109_v24 = vpop.permute.xlu1 %2108  ;;  %v2104_v63 = vpop.permute.xlu0 %2103 }
 0x358   : > { %v3288_v56 = vpack.c.bf16 %v2492_v19, %v2491_v20  ;;  %v2238_v0 = vmul.f32 %v2109_v24, %v1854_v26  ;;  %v2237_v9 = vmul.f32 %v2104_v63, %v1853_v8  ;;  %2427 = vst [vmem:[%s3890_s6 + $0x160] sm:$0xff] %v2363_v55  ;;  %2428 = vst [vmem:[%s3890_s6 + $0x168] sm:$0xff] %v2364_v27  ;;  %v1864_v8 = vld [vmem:[#allocation2 + $0x38] sm:$0xff]  ;;  %v4664_v27 = vld [vmem:[#allocation21_spill] sm:$0xff] }
 0x359   : > { %v4665_v55 = vld [vmem:[#allocation22_spill] sm:$0xff] }
 0x35a   : > { %3356 = vst [vmem:[%s3894_s25 + $0xb0] sm:$0xff] %v3288_v56   ;;  %v2366_v50 = vadd.f32 %v4656_v25, %v2238_v0  ;;  %v2494_v30 = vmul.f32 %v2238_v0, %v2109_v24  ;;  %v2365_v31 = vadd.f32 %v4657_v32, %v2237_v9  ;;  %v2493_v33 = vmul.f32 %v2237_v9, %v2104_v63  ;;  %v1865_v25 = vld [vmem:[#allocation2 + $0xc0] sm:$0xff] }
 0x35b   : > { %v2119_v22 = vpop.permute.xlu1 %2118  ;;  %v2114_v1 = vpop.permute.xlu0 %2113 }
 0x35c   : > { %v3293_v11 = vpack.c.bf16 %v2494_v30, %v2493_v33  ;;  %v2240_v57 = vmul.f32 %v2119_v22, %v1856_v49  ;;  %v2239_v12 = vmul.f32 %v2114_v1, %v1855_v10  ;;  %2429 = vst [vmem:[%s3890_s6 + $0x170] sm:$0xff] %v2365_v31  ;;  %2430 = vst [vmem:[%s3890_s6 + $0x178] sm:$0xff] %v2366_v50  ;;  %v1866_v10 = vld [vmem:[#allocation2 + $0x1c0] sm:$0xff]  ;;  %v4667_v31 = vld [vmem:[#allocation24_spill] sm:$0xff] }
 0x35d   : > { %v4666_v50 = vld [vmem:[#allocation23_spill] sm:$0xff] }
 0x35e   : > { %3357 = vst [vmem:[%s3894_s25 + $0xb8] sm:$0xff] %v3293_v11   ;;  %v2368_v23 = vadd.f32 %v4658_v58, %v2240_v57  ;;  %v2496_v46 = vmul.f32 %v2240_v57, %v2119_v22  ;;  %v2367_v21 = vadd.f32 %v4659_v51, %v2239_v12  ;;  %v2495_v52 = vmul.f32 %v2239_v12, %v2114_v1  ;;  %v1867_v58 = vld [vmem:[#allocation2 + $0x158] sm:$0xff] }
 0x35f   : > { %v2129_v13 = vpop.permute.xlu1 %2128  ;;  %v2124_v35 = vpop.permute.xlu0 %2123 }
 0x360   : > { %v3298_v14 = vpack.c.bf16 %v2496_v46, %v2495_v52  ;;  %v2242_v3 = vmul.f32 %v2129_v13, %v1858_v2  ;;  %v2241_v36 = vmul.f32 %v2124_v35, %v1857_v45  ;;  %2431 = vst [vmem:[%s3890_s6 + $0x180] sm:$0xff] %v2367_v21  ;;  %2432 = vst [vmem:[%s3890_s6 + $0x188] sm:$0xff] %v2368_v23  ;;  %v1868_v45 = vld [vmem:[#allocation2 + $0x10] sm:$0xff]  ;;  %v4669_v21 = vld [vmem:[#allocation26_spill] sm:$0xff] }
 0x361   : > { %v4668_v23 = vld [vmem:[#allocation25_spill] sm:$0xff] }
 0x362   : > { %3358 = vst [vmem:[%s3894_s25 + $0xc0] sm:$0xff] %v3298_v14   ;;  %v2370_v38 = vadd.f32 %v4660_v59, %v2242_v3  ;;  %v2498_v60 = vmul.f32 %v2242_v3, %v2129_v13  ;;  %v2369_v15 = vadd.f32 %v4661_v41, %v2241_v36  ;;  %v2497_v43 = vmul.f32 %v2241_v36, %v2124_v35  ;;  %v1869_v59 = vld [vmem:[#allocation2 + $0x58] sm:$0xff] }
 0x363   : > { %v2139_v16 = vpop.permute.xlu1 %2138  ;;  %v2134_v34 = vpop.permute.xlu0 %2133 }
 0x364   : > { %v3303_v47 = vpack.c.bf16 %v2498_v60, %v2497_v43  ;;  %v2244_v5 = vmul.f32 %v2139_v16, %v1860_v4  ;;  %v2243_v53 = vmul.f32 %v2134_v34, %v1859_v37  ;;  %2433 = vst [vmem:[%s3890_s6 + $0x190] sm:$0xff] %v2369_v15  ;;  %2434 = vst [vmem:[%s3890_s6 + $0x198] sm:$0xff] %v2370_v38  ;;  %v1870_v37 = vld [vmem:[#allocation2 + $0xa0] sm:$0xff]  ;;  %v4671_v15 = vld [vmem:[#allocation28_spill] sm:$0xff] }
 0x365   : > { %v4670_v38 = vld [vmem:[#allocation27_spill] sm:$0xff] }
 0x366   : > { %3359 = vst [vmem:[%s3894_s25 + $0xc8] sm:$0xff] %v3303_v47   ;;  %v2372_v48 = vadd.f32 %v4662_v54, %v2244_v5  ;;  %v2500_v17 = vmul.f32 %v2244_v5, %v2139_v16  ;;  %v2371_v18 = vadd.f32 %v4663_v61, %v2243_v53  ;;  %v2499_v39 = vmul.f32 %v2243_v53, %v2134_v34 }
 0x367   : > { %v2149_v62 = vpop.permute.xlu1 %2148  ;;  %v2144_v40 = vpop.permute.xlu0 %2143 }
 0x368   : > { %v3308_v42 = vpack.c.bf16 %v2500_v17, %v2499_v39  ;;  %v2246_v7 = vmul.f32 %v2149_v62, %v1862_v6  ;;  %v2245_v26 = vmul.f32 %v2144_v40, %v1861_v29  ;;  %2435 = vst [vmem:[%s3890_s6 + $0x1a0] sm:$0xff] %v2371_v18  ;;  %2436 = vst [vmem:[%s3890_s6 + $0x1a8] sm:$0xff] %v2372_v48  ;;  %v4672_v29 = vld [vmem:[#allocation29_spill] sm:$0xff]  ;;  %v4673_v17 = vld [vmem:[#allocation30_spill] sm:$0xff] }
 0x36a   : > { %3360 = vst [vmem:[%s3894_s25 + $0xd0] sm:$0xff] %v3308_v42   ;;  %v2374_v19 = vadd.f32 %v4664_v27, %v2246_v7  ;;  %v2502_v28 = vmul.f32 %v2246_v7, %v2149_v62  ;;  %v2373_v20 = vadd.f32 %v4665_v55, %v2245_v26  ;;  %v2501_v24 = vmul.f32 %v2245_v26, %v2144_v40 }
 0x36b   : > { %v2159_v63 = vpop.permute.xlu1 %2158  ;;  %v2154_v56 = vpop.permute.xlu0 %2153 }
 0x36c   : > { %v3313_v0 = vpack.c.bf16 %v2502_v28, %v2501_v24  ;;  %v2248_v9 = vmul.f32 %v2159_v63, %v1864_v8  ;;  %v2247_v49 = vmul.f32 %v2154_v56, %v1863_v44  ;;  %2437 = vst [vmem:[%s3890_s6 + $0x1b0] sm:$0xff] %v2373_v20  ;;  %2438 = vst [vmem:[%s3890_s6 + $0x1b8] sm:$0xff] %v2374_v19 }
 0x36e   : > { %3361 = vst [vmem:[%s3894_s25 + $0xd8] sm:$0xff] %v3313_v0   ;;  %v2376_v30 = vadd.f32 %v4666_v50, %v2248_v9  ;;  %v2504_v32 = vmul.f32 %v2248_v9, %v2159_v63  ;;  %v2375_v33 = vadd.f32 %v4667_v31, %v2247_v49  ;;  %v2503_v22 = vmul.f32 %v2247_v49, %v2154_v56 }
 0x36f   : > { %v2169_v1 = vpop.permute.xlu1 %2168  ;;  %v2164_v11 = vpop.permute.xlu0 %2163 }
 0x370   : > { %v3318_v57 = vpack.c.bf16 %v2504_v32, %v2503_v22  ;;  %v2250_v12 = vmul.f32 %v2169_v1, %v1866_v10  ;;  %v2249_v2 = vmul.f32 %v2164_v11, %v1865_v25  ;;  %2439 = vst [vmem:[%s3890_s6 + $0x1c0] sm:$0xff] %v2375_v33  ;;  %2440 = vst [vmem:[%s3890_s6 + $0x1c8] sm:$0xff] %v2376_v30 }
 0x372   : > { %3362 = vst [vmem:[%s3894_s25 + $0xe0] sm:$0xff] %v3318_v57   ;;  %v2378_v46 = vadd.f32 %v4668_v23, %v2250_v12  ;;  %v2506_v51 = vmul.f32 %v2250_v12, %v2169_v1  ;;  %v2377_v52 = vadd.f32 %v4669_v21, %v2249_v2  ;;  %v2505_v13 = vmul.f32 %v2249_v2, %v2164_v11 }
 0x373   : > { %v2179_v35 = vpop.permute.xlu1 %2178  ;;  %v2174_v14 = vpop.permute.xlu0 %2173 }
 0x374   : > { %v3323_v3 = vpack.c.bf16 %v2506_v51, %v2505_v13  ;;  %v2252_v36 = vmul.f32 %v2179_v35, %v1868_v45  ;;  %v2251_v4 = vmul.f32 %v2174_v14, %v1867_v58  ;;  %2441 = vst [vmem:[%s3890_s6 + $0x1d0] sm:$0xff] %v2377_v52  ;;  %2442 = vst [vmem:[%s3890_s6 + $0x1d8] sm:$0xff] %v2378_v46 }
 0x376   : > { %3363 = vst [vmem:[%s3894_s25 + $0xe8] sm:$0xff] %v3323_v3   ;;  %v2380_v60 = vadd.f32 %v4670_v38, %v2252_v36  ;;  %v2508_v41 = vmul.f32 %v2252_v36, %v2179_v35  ;;  %v2379_v43 = vadd.f32 %v4671_v15, %v2251_v4  ;;  %v2507_v16 = vmul.f32 %v2251_v4, %v2174_v14 }
 0x377   : > { %v2189_v34 = vpop.permute.xlu1 %2188  ;;  %v2184_v47 = vpop.permute.xlu0 %2183 }
 0x378   : > { %v3328_v5 = vpack.c.bf16 %v2508_v41, %v2507_v16  ;;  %v2254_v53 = vmul.f32 %v2189_v34, %v1870_v37  ;;  %2443 = vst [vmem:[%s3890_s6 + $0x1e0] sm:$0xff] %v2379_v43  ;;  %2444 = vst [vmem:[%s3890_s6 + $0x1e8] sm:$0xff] %v2380_v60  ;;  %v2253_v6 = vmul.f32 %v2184_v47, %v1869_v59 }
 0x37a   : > { %3364 = vst [vmem:[%s3894_s25 + $0xf0] sm:$0xff] %v3328_v5   ;;  %v2382_v54 = vadd.f32 %v4672_v29, %v2254_v53  ;;  %v2510_v48 = vmul.f32 %v2254_v53, %v2189_v34  ;;  %v2381_v61 = vadd.f32 %v4673_v17, %v2253_v6  ;;  %v2509_v18 = vmul.f32 %v2253_v6, %v2184_v47 }
 0x37c   : > { %2446 = vst [vmem:[%s3890_s6 + $0x1f8] sm:$0xff] %v2382_v54  ;;  %2445 = vst [vmem:[%s3890_s6 + $0x1f0] sm:$0xff] %v2381_v61  ;;  %v3333_v39 = vpack.c.bf16 %v2510_v48, %v2509_v18 }
 0x37e   : > { %3365 = vst [vmem:[%s3894_s25 + $0xf8] sm:$0xff] %v3333_v39  }
 0x37f PF: > { %s3174_s23 = sshll.u32 %s3589_s24, 12  ;;  %s2850_s10 = sshll.u32 %s3894_s25, 4  ;;  %s4553_s10 = int_to_ptr.vmem [resolvable:$true] %s2850_s10 }
 0x380   : > { %s4550_s13 = scalar_lea.hbm %s4618_s4, %s3174_s23  ;;  %s4674_s7 = sand.u32 1, %s3569_s19  }
 0x381   : > { %s4557_s9 = scalar_lea.sflag [#allocation5], %s4674_s7  ;;  %s3493_s21 = scalar_lea.vmem %s4553_s10, 4096 }
 0x382   : > { %p3494_p6 = scmp.ne.s32.totalorder %s4553_s10, %s3493_s21  ;;  %s3606_s24 = smov [#allocation4]  }
 0x383   : > { %s3497_s6 = sshll.u32 %s3606_s24, 4  ;;  %s3498_s6 = int_to_ptr.vmem [resolvable:$false] %s3497_s6 }
 0x384   : > { %p3495_p8 = pnand %p3494_p6, %p3711_p7  ;;  %s3499_s0 = scalar_lea.vmem %s3498_s6, 8192 }
 0x385   : > { %p3500_p10 = scmp.lt.s32.totalorder %s4553_s10, %s3498_s6  ;;  %p3501_p11 = scmp.lt.s32.totalorder %s3499_s0, %s3493_s21 }
 0x386   : > { %p3496_p9 = pneg %p3495_p8 }
 0x387   : > { %p3502_p13 = por %p3501_p11, %p3500_p10 }
 0x389   : > { %p3503_p0 = pnand %p3502_p13, %p3496_p9 }
 0x38b   : > { %3506 = shalt.err (!%p3503_p0)
}
 0x38c   : > { %s3507_s25 = scalar_lea.hbm %s4550_s13, 4096  ;;  %s3511_s29 = scalar_lea.hbm %s4618_s4, 12288 }
 0x38d   : > { %p3508_p1 = scmp.ne.s32.totalorder %s4550_s13, %s3507_s25  ;;  %p3512_p4 = scmp.lt.s32.totalorder %s4550_s13, %s4618_s4 }
 0x38e   : > { %p3513_p5 = scmp.lt.s32.totalorder %s3511_s29, %s3507_s25 }
 0x38f   : > { %p3509_p2 = pnand %p3508_p1, %p3711_p7 }
 0x390   : > { %p3514_p6 = por %p3513_p5, %p3512_p4 }
 0x391   : > { %p3510_p3 = pneg %p3509_p2 }
 0x393   : > { %p3515_p8 = pnand %p3514_p6, %p3510_p3 }
 0x395   : > { %3518 = shalt.err (!%p3515_p8)
}
 0x396   : > { %s3607_s23 = smov 64   ;;  %s3608_s30 = smov 4  }
 0x397   : > { %3367 = dma.vmem_to_hbm [thread:$0]  (%p3711_p7), %s4553_s10, 4096, %s4550_s13, %s4557_s9, %s3607_s23, %s3607_s23, %s3608_s30  }
 0x398 PF: > { %p3373_p9 = scmp.ge.s32.totalorder %s3601_s27, 2  ;;  %s2869_s17 = sand.u32 1, %s3565_s18  }
 0x399   : > { %s2870_s7 = scalar_lea.sflag [#allocation5], %s2869_s17 }
 0x39a   : > { %p3370_p10 = pnand %p3373_p9, %p3719_p12 }
 0x39c   : > { %p3371_p11 = pneg %p3370_p10 }
 0x39e   : > { %3560 = dma.done.wait (%p3371_p11), %s2870_s7, 4096  }
 0x39f   : > { %3562 = vsyncadd (%p3371_p11), %s2870_s7, 4294963200  ;;  %s19_s27 = sadd.s32 1, %s3601_s27   ;;  %s4675_s23 = sld [smem:[#allocation7_spill]] }
 0x3a0   : > { %p16_p13 = scmp.ge.s32.totalorder %s19_s27, 11   ;;  %s4676_s24 = sld [smem:[#allocation8_spill]] }
 0x3a1   : > { %s4677_s25 = sld [smem:[#allocation9_spill]]  ;;  %s4679_s18 = smov %s3569_s19 }
 0x3a2   : > { %s4678_s26 = sld [smem:[#allocation10_spill]]  ;;  %s4680_s19 = smov %s3573_s20 }
 0x3a3   : > { %s4681_s20 = smov %s3724_s15  ;;  %s4682_s21 = smov %s3581_s22 }
 0x3a4   : > { %s4683_s22 = smov %s3727_s16  ;;  %18 = sbr.rel (!%p16_p13) target bundleno = 8 (0x8), region = 126 }
 0x3a9   :  { %2883 = vsyncpa [#allocation5], 1 }
 0x3aa   :  { %2885 = vsyncpa [#allocation5 + $0x1], 1 }

// kernel: lightgcn_propagate.3
= control target key start
LH: loop header
LB: loop body
LE: loop exit
PB: predicated region body
PF: predicated region fallthrough
CT: control target
= control target key end

     0   :  { %s3529_s18 = smov 0   ;;  %s3531_s19 = smov 0   ;;  %s4418_s0 = inlined_call_operand.vmem [shape: s8[1536,1536], index: 0, kind: input, shape index: {}]   ;;  %s4419_s1 = inlined_call_operand.vmem [shape: f32[1536,1], index: 1, kind: input, shape index: {}]   ;;  %s4420_s2 = inlined_call_operand.vmem [shape: bf16[1536,128], index: 2, kind: input, shape index: {}]   ;;  %s4421_s3 = inlined_call_operand.vmem [shape: f32[1536,128], index: 3, kind: input, shape index: {}, may-alias: {3,5}]   ;;  %s4422_s4 = inlined_call_operand.vmem [shape: bf16[1536,128], index: 4, kind: output, shape index: {0}]   ;;  %s4423_s5 = inlined_call_operand.vmem [shape: f32[1536,128], index: 5, kind: output, shape index: {1}, may-alias: {3,5}]  }
   0x1   :  { %s3533_s20 = smov 0   ;;  %s3535_s21 = smov 0  }
   0x2   :  { %s3537_s22 = smov 0   ;;  %s3539_s23 = smov 0  }
   0x3   :  { %s3541_s24 = smov 0  }
   0x4 LB: > { %s25_s25 = sadd.s32 1, %s3486_s22  ;;  %s28_s26 = sadd.s32 1, %s3490_s23  ;;  %s3494_s24 = sphi %s3541_s24, %s16_s24   ;;  %s3490_s23 = sphi %s3539_s23, %s4469_s23   ;;  %s3486_s22 = sphi %s3537_s22, %s4468_s22   ;;  %s3482_s21 = sphi %s3535_s21, %s4467_s21   ;;  %s3478_s20 = sphi %s3533_s20, %s4466_s20   ;;  %s3474_s19 = sphi %s3531_s19, %s4465_s19   ;;  %s3470_s18 = sphi %s3529_s18, %s4464_s18  }
   0x5   : > { %p26_p0 = scmp.ge.s32.totalorder %s25_s25, 3  ;;  %p44_p1 = scmp.ne.s32.totalorder %s3474_s19, %s3470_s18 }
   0x6   : > { %p45_p2 = scmp.eq.s32.totalorder %s3494_s24, 0  ;;  %s37_s30 = sadd.s32 1, %s3474_s19 }
   0x7   : > { %s4471_s25 = smov (%p26_p0, %s25_s25), 0  ;;  %s4473_s26 = smov (!%p26_p0, %s28_s26), %s3490_s23 }
   0x8   : > { %p46_p3 = por %p45_p2, %p44_p1  ;;  %p30_p4 = scmp.ge.s32.totalorder %s4473_s26, 3 }
   0x9   : > { %s33_s27 = ssub.s32 %s3486_s22, %s4471_s25  ;;  %p2973_p6 = scmp.ge.s32.totalorder %s3494_s24, 9 }
   0xa   : > { %s4475_s26 = smov (%p30_p4, %s4473_s26), 0 }
   0xb   : > { %s32_s28 = ssub.s32 %s3490_s23, %s4475_s26  ;;  %198 = sbr.rel (%p2973_p6) target bundleno = 56 (0x38), region = 20 }
   0xc   : > { %s34_s29 = sor.u32 %s33_s27, %s32_s28 }
   0xd   : > { %p35_p5 = scmp.eq.s32.totalorder %s34_s29, 0 }
   0xf   : > { %s3580_s6 = scalar_select %p35_p5, %s3474_s19, %s37_s30  }
  0x10   : > { %201 = sbr.rel (!%p46_p3) target bundleno = 56 (0x38), region = 24  ;;  %s203_s7 = sand.u32 (%p46_p3), 1, %s3474_s19  }
  0x11   : > { %s2976_s8 = sshll.u32 (%p46_p3), %s3486_s22, 2  ;;  %s2974_s9 = sshll.u32 (%p46_p3), %s203_s7, 9 }
  0x12   : > { %s3346_s10 = smul.u32 (%p46_p3), 192, %s3490_s23  ;;  %s3594_s16 = scalar_lea.vmem (%p46_p3), [#allocation3], %s2974_s9 }
  0x14   : > { %s209_s11 = sadd.s32 (%p46_p3), %s3346_s10, %s2976_s8 }
  0x15   : > { %s2978_s12 = sshll.u32 %s209_s11, 3 }
  0x16   : > { %s3589_s15 = scalar_lea.vmem %s4418_s0, %s2978_s12 }
  0x17   : > { %v224_v0 = vld [vmem:[%s3589_s15] sm:$0xff]  ;;  %v226_v1 = vld [vmem:[%s3589_s15 + $0x8] sm:$0xff]  ;;  %v228_v2 = vld [vmem:[%s3589_s15 + $0x10] sm:$0xff] }
  0x18   : > { %225 = vst [vmem:[%s3594_s16] sm:$0xff] %v224_v0  ;;  %227 = vst [vmem:[%s3594_s16 + $0x8] sm:$0xff] %v226_v1  ;;  %v230_v3 = vld [vmem:[%s3589_s15 + $0x18] sm:$0xff]  ;;  %v232_v4 = vld [vmem:[%s3589_s15 + $0x60] sm:$0xff] }
  0x19   : > { %229 = vst [vmem:[%s3594_s16 + $0x10] sm:$0xff] %v228_v2  ;;  %v234_v5 = vld [vmem:[%s3589_s15 + $0x68] sm:$0xff]  ;;  %231 = vst [vmem:[%s3594_s16 + $0x18] sm:$0xff] %v230_v3  ;;  %v236_v6 = vld [vmem:[%s3589_s15 + $0x70] sm:$0xff] }
  0x1a   : > { %233 = vst [vmem:[%s3594_s16 + $0x20] sm:$0xff] %v232_v4  ;;  %235 = vst [vmem:[%s3594_s16 + $0x28] sm:$0xff] %v234_v5  ;;  %v238_v7 = vld [vmem:[%s3589_s15 + $0x78] sm:$0xff]  ;;  %v240_v8 = vld [vmem:[%s3589_s15 + $0xc0] sm:$0xff] }
  0x1b   : > { %237 = vst [vmem:[%s3594_s16 + $0x30] sm:$0xff] %v236_v6  ;;  %239 = vst [vmem:[%s3594_s16 + $0x38] sm:$0xff] %v238_v7  ;;  %v242_v9 = vld [vmem:[%s3589_s15 + $0xc8] sm:$0xff]  ;;  %v244_v10 = vld [vmem:[%s3589_s15 + $0xd0] sm:$0xff] }
  0x1c   : > { %241 = vst [vmem:[%s3594_s16 + $0x40] sm:$0xff] %v240_v8  ;;  %v246_v11 = vld [vmem:[%s3589_s15 + $0xd8] sm:$0xff]  ;;  %243 = vst [vmem:[%s3594_s16 + $0x48] sm:$0xff] %v242_v9  ;;  %v248_v12 = vld [vmem:[%s3589_s15 + $0x120] sm:$0xff] }
  0x1d   : > { %245 = vst [vmem:[%s3594_s16 + $0x50] sm:$0xff] %v244_v10  ;;  %247 = vst [vmem:[%s3594_s16 + $0x58] sm:$0xff] %v246_v11  ;;  %v250_v13 = vld [vmem:[%s3589_s15 + $0x128] sm:$0xff]  ;;  %v252_v14 = vld [vmem:[%s3589_s15 + $0x130] sm:$0xff] }
  0x1e   : > { %249 = vst [vmem:[%s3594_s16 + $0x60] sm:$0xff] %v248_v12  ;;  %251 = vst [vmem:[%s3594_s16 + $0x68] sm:$0xff] %v250_v13  ;;  %v254_v15 = vld [vmem:[%s3589_s15 + $0x138] sm:$0xff]  ;;  %v256_v16 = vld [vmem:[%s3589_s15 + $0x180] sm:$0xff] }
  0x1f   : > { %253 = vst [vmem:[%s3594_s16 + $0x70] sm:$0xff] %v252_v14  ;;  %v258_v17 = vld [vmem:[%s3589_s15 + $0x188] sm:$0xff]  ;;  %255 = vst [vmem:[%s3594_s16 + $0x78] sm:$0xff] %v254_v15  ;;  %v260_v18 = vld [vmem:[%s3589_s15 + $0x190] sm:$0xff] }
  0x20   : > { %257 = vst [vmem:[%s3594_s16 + $0x80] sm:$0xff] %v256_v16  ;;  %259 = vst [vmem:[%s3594_s16 + $0x88] sm:$0xff] %v258_v17  ;;  %v262_v19 = vld [vmem:[%s3589_s15 + $0x198] sm:$0xff]  ;;  %v264_v20 = vld [vmem:[%s3589_s15 + $0x1e0] sm:$0xff] }
  0x21   : > { %261 = vst [vmem:[%s3594_s16 + $0x90] sm:$0xff] %v260_v18  ;;  %263 = vst [vmem:[%s3594_s16 + $0x98] sm:$0xff] %v262_v19  ;;  %v266_v21 = vld [vmem:[%s3589_s15 + $0x1e8] sm:$0xff]  ;;  %v268_v22 = vld [vmem:[%s3589_s15 + $0x1f0] sm:$0xff] }
  0x22   : > { %265 = vst [vmem:[%s3594_s16 + $0xa0] sm:$0xff] %v264_v20  ;;  %v270_v23 = vld [vmem:[%s3589_s15 + $0x1f8] sm:$0xff]  ;;  %267 = vst [vmem:[%s3594_s16 + $0xa8] sm:$0xff] %v266_v21  ;;  %v272_v24 = vld [vmem:[%s3589_s15 + $0x240] sm:$0xff] }
  0x23   : > { %269 = vst [vmem:[%s3594_s16 + $0xb0] sm:$0xff] %v268_v22  ;;  %271 = vst [vmem:[%s3594_s16 + $0xb8] sm:$0xff] %v270_v23  ;;  %v274_v25 = vld [vmem:[%s3589_s15 + $0x248] sm:$0xff]  ;;  %v276_v26 = vld [vmem:[%s3589_s15 + $0x250] sm:$0xff] }
  0x24   : > { %273 = vst [vmem:[%s3594_s16 + $0xc0] sm:$0xff] %v272_v24  ;;  %275 = vst [vmem:[%s3594_s16 + $0xc8] sm:$0xff] %v274_v25  ;;  %v278_v27 = vld [vmem:[%s3589_s15 + $0x258] sm:$0xff]  ;;  %v280_v28 = vld [vmem:[%s3589_s15 + $0x2a0] sm:$0xff] }
  0x25   : > { %277 = vst [vmem:[%s3594_s16 + $0xd0] sm:$0xff] %v276_v26  ;;  %v282_v29 = vld [vmem:[%s3589_s15 + $0x2a8] sm:$0xff]  ;;  %279 = vst [vmem:[%s3594_s16 + $0xd8] sm:$0xff] %v278_v27  ;;  %v284_v30 = vld [vmem:[%s3589_s15 + $0x2b0] sm:$0xff] }
  0x26   : > { %281 = vst [vmem:[%s3594_s16 + $0xe0] sm:$0xff] %v280_v28  ;;  %283 = vst [vmem:[%s3594_s16 + $0xe8] sm:$0xff] %v282_v29  ;;  %v286_v31 = vld [vmem:[%s3589_s15 + $0x2b8] sm:$0xff]  ;;  %v288_v32 = vld [vmem:[%s3589_s15 + $0x300] sm:$0xff] }
  0x27   : > { %285 = vst [vmem:[%s3594_s16 + $0xf0] sm:$0xff] %v284_v30  ;;  %287 = vst [vmem:[%s3594_s16 + $0xf8] sm:$0xff] %v286_v31  ;;  %v290_v33 = vld [vmem:[%s3589_s15 + $0x308] sm:$0xff]  ;;  %v292_v34 = vld [vmem:[%s3589_s15 + $0x310] sm:$0xff] }
  0x28   : > { %289 = vst [vmem:[%s3594_s16 + $0x100] sm:$0xff] %v288_v32  ;;  %v294_v35 = vld [vmem:[%s3589_s15 + $0x318] sm:$0xff]  ;;  %291 = vst [vmem:[%s3594_s16 + $0x108] sm:$0xff] %v290_v33  ;;  %v296_v36 = vld [vmem:[%s3589_s15 + $0x360] sm:$0xff] }
  0x29   : > { %293 = vst [vmem:[%s3594_s16 + $0x110] sm:$0xff] %v292_v34  ;;  %295 = vst [vmem:[%s3594_s16 + $0x118] sm:$0xff] %v294_v35  ;;  %v298_v37 = vld [vmem:[%s3589_s15 + $0x368] sm:$0xff]  ;;  %v300_v38 = vld [vmem:[%s3589_s15 + $0x370] sm:$0xff] }
  0x2a   : > { %297 = vst [vmem:[%s3594_s16 + $0x120] sm:$0xff] %v296_v36  ;;  %299 = vst [vmem:[%s3594_s16 + $0x128] sm:$0xff] %v298_v37  ;;  %v302_v39 = vld [vmem:[%s3589_s15 + $0x378] sm:$0xff]  ;;  %v304_v40 = vld [vmem:[%s3589_s15 + $0x3c0] sm:$0xff] }
  0x2b   : > { %301 = vst [vmem:[%s3594_s16 + $0x130] sm:$0xff] %v300_v38  ;;  %v306_v41 = vld [vmem:[%s3589_s15 + $0x3c8] sm:$0xff]  ;;  %303 = vst [vmem:[%s3594_s16 + $0x138] sm:$0xff] %v302_v39  ;;  %v308_v42 = vld [vmem:[%s3589_s15 + $0x3d0] sm:$0xff] }
  0x2c   : > { %305 = vst [vmem:[%s3594_s16 + $0x140] sm:$0xff] %v304_v40  ;;  %307 = vst [vmem:[%s3594_s16 + $0x148] sm:$0xff] %v306_v41  ;;  %v310_v43 = vld [vmem:[%s3589_s15 + $0x3d8] sm:$0xff]  ;;  %v312_v44 = vld [vmem:[%s3589_s15 + $0x420] sm:$0xff] }
  0x2d   : > { %309 = vst [vmem:[%s3594_s16 + $0x150] sm:$0xff] %v308_v42  ;;  %311 = vst [vmem:[%s3594_s16 + $0x158] sm:$0xff] %v310_v43  ;;  %v314_v45 = vld [vmem:[%s3589_s15 + $0x428] sm:$0xff]  ;;  %v316_v46 = vld [vmem:[%s3589_s15 + $0x430] sm:$0xff] }
  0x2e   : > { %313 = vst [vmem:[%s3594_s16 + $0x160] sm:$0xff] %v312_v44  ;;  %v318_v47 = vld [vmem:[%s3589_s15 + $0x438] sm:$0xff]  ;;  %315 = vst [vmem:[%s3594_s16 + $0x168] sm:$0xff] %v314_v45  ;;  %v320_v48 = vld [vmem:[%s3589_s15 + $0x480] sm:$0xff] }
  0x2f   : > { %317 = vst [vmem:[%s3594_s16 + $0x170] sm:$0xff] %v316_v46  ;;  %319 = vst [vmem:[%s3594_s16 + $0x178] sm:$0xff] %v318_v47  ;;  %v322_v49 = vld [vmem:[%s3589_s15 + $0x488] sm:$0xff]  ;;  %v324_v50 = vld [vmem:[%s3589_s15 + $0x490] sm:$0xff] }
  0x30   : > { %321 = vst [vmem:[%s3594_s16 + $0x180] sm:$0xff] %v320_v48  ;;  %323 = vst [vmem:[%s3594_s16 + $0x188] sm:$0xff] %v322_v49  ;;  %v326_v51 = vld [vmem:[%s3589_s15 + $0x498] sm:$0xff]  ;;  %v328_v52 = vld [vmem:[%s3589_s15 + $0x4e0] sm:$0xff] }
  0x31   : > { %325 = vst [vmem:[%s3594_s16 + $0x190] sm:$0xff] %v324_v50  ;;  %v330_v53 = vld [vmem:[%s3589_s15 + $0x4e8] sm:$0xff]  ;;  %327 = vst [vmem:[%s3594_s16 + $0x198] sm:$0xff] %v326_v51  ;;  %v332_v54 = vld [vmem:[%s3589_s15 + $0x4f0] sm:$0xff] }
  0x32   : > { %329 = vst [vmem:[%s3594_s16 + $0x1a0] sm:$0xff] %v328_v52  ;;  %331 = vst [vmem:[%s3594_s16 + $0x1a8] sm:$0xff] %v330_v53  ;;  %v334_v55 = vld [vmem:[%s3589_s15 + $0x4f8] sm:$0xff]  ;;  %v336_v56 = vld [vmem:[%s3589_s15 + $0x540] sm:$0xff] }
  0x33   : > { %333 = vst [vmem:[%s3594_s16 + $0x1b0] sm:$0xff] %v332_v54  ;;  %335 = vst [vmem:[%s3594_s16 + $0x1b8] sm:$0xff] %v334_v55  ;;  %v338_v57 = vld [vmem:[%s3589_s15 + $0x548] sm:$0xff]  ;;  %v340_v58 = vld [vmem:[%s3589_s15 + $0x550] sm:$0xff] }
  0x34   : > { %337 = vst [vmem:[%s3594_s16 + $0x1c0] sm:$0xff] %v336_v56  ;;  %v342_v59 = vld [vmem:[%s3589_s15 + $0x558] sm:$0xff]  ;;  %339 = vst [vmem:[%s3594_s16 + $0x1c8] sm:$0xff] %v338_v57  ;;  %v344_v60 = vld [vmem:[%s3589_s15 + $0x5a0] sm:$0xff] }
  0x35   : > { %341 = vst [vmem:[%s3594_s16 + $0x1d0] sm:$0xff] %v340_v58  ;;  %343 = vst [vmem:[%s3594_s16 + $0x1d8] sm:$0xff] %v342_v59  ;;  %v346_v61 = vld [vmem:[%s3589_s15 + $0x5a8] sm:$0xff]  ;;  %v348_v62 = vld [vmem:[%s3589_s15 + $0x5b0] sm:$0xff] }
  0x36   : > { %345 = vst [vmem:[%s3594_s16 + $0x1e0] sm:$0xff] %v344_v60  ;;  %347 = vst [vmem:[%s3594_s16 + $0x1e8] sm:$0xff] %v346_v61  ;;  %v350_v63 = vld [vmem:[%s3589_s15 + $0x5b8] sm:$0xff] }
  0x37   : > { %349 = vst [vmem:[%s3594_s16 + $0x1f0] sm:$0xff] %v348_v62  ;;  %351 = vst [vmem:[%s3594_s16 + $0x1f8] sm:$0xff] %v350_v63 }
  0x38 PF: > { %p2979_p7 = scmp.ge.s32.totalorder %s3494_s24, 1  ;;  %p374_p8 = scmp.lt.s32.totalorder %s3494_s24, 10 }
  0x3a   : > { %p375_p9 = pnand %p2979_p7, %p374_p8 }
  0x3b   : > { %s381_s17 = sand.u32 (!%p375_p9), 1, %s3470_s18   ;;  %s2981_s27 = sshll.u32 (!%p375_p9), %s3482_s21, 6 }
  0x3c   : > { %378 = sbr.rel (%p375_p9) target bundleno = 879 (0x36f), region = 55  ;;  %s2980_s28 = sshll.u32 (!%p375_p9), %s381_s17, 9 }
  0x3d   : > { %p426_p10 = scmp.lt.s32.totalorder (!%p375_p9), %s2981_s27, 191  ;;  %s3745_s17 = scalar_lea.vmem (!%p375_p9), [#allocation3], %s2980_s28 }
  0x3e   : > { %p2989_p11 = scmp.ne.s32.totalorder (!%p375_p9), %s3478_s20, 0 }
  0x41   : > { %s4477_s27 = smov (!%p426_p10, %s2981_s27), 191  ;;  %453 = sbr.rel (%p2989_p11) target bundleno = 103 (0x67), region = 63 }
  0x42   : > { %s2982_s29 = sshll.u32 %s4477_s27, 3  ;;  %s2986_s30 = sshll.u32 %s4477_s27, 2 }
  0x43   : > { %s3728_s9 = scalar_lea.vmem %s4419_s1, %s2982_s29  ;;  %s3733_s12 = scalar_lea.vmem %s4421_s3, %s2982_s29 }
  0x44   : > { %s3738_s18 = scalar_lea.vmem %s4422_s4, %s2986_s30  ;;  %s3743_s16 = scalar_lea.vmem %s4423_s5, %s2982_s29 }
  0x46   : > { %v3496_v0 = vmov 0.0  }
  0x47   : > { %454 = vst [vmem:[#allocation2 + $0xb0] sm:$0xff] %v3496_v0  ;;  %455 = vst [vmem:[#allocation2 + $0x1b0] sm:$0xff] %v3496_v0 }
  0x48   : > { %456 = vst [vmem:[#allocation2 + $0xd8] sm:$0xff] %v3496_v0  ;;  %457 = vst [vmem:[#allocation2 + $0x18] sm:$0xff] %v3496_v0 }
  0x49   : > { %458 = vst [vmem:[#allocation2 + $0x50] sm:$0xff] %v3496_v0  ;;  %459 = vst [vmem:[#allocation2 + $0x168] sm:$0xff] %v3496_v0 }
  0x4a   : > { %460 = vst [vmem:[#allocation2 + $0x130] sm:$0xff] %v3496_v0  ;;  %461 = vst [vmem:[#allocation2 + $0x48] sm:$0xff] %v3496_v0 }
  0x4b   : > { %462 = vst [vmem:[#allocation2 + $0x180] sm:$0xff] %v3496_v0  ;;  %463 = vst [vmem:[#allocation2 + $0x110] sm:$0xff] %v3496_v0 }
  0x4c   : > { %464 = vst [vmem:[#allocation2 + $0x118] sm:$0xff] %v3496_v0  ;;  %465 = vst [vmem:[#allocation2 + $0x98] sm:$0xff] %v3496_v0 }
  0x4d   : > { %466 = vst [vmem:[#allocation2 + $0x120] sm:$0xff] %v3496_v0  ;;  %467 = vst [vmem:[#allocation2 + $0x150] sm:$0xff] %v3496_v0 }
  0x4e   : > { %468 = vst [vmem:[#allocation2 + $0x108] sm:$0xff] %v3496_v0  ;;  %469 = vst [vmem:[#allocation2 + $0x60] sm:$0xff] %v3496_v0 }
  0x4f   : > { %470 = vst [vmem:[#allocation2 + $0xe0] sm:$0xff] %v3496_v0  ;;  %471 = vst [vmem:[#allocation2 + $0x188] sm:$0xff] %v3496_v0 }
  0x50   : > { %472 = vst [vmem:[#allocation2 + $0x138] sm:$0xff] %v3496_v0  ;;  %473 = vst [vmem:[#allocation2 + $0x140] sm:$0xff] %v3496_v0 }
  0x51   : > { %474 = vst [vmem:[#allocation2 + $0x80] sm:$0xff] %v3496_v0  ;;  %475 = vst [vmem:[#allocation2 + $0x1a8] sm:$0xff] %v3496_v0 }
  0x52   : > { %476 = vst [vmem:[#allocation2 + $0x1b8] sm:$0xff] %v3496_v0  ;;  %477 = vst [vmem:[#allocation2 + $0x28] sm:$0xff] %v3496_v0 }
  0x53   : > { %478 = vst [vmem:[#allocation2 + $0x1e8] sm:$0xff] %v3496_v0  ;;  %479 = vst [vmem:[#allocation2 + $0xf8] sm:$0xff] %v3496_v0 }
  0x54   : > { %480 = vst [vmem:[#allocation2 + $0x160] sm:$0xff] %v3496_v0  ;;  %481 = vst [vmem:[#allocation2 + $0x30] sm:$0xff] %v3496_v0 }
  0x55   : > { %482 = vst [vmem:[#allocation2 + $0x1e0] sm:$0xff] %v3496_v0  ;;  %483 = vst [vmem:[#allocation2] sm:$0xff] %v3496_v0 }
  0x56   : > { %484 = vst [vmem:[#allocation2 + $0xf0] sm:$0xff] %v3496_v0  ;;  %485 = vst [vmem:[#allocation2 + $0x8] sm:$0xff] %v3496_v0 }
  0x57   : > { %486 = vst [vmem:[#allocation2 + $0x148] sm:$0xff] %v3496_v0  ;;  %487 = vst [vmem:[#allocation2 + $0x1d0] sm:$0xff] %v3496_v0 }
  0x58   : > { %488 = vst [vmem:[#allocation2 + $0x100] sm:$0xff] %v3496_v0  ;;  %489 = vst [vmem:[#allocation2 + $0xc8] sm:$0xff] %v3496_v0 }
  0x59   : > { %490 = vst [vmem:[#allocation2 + $0x40] sm:$0xff] %v3496_v0  ;;  %491 = vst [vmem:[#allocation2 + $0x1f8] sm:$0xff] %v3496_v0 }
  0x5a   : > { %492 = vst [vmem:[#allocation2 + $0x20] sm:$0xff] %v3496_v0  ;;  %493 = vst [vmem:[#allocation2 + $0x128] sm:$0xff] %v3496_v0 }
  0x5b   : > { %494 = vst [vmem:[#allocation2 + $0x1a0] sm:$0xff] %v3496_v0  ;;  %495 = vst [vmem:[#allocation2 + $0x1f0] sm:$0xff] %v3496_v0 }
  0x5c   : > { %496 = vst [vmem:[#allocation2 + $0xe8] sm:$0xff] %v3496_v0  ;;  %497 = vst [vmem:[#allocation2 + $0x78] sm:$0xff] %v3496_v0 }
  0x5d   : > { %498 = vst [vmem:[#allocation2 + $0x70] sm:$0xff] %v3496_v0  ;;  %499 = vst [vmem:[#allocation2 + $0x90] sm:$0xff] %v3496_v0 }
  0x5e   : > { %500 = vst [vmem:[#allocation2 + $0x1d8] sm:$0xff] %v3496_v0  ;;  %501 = vst [vmem:[#allocation2 + $0xd0] sm:$0xff] %v3496_v0 }
  0x5f   : > { %502 = vst [vmem:[#allocation2 + $0xb8] sm:$0xff] %v3496_v0  ;;  %503 = vst [vmem:[#allocation2 + $0x88] sm:$0xff] %v3496_v0 }
  0x60   : > { %504 = vst [vmem:[#allocation2 + $0xa8] sm:$0xff] %v3496_v0  ;;  %505 = vst [vmem:[#allocation2 + $0x1c8] sm:$0xff] %v3496_v0 }
  0x61   : > { %506 = vst [vmem:[#allocation2 + $0x170] sm:$0xff] %v3496_v0  ;;  %507 = vst [vmem:[#allocation2 + $0x178] sm:$0xff] %v3496_v0 }
  0x62   : > { %508 = vst [vmem:[#allocation2 + $0x68] sm:$0xff] %v3496_v0  ;;  %509 = vst [vmem:[#allocation2 + $0x190] sm:$0xff] %v3496_v0 }
  0x63   : > { %510 = vst [vmem:[#allocation2 + $0x198] sm:$0xff] %v3496_v0  ;;  %511 = vst [vmem:[#allocation2 + $0x38] sm:$0xff] %v3496_v0 }
  0x64   : > { %512 = vst [vmem:[#allocation2 + $0xc0] sm:$0xff] %v3496_v0  ;;  %513 = vst [vmem:[#allocation2 + $0x1c0] sm:$0xff] %v3496_v0 }
  0x65   : > { %514 = vst [vmem:[#allocation2 + $0x158] sm:$0xff] %v3496_v0  ;;  %515 = vst [vmem:[#allocation2 + $0x10] sm:$0xff] %v3496_v0 }
  0x66   : > { %516 = vst [vmem:[#allocation2 + $0x58] sm:$0xff] %v3496_v0  ;;  %517 = vst [vmem:[#allocation2 + $0xa0] sm:$0xff] %v3496_v0 }
  0x67 PF: > { %s2990_s27 = sshll.u32 %s3478_s20, 9  ;;  %v3814_v1 = vld [vmem:[%s3745_s17 + $0x8] sm:$0xff]  ;;  %v3817_v2 = vld [vmem:[%s3745_s17 + $0x18] sm:$0xff]  ;;  %v3497_v3 = vmov 0   ;;  %v587_v37 = vld [vmem:[%s3745_s17] sm:$0xff]  ;;  %p3024_p12 = scmp.ne.s32.totalorder %s3478_s20, 2 }
  0x68   : > { %1035 = vmatprep.subr.bf16.mxu0 %v3497_v3  ;;  %1324 = vmatprep.subr.bf16.mxu1 %v3497_v3  ;;  %s519_s28 = sshra.s32 %s2990_s27, 3  ;;  %v652_v4 = vunpack.c.l.s8.bf16 %v3814_v1  ;;  %v654_v5 = vunpack.c.l.s8.bf16 %v3817_v2  ;;  %v589_v39 = vld [vmem:[%s3745_s17 + $0x10] sm:$0xff]  ;;  %v651_v40 = vunpack.c.l.s8.bf16 %v587_v37  ;;  %v656_v41 = vunpack.c.h.s8.bf16 %v3814_v1  ;;  %v592_v44 = vld [vmem:[%s3745_s17 + $0x28] sm:$0xff]  ;;  %v594_v45 = vld [vmem:[%s3745_s17 + $0x38] sm:$0xff] }
  0x69   : > { %s2991_s29 = sshll.u32 %s519_s28, 2  ;;  %v653_v42 = vunpack.c.l.s8.bf16 %v589_v39  ;;  %v658_v43 = vunpack.c.h.s8.bf16 %v3817_v2  ;;  %v655_v46 = vunpack.c.h.s8.bf16 %v587_v37  ;;  %v657_v47 = vunpack.c.h.s8.bf16 %v589_v39  ;;  %v591_v50 = vld [vmem:[%s3745_s17 + $0x20] sm:$0xff]  ;;  %v593_v51 = vld [vmem:[%s3745_s17 + $0x30] sm:$0xff]  ;;  %v596_v56 = vld [vmem:[%s3745_s17 + $0x48] sm:$0xff] }
  0x6a   : > { %s3826_s8 = scalar_lea.vmem %s4420_s2, %s2991_s29  ;;  %1067 = vmatprep.mubr.bf16.mxu0 %v652_v4  ;;  %1356 = vmatprep.mubr.bf16.mxu1 %v654_v5  ;;  %v660_v48 = vunpack.c.l.s8.bf16 %v592_v44  ;;  %v662_v49 = vunpack.c.l.s8.bf16 %v594_v45  ;;  %v659_v52 = vunpack.c.l.s8.bf16 %v591_v50  ;;  %v661_v53 = vunpack.c.l.s8.bf16 %v593_v51  ;;  %v598_v57 = vld [vmem:[%s3745_s17 + $0x58] sm:$0xff]  ;;  %v595_v62 = vld [vmem:[%s3745_s17 + $0x40] sm:$0xff]  ;;  %v597_v63 = vld [vmem:[%s3745_s17 + $0x50] sm:$0xff] }
  0x6b   : > { %v3406_v6 = vld [vmem:[%s3826_s8 + $0x38] sm:$0xff]   ;;  %v3408_v8 = vld [vmem:[%s3826_s8 + $0x30] sm:$0xff]   ;;  %v3410_v10 = vld [vmem:[%s3826_s8 + $0x28] sm:$0xff]   ;;  %v664_v54 = vunpack.c.h.s8.bf16 %v592_v44  ;;  %v666_v55 = vunpack.c.h.s8.bf16 %v594_v45  ;;  %v663_v58 = vunpack.c.h.s8.bf16 %v591_v50  ;;  %v665_v59 = vunpack.c.h.s8.bf16 %v593_v51 }
  0x6c   : > { %v3407_v7 = vld [vmem:[%s3826_s8 + $0xb8] sm:$0xff]   ;;  %1036 = vmatpush1.bf16.msra.mxu0 %v3406_v6  ;;  %v3409_v9 = vld [vmem:[%s3826_s8 + $0xb0] sm:$0xff]   ;;  %v3411_v11 = vld [vmem:[%s3826_s8 + $0xa8] sm:$0xff]   ;;  %v668_v60 = vunpack.c.l.s8.bf16 %v596_v56  ;;  %v670_v61 = vunpack.c.l.s8.bf16 %v598_v57  ;;  %v667_v0 = vunpack.c.l.s8.bf16 %v595_v62  ;;  %v669_v1 = vunpack.c.l.s8.bf16 %v597_v63 }
  0x6d   : > { %1325 = vmatpush1.bf16.msra.mxu1 %v3407_v7  ;;  %1037 = vmatprep.subr.bf16.mxu0 %v3497_v3  ;;  %v3412_v12 = vld [vmem:[%s3826_s8 + $0x20] sm:$0xff]   ;;  %v3414_v14 = vld [vmem:[%s3826_s8 + $0x18] sm:$0xff]   ;;  %v3416_v16 = vld [vmem:[%s3826_s8 + $0x10] sm:$0xff]   ;;  %v672_v2 = vunpack.c.h.s8.bf16 %v596_v56  ;;  %v671_v6 = vunpack.c.h.s8.bf16 %v595_v62  ;;  %v673_v7 = vunpack.c.h.s8.bf16 %v597_v63 }
  0x6e   : > { %1326 = vmatprep.subr.bf16.mxu1 %v3497_v3  ;;  %v3413_v13 = vld [vmem:[%s3826_s8 + $0xa0] sm:$0xff]   ;;  %v3415_v15 = vld [vmem:[%s3826_s8 + $0x98] sm:$0xff]   ;;  %v3417_v17 = vld [vmem:[%s3826_s8 + $0x90] sm:$0xff]  }
  0x6f   : > { %v3418_v18 = vld [vmem:[%s3826_s8 + $0x8] sm:$0xff]   ;;  %v3420_v20 = vld [vmem:[%s3826_s8] sm:$0xff]   ;;  %v3422_v22 = vld [vmem:[%s3826_s8 + $0x78] sm:$0xff]  }
  0x70   : > { %1038 = vmatpush1.bf16.msra.mxu0 %v3408_v8  ;;  %v3419_v19 = vld [vmem:[%s3826_s8 + $0x88] sm:$0xff]   ;;  %v3421_v21 = vld [vmem:[%s3826_s8 + $0x80] sm:$0xff]   ;;  %v3423_v23 = vld [vmem:[%s3826_s8 + $0xf8] sm:$0xff]  }
  0x71   : > { %1327 = vmatpush1.bf16.msra.mxu1 %v3409_v9  ;;  %1039 = vmatprep.subr.bf16.mxu0 %v3497_v3  ;;  %v3424_v24 = vld [vmem:[%s3826_s8 + $0x70] sm:$0xff]   ;;  %v3426_v26 = vld [vmem:[%s3826_s8 + $0x68] sm:$0xff]   ;;  %v3428_v28 = vld [vmem:[%s3826_s8 + $0x60] sm:$0xff]  }
  0x72   : > { %1328 = vmatprep.subr.bf16.mxu1 %v3497_v3  ;;  %v3425_v25 = vld [vmem:[%s3826_s8 + $0xf0] sm:$0xff]   ;;  %v3427_v27 = vld [vmem:[%s3826_s8 + $0xe8] sm:$0xff]   ;;  %v3429_v29 = vld [vmem:[%s3826_s8 + $0xe0] sm:$0xff]  }
  0x73   : > { %v3430_v30 = vld [vmem:[%s3826_s8 + $0x58] sm:$0xff]   ;;  %v3432_v32 = vld [vmem:[%s3826_s8 + $0x50] sm:$0xff]   ;;  %v3434_v34 = vld [vmem:[%s3826_s8 + $0x48] sm:$0xff]  }
  0x74   : > { %1040 = vmatpush1.bf16.msra.mxu0 %v3410_v10  ;;  %v3431_v31 = vld [vmem:[%s3826_s8 + $0xd8] sm:$0xff]   ;;  %v3433_v33 = vld [vmem:[%s3826_s8 + $0xd0] sm:$0xff]   ;;  %v3435_v35 = vld [vmem:[%s3826_s8 + $0xc8] sm:$0xff]  }
  0x75   : > { %1329 = vmatpush1.bf16.msra.mxu1 %v3411_v11  ;;  %1041 = vmatprep.subr.bf16.mxu0 %v3497_v3  ;;  %v3436_v36 = vld [vmem:[%s3826_s8 + $0x40] sm:$0xff]   ;;  %v600_v4 = vld [vmem:[%s3745_s17 + $0x68] sm:$0xff]  ;;  %v602_v5 = vld [vmem:[%s3745_s17 + $0x78] sm:$0xff] }
  0x76   : > { %1330 = vmatprep.subr.bf16.mxu1 %v3497_v3  ;;  %v3437_v38 = vld [vmem:[%s3826_s8 + $0xc0] sm:$0xff]   ;;  %v676_v8 = vunpack.c.l.s8.bf16 %v600_v4  ;;  %v678_v9 = vunpack.c.l.s8.bf16 %v602_v5  ;;  %v601_v11 = vld [vmem:[%s3745_s17 + $0x70] sm:$0xff] }
  0x77   : > { %v599_v10 = vld [vmem:[%s3745_s17 + $0x60] sm:$0xff] }
  0x78   : > { %1042 = vmatpush1.bf16.msra.mxu0 %v3412_v12  ;;  %v675_v12 = vunpack.c.l.s8.bf16 %v599_v10 }
  0x79   : > { %1331 = vmatpush1.bf16.msra.mxu1 %v3413_v13  ;;  %1043 = vmatprep.subr.bf16.mxu0 %v3497_v3  ;;  %v677_v13 = vunpack.c.l.s8.bf16 %v601_v11 }
  0x7a   : > { %1332 = vmatprep.subr.bf16.mxu1 %v3497_v3 }
  0x7c   : > { %1044 = vmatpush1.bf16.msra.mxu0 %v3414_v14  ;;  %v680_v14 = vunpack.c.h.s8.bf16 %v600_v4 }
  0x7d   : > { %1333 = vmatpush1.bf16.msra.mxu1 %v3415_v15  ;;  %1045 = vmatprep.subr.bf16.mxu0 %v3497_v3  ;;  %v682_v15 = vunpack.c.h.s8.bf16 %v602_v5 }
  0x7e   : > { %1334 = vmatprep.subr.bf16.mxu1 %v3497_v3 }
  0x80   : > { %1046 = vmatpush1.bf16.msra.mxu0 %v3416_v16  ;;  %v604_v16 = vld [vmem:[%s3745_s17 + $0x88] sm:$0xff] }
  0x81   : > { %1335 = vmatpush1.bf16.msra.mxu1 %v3417_v17  ;;  %1047 = vmatprep.subr.bf16.mxu0 %v3497_v3  ;;  %v606_v17 = vld [vmem:[%s3745_s17 + $0x98] sm:$0xff] }
  0x82   : > { %1336 = vmatprep.subr.bf16.mxu1 %v3497_v3 }
  0x84   : > { %1048 = vmatpush1.bf16.msra.mxu0 %v3418_v18  ;;  %v679_v18 = vunpack.c.h.s8.bf16 %v599_v10 }
  0x85   : > { %1337 = vmatpush1.bf16.msra.mxu1 %v3419_v19  ;;  %1049 = vmatprep.subr.bf16.mxu0 %v3497_v3  ;;  %v681_v19 = vunpack.c.h.s8.bf16 %v601_v11 }
  0x86   : > { %1338 = vmatprep.subr.bf16.mxu1 %v3497_v3 }
  0x88   : > { %1050 = vmatpush1.bf16.msra.mxu0 %v3420_v20  ;;  %v684_v20 = vunpack.c.l.s8.bf16 %v604_v16 }
  0x89   : > { %1339 = vmatpush1.bf16.msra.mxu1 %v3421_v21  ;;  %1051 = vmatprep.subr.bf16.mxu0 %v3497_v3  ;;  %v686_v21 = vunpack.c.l.s8.bf16 %v606_v17 }
  0x8a   : > { %1340 = vmatprep.subr.bf16.mxu1 %v3497_v3 }
  0x8c   : > { %1052 = vmatpush2.bf16.msra.mxu0 %v3422_v22  ;;  %v603_v22 = vld [vmem:[%s3745_s17 + $0x80] sm:$0xff] }
  0x8d   : > { %1341 = vmatpush2.bf16.msra.mxu1 %v3423_v23  ;;  %1053 = vmatprep.subr.bf16.mxu0 %v3497_v3  ;;  %v605_v23 = vld [vmem:[%s3745_s17 + $0x90] sm:$0xff] }
  0x8e   : > { %1342 = vmatprep.subr.bf16.mxu1 %v3497_v3 }
  0x90   : > { %1054 = vmatpush2.bf16.msra.mxu0 %v3424_v24  ;;  %v683_v24 = vunpack.c.l.s8.bf16 %v603_v22 }
  0x91   : > { %1343 = vmatpush2.bf16.msra.mxu1 %v3425_v25  ;;  %1055 = vmatprep.subr.bf16.mxu0 %v3497_v3  ;;  %v685_v25 = vunpack.c.l.s8.bf16 %v605_v23 }
  0x92   : > { %1344 = vmatprep.subr.bf16.mxu1 %v3497_v3 }
  0x94   : > { %1056 = vmatpush2.bf16.msra.mxu0 %v3426_v26  ;;  %v688_v26 = vunpack.c.h.s8.bf16 %v604_v16 }
  0x95   : > { %1345 = vmatpush2.bf16.msra.mxu1 %v3427_v27  ;;  %1057 = vmatprep.subr.bf16.mxu0 %v3497_v3  ;;  %v690_v27 = vunpack.c.h.s8.bf16 %v606_v17 }
  0x96   : > { %1346 = vmatprep.subr.bf16.mxu1 %v3497_v3 }
  0x98   : > { %1058 = vmatpush2.bf16.msra.mxu0 %v3428_v28  ;;  %v608_v28 = vld [vmem:[%s3745_s17 + $0xa8] sm:$0xff] }
  0x99   : > { %1347 = vmatpush2.bf16.msra.mxu1 %v3429_v29  ;;  %1059 = vmatprep.subr.bf16.mxu0 %v3497_v3  ;;  %v610_v29 = vld [vmem:[%s3745_s17 + $0xb8] sm:$0xff] }
  0x9a   : > { %1348 = vmatprep.subr.bf16.mxu1 %v3497_v3  ;;  %v698_v39 = vunpack.c.h.s8.bf16 %v610_v29 }
  0x9c   : > { %1060 = vmatpush2.bf16.msra.mxu0 %v3430_v30  ;;  %v687_v30 = vunpack.c.h.s8.bf16 %v603_v22 }
  0x9d   : > { %1349 = vmatpush2.bf16.msra.mxu1 %v3431_v31  ;;  %1061 = vmatprep.subr.bf16.mxu0 %v3497_v3  ;;  %v689_v31 = vunpack.c.h.s8.bf16 %v605_v23 }
  0x9e   : > { %1350 = vmatprep.subr.bf16.mxu1 %v3497_v3 }
  0xa0   : > { %1062 = vmatpush2.bf16.msra.mxu0 %v3432_v32  ;;  %v692_v32 = vunpack.c.l.s8.bf16 %v608_v28 }
  0xa1   : > { %1351 = vmatpush2.bf16.msra.mxu1 %v3433_v33  ;;  %1063 = vmatprep.subr.bf16.mxu0 %v3497_v3  ;;  %v694_v33 = vunpack.c.l.s8.bf16 %v610_v29 }
  0xa2   : > { %1352 = vmatprep.subr.bf16.mxu1 %v3497_v3 }
  0xa4   : > { %1064 = vmatpush2.bf16.msra.mxu0 %v3434_v34  ;;  %v607_v34 = vld [vmem:[%s3745_s17 + $0xa0] sm:$0xff] }
  0xa5   : > { %1353 = vmatpush2.bf16.msra.mxu1 %v3435_v35  ;;  %1065 = vmatprep.subr.bf16.mxu0 %v3497_v3  ;;  %v609_v35 = vld [vmem:[%s3745_s17 + $0xb0] sm:$0xff] }
  0xa6   : > { %1354 = vmatprep.subr.bf16.mxu1 %v3497_v3  ;;  %v674_v3 = vunpack.c.h.s8.bf16 %v598_v57  ;;  %v693_v37 = vunpack.c.l.s8.bf16 %v609_v35 }
  0xa8   : > { %1066 = vmatpush2.bf16.msra.mxu0 %v3436_v36  ;;  %v691_v36 = vunpack.c.l.s8.bf16 %v607_v34 }
  0xa9   : > { %1355 = vmatpush2.bf16.msra.mxu1 %v3437_v38  ;;  %v696_v38 = vunpack.c.h.s8.bf16 %v608_v28 }
  0xab   : > { %1068 = vmatmul.mubr.bf16.vlgmr.msra.gmra.mxu0 %v651_v40  ;;  %v612_v40 = vld [vmem:[%s3745_s17 + $0xc8] sm:$0xff] }
  0xac   : > { %1357 = vmatmul.mubr.bf16.vlgmr.msra.gmra.mxu1 %v653_v42  ;;  %1075 = vmatprep.mubr.bf16.mxu0 %v656_v41  ;;  %v614_v41 = vld [vmem:[%s3745_s17 + $0xd8] sm:$0xff]  ;;  %v695_v42 = vunpack.c.h.s8.bf16 %v607_v34  ;;  %v700_v44 = vunpack.c.l.s8.bf16 %v612_v40  ;;  %v704_v50 = vunpack.c.h.s8.bf16 %v612_v40 }
  0xad   : > { %1364 = vmatprep.mubr.bf16.mxu1 %v658_v43  ;;  %v697_v43 = vunpack.c.h.s8.bf16 %v609_v35  ;;  %v702_v45 = vunpack.c.l.s8.bf16 %v614_v41  ;;  %v706_v51 = vunpack.c.h.s8.bf16 %v614_v41 }
  0xb3   : > { %1076 = vmatmul.mubr.bf16.gmra.mxu0 %v655_v46  ;;  %v611_v46 = vld [vmem:[%s3745_s17 + $0xc0] sm:$0xff] }
  0xb4   : > { %1365 = vmatmul.mubr.bf16.gmra.mxu1 %v657_v47  ;;  %1083 = vmatprep.mubr.bf16.mxu0 %v660_v48  ;;  %v613_v47 = vld [vmem:[%s3745_s17 + $0xd0] sm:$0xff]  ;;  %v699_v48 = vunpack.c.l.s8.bf16 %v611_v46 }
  0xb5   : > { %1372 = vmatprep.mubr.bf16.mxu1 %v662_v49  ;;  %v701_v49 = vunpack.c.l.s8.bf16 %v613_v47 }
  0xbb   : > { %1084 = vmatmul.mubr.bf16.gmra.mxu0 %v659_v52  ;;  %v616_v52 = vld [vmem:[%s3745_s17 + $0xe8] sm:$0xff] }
  0xbc   : > { %1373 = vmatmul.mubr.bf16.gmra.mxu1 %v661_v53  ;;  %1091 = vmatprep.mubr.bf16.mxu0 %v664_v54  ;;  %v618_v53 = vld [vmem:[%s3745_s17 + $0xf8] sm:$0xff]  ;;  %v703_v54 = vunpack.c.h.s8.bf16 %v611_v46  ;;  %v708_v56 = vunpack.c.l.s8.bf16 %v616_v52  ;;  %v712_v62 = vunpack.c.h.s8.bf16 %v616_v52 }
  0xbd   : > { %1380 = vmatprep.mubr.bf16.mxu1 %v666_v55  ;;  %v705_v55 = vunpack.c.h.s8.bf16 %v613_v47  ;;  %v710_v57 = vunpack.c.l.s8.bf16 %v618_v53  ;;  %v714_v63 = vunpack.c.h.s8.bf16 %v618_v53 }
  0xc3   : > { %1092 = vmatmul.mubr.bf16.gmra.mxu0 %v663_v58  ;;  %v615_v58 = vld [vmem:[%s3745_s17 + $0xe0] sm:$0xff] }
  0xc4   : > { %1381 = vmatmul.mubr.bf16.gmra.mxu1 %v665_v59  ;;  %1099 = vmatprep.mubr.bf16.mxu0 %v668_v60  ;;  %v617_v59 = vld [vmem:[%s3745_s17 + $0xf0] sm:$0xff]  ;;  %v707_v60 = vunpack.c.l.s8.bf16 %v615_v58 }
  0xc5   : > { %1388 = vmatprep.mubr.bf16.mxu1 %v670_v61  ;;  %v709_v61 = vunpack.c.l.s8.bf16 %v617_v59 }
  0xcb   : > { %1100 = vmatmul.mubr.bf16.gmra.mxu0 %v667_v0  ;;  %v620_v0 = vld [vmem:[%s3745_s17 + $0x108] sm:$0xff] }
  0xcc   : > { %1389 = vmatmul.mubr.bf16.gmra.mxu1 %v669_v1  ;;  %1107 = vmatprep.mubr.bf16.mxu0 %v672_v2  ;;  %v622_v1 = vld [vmem:[%s3745_s17 + $0x118] sm:$0xff]  ;;  %v711_v2 = vunpack.c.h.s8.bf16 %v615_v58  ;;  %v716_v4 = vunpack.c.l.s8.bf16 %v620_v0  ;;  %v720_v10 = vunpack.c.h.s8.bf16 %v620_v0 }
  0xcd   : > { %1396 = vmatprep.mubr.bf16.mxu1 %v674_v3  ;;  %v713_v3 = vunpack.c.h.s8.bf16 %v617_v59  ;;  %v718_v5 = vunpack.c.l.s8.bf16 %v622_v1  ;;  %v722_v11 = vunpack.c.h.s8.bf16 %v622_v1  ;;  %v640_v1 = vld [vmem:[%s3745_s17 + $0x1a8] sm:$0xff] }
  0xd3   : > { %1108 = vmatmul.mubr.bf16.gmra.mxu0 %v671_v6  ;;  %v619_v6 = vld [vmem:[%s3745_s17 + $0x100] sm:$0xff] }
  0xd4   : > { %1397 = vmatmul.mubr.bf16.gmra.mxu1 %v673_v7  ;;  %1115 = vmatprep.mubr.bf16.mxu0 %v676_v8  ;;  %v621_v7 = vld [vmem:[%s3745_s17 + $0x110] sm:$0xff]  ;;  %v715_v8 = vunpack.c.l.s8.bf16 %v619_v6 }
  0xd5   : > { %1404 = vmatprep.mubr.bf16.mxu1 %v678_v9  ;;  %v717_v9 = vunpack.c.l.s8.bf16 %v621_v7 }
  0xdb   : > { %1116 = vmatmul.mubr.bf16.gmra.mxu0 %v675_v12  ;;  %v624_v12 = vld [vmem:[%s3745_s17 + $0x128] sm:$0xff] }
  0xdc   : > { %1405 = vmatmul.mubr.bf16.gmra.mxu1 %v677_v13  ;;  %1123 = vmatprep.mubr.bf16.mxu0 %v680_v14  ;;  %v626_v13 = vld [vmem:[%s3745_s17 + $0x138] sm:$0xff]  ;;  %v719_v14 = vunpack.c.h.s8.bf16 %v619_v6  ;;  %v724_v16 = vunpack.c.l.s8.bf16 %v624_v12  ;;  %v728_v22 = vunpack.c.h.s8.bf16 %v624_v12 }
  0xdd   : > { %1412 = vmatprep.mubr.bf16.mxu1 %v682_v15  ;;  %v721_v15 = vunpack.c.h.s8.bf16 %v621_v7  ;;  %v726_v17 = vunpack.c.l.s8.bf16 %v626_v13  ;;  %v730_v23 = vunpack.c.h.s8.bf16 %v626_v13  ;;  %v780_v7 = vld [vmem:[#allocation2 + $0x1b0] sm:$0xff] }
  0xe3   : > { %1124 = vmatmul.mubr.bf16.gmra.mxu0 %v679_v18  ;;  %v623_v18 = vld [vmem:[%s3745_s17 + $0x120] sm:$0xff] }
  0xe4   : > { %1413 = vmatmul.mubr.bf16.gmra.mxu1 %v681_v19  ;;  %1131 = vmatprep.mubr.bf16.mxu0 %v684_v20  ;;  %v625_v19 = vld [vmem:[%s3745_s17 + $0x130] sm:$0xff]  ;;  %v723_v20 = vunpack.c.l.s8.bf16 %v623_v18 }
  0xe5   : > { %1420 = vmatprep.mubr.bf16.mxu1 %v686_v21  ;;  %v725_v21 = vunpack.c.l.s8.bf16 %v625_v19 }
  0xeb   : > { %1132 = vmatmul.mubr.bf16.gmra.mxu0 %v683_v24  ;;  %v628_v24 = vld [vmem:[%s3745_s17 + $0x148] sm:$0xff] }
  0xec   : > { %1421 = vmatmul.mubr.bf16.gmra.mxu1 %v685_v25  ;;  %1139 = vmatprep.mubr.bf16.mxu0 %v688_v26  ;;  %v630_v25 = vld [vmem:[%s3745_s17 + $0x158] sm:$0xff]  ;;  %v727_v26 = vunpack.c.h.s8.bf16 %v623_v18  ;;  %v732_v28 = vunpack.c.l.s8.bf16 %v628_v24  ;;  %v736_v34 = vunpack.c.h.s8.bf16 %v628_v24 }
  0xed   : > { %1428 = vmatprep.mubr.bf16.mxu1 %v690_v27  ;;  %v729_v27 = vunpack.c.h.s8.bf16 %v625_v19  ;;  %v734_v29 = vunpack.c.l.s8.bf16 %v630_v25  ;;  %v738_v35 = vunpack.c.h.s8.bf16 %v630_v25  ;;  %v639_v19 = vld [vmem:[%s3745_s17 + $0x1a0] sm:$0xff] }
  0xf3   : > { %1140 = vmatmul.mubr.bf16.gmra.mxu0 %v687_v30  ;;  %v627_v30 = vld [vmem:[%s3745_s17 + $0x140] sm:$0xff] }
  0xf4   : > { %1429 = vmatmul.mubr.bf16.gmra.mxu1 %v689_v31  ;;  %1147 = vmatprep.mubr.bf16.mxu0 %v692_v32  ;;  %v629_v31 = vld [vmem:[%s3745_s17 + $0x150] sm:$0xff]  ;;  %v731_v32 = vunpack.c.l.s8.bf16 %v627_v30 }
  0xf5   : > { %1436 = vmatprep.mubr.bf16.mxu1 %v694_v33  ;;  %v733_v33 = vunpack.c.l.s8.bf16 %v629_v31 }
  0xfb   : > { %1148 = vmatmul.mubr.bf16.gmra.mxu0 %v691_v36  ;;  %v632_v36 = vld [vmem:[%s3745_s17 + $0x168] sm:$0xff] }
  0xfc   : > { %1437 = vmatmul.mubr.bf16.gmra.mxu1 %v693_v37  ;;  %1155 = vmatprep.mubr.bf16.mxu0 %v696_v38  ;;  %v634_v37 = vld [vmem:[%s3745_s17 + $0x178] sm:$0xff]  ;;  %v735_v38 = vunpack.c.h.s8.bf16 %v627_v30  ;;  %v740_v40 = vunpack.c.l.s8.bf16 %v632_v36  ;;  %v744_v46 = vunpack.c.h.s8.bf16 %v632_v36  ;;  %v760_v30 = vunpack.c.h.s8.bf16 %v640_v1 }
  0xfd   : > { %1444 = vmatprep.mubr.bf16.mxu1 %v698_v39  ;;  %v737_v39 = vunpack.c.h.s8.bf16 %v629_v31  ;;  %v742_v41 = vunpack.c.l.s8.bf16 %v634_v37  ;;  %v746_v47 = vunpack.c.h.s8.bf16 %v634_v37  ;;  %v783_v37 = vld [vmem:[#allocation2 + $0x50] sm:$0xff] }
 0x103   : > { %1156 = vmatmul.mubr.bf16.gmra.mxu0 %v695_v42  ;;  %v631_v42 = vld [vmem:[%s3745_s17 + $0x160] sm:$0xff] }
 0x104   : > { %1445 = vmatmul.mubr.bf16.gmra.mxu1 %v697_v43  ;;  %1163 = vmatprep.mubr.bf16.mxu0 %v700_v44  ;;  %v633_v43 = vld [vmem:[%s3745_s17 + $0x170] sm:$0xff]  ;;  %v739_v44 = vunpack.c.l.s8.bf16 %v631_v42 }
 0x105   : > { %1452 = vmatprep.mubr.bf16.mxu1 %v702_v45  ;;  %v741_v45 = vunpack.c.l.s8.bf16 %v633_v43 }
 0x10b   : > { %1164 = vmatmul.mubr.bf16.gmra.mxu0 %v699_v48  ;;  %v636_v48 = vld [vmem:[%s3745_s17 + $0x188] sm:$0xff] }
 0x10c   : > { %1453 = vmatmul.mubr.bf16.gmra.mxu1 %v701_v49  ;;  %1171 = vmatprep.mubr.bf16.mxu0 %v704_v50  ;;  %v638_v49 = vld [vmem:[%s3745_s17 + $0x198] sm:$0xff]  ;;  %v743_v50 = vunpack.c.h.s8.bf16 %v631_v42  ;;  %v748_v52 = vunpack.c.l.s8.bf16 %v636_v48  ;;  %v752_v58 = vunpack.c.h.s8.bf16 %v636_v48 }
 0x10d   : > { %1460 = vmatprep.mubr.bf16.mxu1 %v706_v51  ;;  %v745_v51 = vunpack.c.h.s8.bf16 %v633_v43  ;;  %v750_v53 = vunpack.c.l.s8.bf16 %v638_v49  ;;  %v754_v59 = vunpack.c.h.s8.bf16 %v638_v49  ;;  %v646_v43 = vld [vmem:[%s3745_s17 + $0x1d8] sm:$0xff] }
 0x113   : > { %1172 = vmatmul.mubr.bf16.gmra.mxu0 %v703_v54  ;;  %v635_v54 = vld [vmem:[%s3745_s17 + $0x180] sm:$0xff] }
 0x114   : > { %1461 = vmatmul.mubr.bf16.gmra.mxu1 %v705_v55  ;;  %1179 = vmatprep.mubr.bf16.mxu0 %v708_v56  ;;  %v637_v55 = vld [vmem:[%s3745_s17 + $0x190] sm:$0xff]  ;;  %v747_v56 = vunpack.c.l.s8.bf16 %v635_v54  ;;  %v751_v6 = vunpack.c.h.s8.bf16 %v635_v54 }
 0x115   : > { %1468 = vmatprep.mubr.bf16.mxu1 %v710_v57  ;;  %v749_v57 = vunpack.c.l.s8.bf16 %v637_v55 }
 0x11b   : > { %1180 = vmatmul.mubr.bf16.gmra.mxu0 %v707_v60 }
 0x11c   : > { %1469 = vmatmul.mubr.bf16.gmra.mxu1 %v709_v61  ;;  %1187 = vmatprep.mubr.bf16.mxu0 %v712_v62  ;;  %v779_v61 = vld [vmem:[#allocation2 + $0xb0] sm:$0xff] }
 0x11d   : > { %1476 = vmatprep.mubr.bf16.mxu1 %v714_v63 }
 0x123   : > { %1188 = vmatmul.mubr.bf16.gmra.mxu0 %v711_v2 }
 0x124   : > { %1477 = vmatmul.mubr.bf16.gmra.mxu1 %v713_v3  ;;  %1195 = vmatprep.mubr.bf16.mxu0 %v716_v4  ;;  %v642_v3 = vld [vmem:[%s3745_s17 + $0x1b8] sm:$0xff] }
 0x125   : > { %1484 = vmatprep.mubr.bf16.mxu1 %v718_v5  ;;  %v758_v13 = vunpack.c.l.s8.bf16 %v642_v3 }
 0x12b   : > { %1196 = vmatmul.mubr.bf16.gmra.mxu0 %v715_v8 }
 0x12c   : > { %1485 = vmatmul.mubr.bf16.gmra.mxu1 %v717_v9  ;;  %1203 = vmatprep.mubr.bf16.mxu0 %v720_v10  ;;  %v753_v9 = vunpack.c.h.s8.bf16 %v637_v55  ;;  %v756_v10 = vunpack.c.l.s8.bf16 %v640_v1 }
 0x12d   : > { %1492 = vmatprep.mubr.bf16.mxu1 %v722_v11 }
 0x133   : > { %1204 = vmatmul.mubr.bf16.gmra.mxu0 %v719_v14 }
 0x134   : > { %1493 = vmatmul.mubr.bf16.gmra.mxu1 %v721_v15  ;;  %1211 = vmatprep.mubr.bf16.mxu0 %v724_v16 }
 0x135   : > { %1500 = vmatprep.mubr.bf16.mxu1 %v726_v17  ;;  %v781_v17 = vld [vmem:[#allocation2 + $0xd8] sm:$0xff] }
 0x13b   : > { %1212 = vmatmul.mubr.bf16.gmra.mxu0 %v723_v20 }
 0x13c   : > { %1501 = vmatmul.mubr.bf16.gmra.mxu1 %v725_v21  ;;  %1219 = vmatprep.mubr.bf16.mxu0 %v728_v22  ;;  %v641_v22 = vld [vmem:[%s3745_s17 + $0x1b0] sm:$0xff] }
 0x13d   : > { %1508 = vmatprep.mubr.bf16.mxu1 %v730_v23  ;;  %v761_v49 = vunpack.c.h.s8.bf16 %v641_v22 }
 0x143   : > { %1220 = vmatmul.mubr.bf16.gmra.mxu0 %v727_v26  ;;  %v755_v26 = vunpack.c.l.s8.bf16 %v639_v19 }
 0x144   : > { %1509 = vmatmul.mubr.bf16.gmra.mxu1 %v729_v27  ;;  %1227 = vmatprep.mubr.bf16.mxu0 %v732_v28  ;;  %v782_v27 = vld [vmem:[#allocation2 + $0x18] sm:$0xff] }
 0x145   : > { %1516 = vmatprep.mubr.bf16.mxu1 %v734_v29  ;;  %v757_v29 = vunpack.c.l.s8.bf16 %v641_v22 }
 0x14b   : > { %1228 = vmatmul.mubr.bf16.gmra.mxu0 %v731_v32 }
 0x14c   : > { %1517 = vmatmul.mubr.bf16.gmra.mxu1 %v733_v33  ;;  %1235 = vmatprep.mubr.bf16.mxu0 %v736_v34  ;;  %v762_v33 = vunpack.c.h.s8.bf16 %v642_v3  ;;  %v786_v3 = vld [vmem:[#allocation2 + $0x48] sm:$0xff] }
 0x14d   : > { %1524 = vmatprep.mubr.bf16.mxu1 %v738_v35 }
 0x153   : > { %1236 = vmatmul.mubr.bf16.gmra.mxu0 %v735_v38 }
 0x154   : > { %1525 = vmatmul.mubr.bf16.gmra.mxu1 %v737_v39  ;;  %1243 = vmatprep.mubr.bf16.mxu0 %v740_v40 }
 0x155   : > { %1532 = vmatprep.mubr.bf16.mxu1 %v742_v41  ;;  %v644_v41 = vld [vmem:[%s3745_s17 + $0x1c8] sm:$0xff] }
 0x15b   : > { %1244 = vmatmul.mubr.bf16.gmra.mxu0 %v739_v44 }
 0x15c   : > { %1533 = vmatmul.mubr.bf16.gmra.mxu1 %v741_v45  ;;  %1251 = vmatprep.mubr.bf16.mxu0 %v744_v46  ;;  %v759_v46 = vunpack.c.h.s8.bf16 %v639_v19  ;;  %v650_v19 = vld [vmem:[%s3745_s17 + $0x1f8] sm:$0xff] }
 0x15d   : > { %1540 = vmatprep.mubr.bf16.mxu1 %v746_v47  ;;  %v784_v47 = vld [vmem:[#allocation2 + $0x168] sm:$0xff] }
 0x163   : > { %1252 = vmatmul.mubr.bf16.gmra.mxu0 %v743_v50  ;;  %v764_v50 = vunpack.c.l.s8.bf16 %v644_v41 }
 0x164   : > { %1541 = vmatmul.mubr.bf16.gmra.mxu1 %v745_v51  ;;  %1259 = vmatprep.mubr.bf16.mxu0 %v748_v52 }
 0x165   : > { %1548 = vmatprep.mubr.bf16.mxu1 %v750_v53  ;;  %v766_v53 = vunpack.c.l.s8.bf16 %v646_v43 }
 0x16b   : > { %v1069_v60 = vpop.f32.mrf.mxu0  ;;  %1260 = vmatmul.mubr.bf16.gmra.mxu0 %v747_v56 }
 0x16c   : > { %v1358_v62 = vpop.f32.mrf.mxu1  ;;  %1549 = vmatmul.mubr.bf16.gmra.mxu1 %v749_v57  ;;  %1267 = vmatprep.mubr.bf16.mxu0 %v752_v58  ;;  %v785_v57 = vld [vmem:[#allocation2 + $0x130] sm:$0xff] }
 0x16d   : > { %v1359_v63 = vadd.f32 %v1358_v62, %v1069_v60  ;;  %v1071_v0 = vpop.f32.mrf.mxu0  ;;  %1556 = vmatprep.mubr.bf16.mxu1 %v754_v59  ;;  %v643_v59 = vld [vmem:[%s3745_s17 + $0x1c0] sm:$0xff]  ;;  %v645_v62 = vld [vmem:[%s3745_s17 + $0x1d0] sm:$0xff] }
 0x16e   : > { %v1360_v2 = vpop.f32.mrf.mxu1  ;;  %v767_v22 = vunpack.c.h.s8.bf16 %v643_v59 }
 0x16f   : > { %v1613_v4 = vadd.f32 %v1359_v63, %v779_v61  ;;  %v1072_v5 = vpop.f32.mrf.mxu0  ;;  %v763_v2 = vunpack.c.l.s8.bf16 %v643_v59 }
 0x170   : > { %v1361_v8 = vpop.f32.mrf.mxu1 }
 0x171   : > { %1677 = vst [vmem:[#allocation2 + $0xb0] sm:$0xff] %v1613_v4  ;;  %v1362_v11 = vadd.f32 %v1361_v8, %v1072_v5  ;;  %v1074_v12 = vpop.f32.mrf.mxu0  ;;  %v765_v5 = vunpack.c.l.s8.bf16 %v645_v62 }
 0x172   : > { %v1363_v14 = vpop.f32.mrf.mxu1 }
 0x173   : > { %v1614_v15 = vadd.f32 %v1362_v11, %v780_v7  ;;  %v1077_v16 = vpop.f32.mrf.mxu0  ;;  %1268 = vmatmul.mubr.bf16.gmra.mxu0 %v751_v6  ;;  %v768_v6 = vunpack.c.h.s8.bf16 %v644_v41 }
 0x174   : > { %v1366_v18 = vpop.f32.mrf.mxu1  ;;  %1557 = vmatmul.mubr.bf16.gmra.mxu1 %v753_v9  ;;  %1275 = vmatprep.mubr.bf16.mxu0 %v756_v10  ;;  %v770_v9 = vunpack.c.h.s8.bf16 %v646_v43  ;;  %v790_v43 = vld [vmem:[#allocation2 + $0x98] sm:$0xff] }
 0x175   : > { %1678 = vst [vmem:[#allocation2 + $0x1b0] sm:$0xff] %v1614_v15  ;;  %v1367_v20 = vadd.f32 %v1366_v18, %v1077_v16  ;;  %v1079_v21 = vpop.f32.mrf.mxu0  ;;  %1564 = vmatprep.mubr.bf16.mxu1 %v758_v13  ;;  %v787_v13 = vld [vmem:[#allocation2 + $0x180] sm:$0xff] }
 0x176   : > { %v1368_v23 = vpop.f32.mrf.mxu1 }
 0x177   : > { %v1615_v24 = vadd.f32 %v1367_v20, %v781_v17  ;;  %v1080_v25 = vpop.f32.mrf.mxu0  ;;  %v648_v17 = vld [vmem:[%s3745_s17 + $0x1e8] sm:$0xff]  ;;  %v788_v23 = vld [vmem:[#allocation2 + $0x110] sm:$0xff] }
 0x178   : > { %v1369_v28 = vpop.f32.mrf.mxu1 }
 0x179   : > { %1679 = vst [vmem:[#allocation2 + $0xd8] sm:$0xff] %v1615_v24  ;;  %v1370_v31 = vadd.f32 %v1369_v28, %v1080_v25  ;;  %v1082_v32 = vpop.f32.mrf.mxu0  ;;  %v769_v25 = vunpack.c.h.s8.bf16 %v645_v62 }
 0x17a   : > { %v1371_v34 = vpop.f32.mrf.mxu1 }
 0x17b   : > { %v1616_v35 = vadd.f32 %v1370_v31, %v782_v27  ;;  %v1085_v36 = vpop.f32.mrf.mxu0  ;;  %1276 = vmatmul.mubr.bf16.gmra.mxu0 %v755_v26  ;;  %v772_v26 = vunpack.c.l.s8.bf16 %v648_v17 }
 0x17c   : > { %v1374_v38 = vpop.f32.mrf.mxu1  ;;  %1565 = vmatmul.mubr.bf16.gmra.mxu1 %v757_v29  ;;  %1283 = vmatprep.mubr.bf16.mxu0 %v760_v30  ;;  %v774_v29 = vunpack.c.l.s8.bf16 %v650_v19 }
 0x17d   : > { %1680 = vst [vmem:[#allocation2 + $0x18] sm:$0xff] %v1616_v35  ;;  %v1375_v39 = vadd.f32 %v1374_v38, %v1085_v36  ;;  %v1087_v40 = vpop.f32.mrf.mxu0  ;;  %1572 = vmatprep.mubr.bf16.mxu1 %v762_v33  ;;  %v789_v33 = vld [vmem:[#allocation2 + $0x118] sm:$0xff]  ;;  %v647_v35 = vld [vmem:[%s3745_s17 + $0x1e0] sm:$0xff]  ;;  %v649_v38 = vld [vmem:[%s3745_s17 + $0x1f0] sm:$0xff] }
 0x17e   : > { %v1376_v42 = vpop.f32.mrf.mxu1 }
 0x17f   : > { %v1617_v44 = vadd.f32 %v1375_v39, %v783_v37  ;;  %v1088_v45 = vpop.f32.mrf.mxu0  ;;  %v771_v42 = vunpack.c.l.s8.bf16 %v647_v35 }
 0x180   : > { %v1377_v48 = vpop.f32.mrf.mxu1 }
 0x181   : > { %1681 = vst [vmem:[#allocation2 + $0x50] sm:$0xff] %v1617_v44  ;;  %v1378_v51 = vadd.f32 %v1377_v48, %v1088_v45  ;;  %v1090_v52 = vpop.f32.mrf.mxu0  ;;  %v773_v45 = vunpack.c.l.s8.bf16 %v649_v38 }
 0x182   : > { %v1379_v54 = vpop.f32.mrf.mxu1 }
 0x183   : > { %v1618_v55 = vadd.f32 %v1378_v51, %v784_v47  ;;  %v1093_v56 = vpop.f32.mrf.mxu0  ;;  %1284 = vmatmul.mubr.bf16.gmra.mxu0 %v759_v46  ;;  %v776_v46 = vunpack.c.h.s8.bf16 %v648_v17 }
 0x184   : > { %v1382_v58 = vpop.f32.mrf.mxu1  ;;  %1573 = vmatmul.mubr.bf16.gmra.mxu1 %v761_v49  ;;  %1291 = vmatprep.mubr.bf16.mxu0 %v764_v50  ;;  %v778_v49 = vunpack.c.h.s8.bf16 %v650_v19  ;;  %v795_v19 = vld [vmem:[#allocation2 + $0xe0] sm:$0xff] }
 0x185   : > { %1682 = vst [vmem:[#allocation2 + $0x168] sm:$0xff] %v1618_v55  ;;  %v1383_v60 = vadd.f32 %v1382_v58, %v1093_v56  ;;  %v1095_v61 = vpop.f32.mrf.mxu0  ;;  %1580 = vmatprep.mubr.bf16.mxu1 %v766_v53  ;;  %v791_v53 = vld [vmem:[#allocation2 + $0x120] sm:$0xff] }
 0x186   : > { %v1384_v63 = vpop.f32.mrf.mxu1  ;;  %v792_v61 = vld [vmem:[#allocation2 + $0x150] sm:$0xff] }
 0x187   : > { %v1619_v0 = vadd.f32 %v1383_v60, %v785_v57  ;;  %v1096_v1 = vpop.f32.mrf.mxu0  ;;  %v775_v60 = vunpack.c.h.s8.bf16 %v647_v35  ;;  %v777_v63 = vunpack.c.h.s8.bf16 %v649_v38 }
 0x188   : > { %v1385_v4 = vpop.f32.mrf.mxu1 }
 0x189   : > { %1683 = vst [vmem:[#allocation2 + $0x130] sm:$0xff] %v1619_v0  ;;  %v1386_v7 = vadd.f32 %v1385_v4, %v1096_v1  ;;  %v1098_v8 = vpop.f32.mrf.mxu0 }
 0x18a   : > { %v1387_v10 = vpop.f32.mrf.mxu1 }
 0x18b   : > { %v1620_v11 = vadd.f32 %v1386_v7, %v786_v3  ;;  %v1101_v12 = vpop.f32.mrf.mxu0  ;;  %1292 = vmatmul.mubr.bf16.gmra.mxu0 %v763_v2 }
 0x18c   : > { %v1390_v14 = vpop.f32.mrf.mxu1  ;;  %1581 = vmatmul.mubr.bf16.gmra.mxu1 %v765_v5  ;;  %1299 = vmatprep.mubr.bf16.mxu0 %v768_v6  ;;  %v793_v5 = vld [vmem:[#allocation2 + $0x108] sm:$0xff] }
 0x18d   : > { %1684 = vst [vmem:[#allocation2 + $0x48] sm:$0xff] %v1620_v11  ;;  %v1391_v15 = vadd.f32 %v1390_v14, %v1101_v12  ;;  %v1103_v16 = vpop.f32.mrf.mxu0  ;;  %1588 = vmatprep.mubr.bf16.mxu1 %v770_v9  ;;  %v794_v12 = vld [vmem:[#allocation2 + $0x60] sm:$0xff] }
 0x18e   : > { %v1392_v18 = vpop.f32.mrf.mxu1 }
 0x18f   : > { %v1621_v20 = vadd.f32 %v1391_v15, %v787_v13  ;;  %v1104_v21 = vpop.f32.mrf.mxu0 }
 0x190   : > { %v1393_v24 = vpop.f32.mrf.mxu1 }
 0x191   : > { %1685 = vst [vmem:[#allocation2 + $0x180] sm:$0xff] %v1621_v20  ;;  %v1394_v27 = vadd.f32 %v1393_v24, %v1104_v21  ;;  %v1106_v28 = vpop.f32.mrf.mxu0 }
 0x192   : > { %v1395_v30 = vpop.f32.mrf.mxu1 }
 0x193   : > { %v1622_v31 = vadd.f32 %v1394_v27, %v788_v23  ;;  %v1109_v32 = vpop.f32.mrf.mxu0  ;;  %1300 = vmatmul.mubr.bf16.gmra.mxu0 %v767_v22 }
 0x194   : > { %v1398_v34 = vpop.f32.mrf.mxu1  ;;  %1589 = vmatmul.mubr.bf16.gmra.mxu1 %v769_v25  ;;  %1307 = vmatprep.mubr.bf16.mxu0 %v772_v26  ;;  %v796_v26 = vld [vmem:[#allocation2 + $0x188] sm:$0xff] }
 0x195   : > { %1686 = vst [vmem:[#allocation2 + $0x110] sm:$0xff] %v1622_v31  ;;  %v1399_v36 = vadd.f32 %v1398_v34, %v1109_v32  ;;  %v1111_v37 = vpop.f32.mrf.mxu0  ;;  %1596 = vmatprep.mubr.bf16.mxu1 %v774_v29 }
 0x196   : > { %v1400_v39 = vpop.f32.mrf.mxu1 }
 0x197   : > { %v1623_v40 = vadd.f32 %v1399_v36, %v789_v33  ;;  %v1112_v41 = vpop.f32.mrf.mxu0  ;;  %v797_v33 = vld [vmem:[#allocation2 + $0x138] sm:$0xff] }
 0x198   : > { %v1401_v44 = vpop.f32.mrf.mxu1 }
 0x199   : > { %1687 = vst [vmem:[#allocation2 + $0x118] sm:$0xff] %v1623_v40  ;;  %v1402_v47 = vadd.f32 %v1401_v44, %v1112_v41  ;;  %v1114_v48 = vpop.f32.mrf.mxu0  ;;  %v798_v40 = vld [vmem:[#allocation2 + $0x140] sm:$0xff] }
 0x19a   : > { %v1403_v50 = vpop.f32.mrf.mxu1 }
 0x19b   : > { %v1624_v51 = vadd.f32 %v1402_v47, %v790_v43  ;;  %v1117_v52 = vpop.f32.mrf.mxu0  ;;  %1308 = vmatmul.mubr.bf16.gmra.mxu0 %v771_v42  ;;  %v799_v47 = vld [vmem:[#allocation2 + $0x80] sm:$0xff] }
 0x19c   : > { %v1406_v54 = vpop.f32.mrf.mxu1  ;;  %1597 = vmatmul.mubr.bf16.gmra.mxu1 %v773_v45  ;;  %1315 = vmatprep.mubr.bf16.mxu0 %v776_v46 }
 0x19d   : > { %1688 = vst [vmem:[#allocation2 + $0x98] sm:$0xff] %v1624_v51  ;;  %v1407_v55 = vadd.f32 %v1406_v54, %v1117_v52  ;;  %v1119_v56 = vpop.f32.mrf.mxu0  ;;  %1604 = vmatprep.mubr.bf16.mxu1 %v778_v49  ;;  %v800_v54 = vld [vmem:[#allocation2 + $0x1a8] sm:$0xff] }
 0x19e   : > { %v1408_v57 = vpop.f32.mrf.mxu1 }
 0x19f   : > { %v1625_v58 = vadd.f32 %v1407_v55, %v791_v53  ;;  %v1120_v59 = vpop.f32.mrf.mxu0 }
 0x1a0   : > { %v1409_v62 = vpop.f32.mrf.mxu1 }
 0x1a1   : > { %1689 = vst [vmem:[#allocation2 + $0x120] sm:$0xff] %v1625_v58  ;;  %v1410_v0 = vadd.f32 %v1409_v62, %v1120_v59  ;;  %v1122_v1 = vpop.f32.mrf.mxu0 }
 0x1a2   : > { %v1411_v2 = vpop.f32.mrf.mxu1 }
 0x1a3   : > { %v1626_v3 = vadd.f32 %v1410_v0, %v792_v61  ;;  %v1125_v4 = vpop.f32.mrf.mxu0  ;;  %1316 = vmatmul.mubr.bf16.gmra.mxu0 %v775_v60  ;;  %v801_v61 = vld [vmem:[#allocation2 + $0x1b8] sm:$0xff] }
 0x1a4   : > { %v1414_v6 = vpop.f32.mrf.mxu1  ;;  %1605 = vmatmul.mubr.bf16.gmra.mxu1 %v777_v63 }
 0x1a5   : > { %1690 = vst [vmem:[#allocation2 + $0x150] sm:$0xff] %v1626_v3  ;;  %v1415_v7 = vadd.f32 %v1414_v6, %v1125_v4  ;;  %v1127_v8 = vpop.f32.mrf.mxu0  ;;  %v802_v4 = vld [vmem:[#allocation2 + $0x28] sm:$0xff] }
 0x1a6   : > { %v1416_v9 = vpop.f32.mrf.mxu1 }
 0x1a7   : > { %v1627_v10 = vadd.f32 %v1415_v7, %v793_v5  ;;  %v1128_v11 = vpop.f32.mrf.mxu0 }
 0x1a8   : > { %v1417_v13 = vpop.f32.mrf.mxu1 }
 0x1a9   : > { %1691 = vst [vmem:[#allocation2 + $0x108] sm:$0xff] %v1627_v10  ;;  %v1418_v14 = vadd.f32 %v1417_v13, %v1128_v11  ;;  %v1130_v15 = vpop.f32.mrf.mxu0  ;;  %v803_v11 = vld [vmem:[#allocation2 + $0x1e8] sm:$0xff] }
 0x1aa   : > { %v1419_v16 = vpop.f32.mrf.mxu1 }
 0x1ab   : > { %v1628_v17 = vadd.f32 %v1418_v14, %v794_v12  ;;  %v1133_v18 = vpop.f32.mrf.mxu0 }
 0x1ac   : > { %v1422_v20 = vpop.f32.mrf.mxu1 }
 0x1ad   : > { %1692 = vst [vmem:[#allocation2 + $0x60] sm:$0xff] %v1628_v17  ;;  %v1423_v21 = vadd.f32 %v1422_v20, %v1133_v18  ;;  %v1135_v22 = vpop.f32.mrf.mxu0  ;;  %v804_v18 = vld [vmem:[#allocation2 + $0xf8] sm:$0xff] }
 0x1ae   : > { %v1424_v23 = vpop.f32.mrf.mxu1 }
 0x1af   : > { %v1629_v24 = vadd.f32 %v1423_v21, %v795_v19  ;;  %v1136_v25 = vpop.f32.mrf.mxu0 }
 0x1b0   : > { %v1425_v27 = vpop.f32.mrf.mxu1 }
 0x1b1   : > { %1693 = vst [vmem:[#allocation2 + $0xe0] sm:$0xff] %v1629_v24  ;;  %v1426_v28 = vadd.f32 %v1425_v27, %v1136_v25  ;;  %v1138_v29 = vpop.f32.mrf.mxu0  ;;  %v805_v25 = vld [vmem:[#allocation2 + $0x160] sm:$0xff] }
 0x1b2   : > { %v1427_v30 = vpop.f32.mrf.mxu1 }
 0x1b3   : > { %v1630_v31 = vadd.f32 %v1426_v28, %v796_v26  ;;  %v1141_v32 = vpop.f32.mrf.mxu0 }
 0x1b4   : > { %v1430_v34 = vpop.f32.mrf.mxu1 }
 0x1b5   : > { %1694 = vst [vmem:[#allocation2 + $0x188] sm:$0xff] %v1630_v31  ;;  %v1431_v35 = vadd.f32 %v1430_v34, %v1141_v32  ;;  %v1143_v36 = vpop.f32.mrf.mxu0  ;;  %v806_v32 = vld [vmem:[#allocation2 + $0x30] sm:$0xff] }
 0x1b6   : > { %v1432_v37 = vpop.f32.mrf.mxu1 }
 0x1b7   : > { %v1631_v38 = vadd.f32 %v1431_v35, %v797_v33  ;;  %v1144_v39 = vpop.f32.mrf.mxu0 }
 0x1b8   : > { %v1433_v41 = vpop.f32.mrf.mxu1 }
 0x1b9   : > { %1695 = vst [vmem:[#allocation2 + $0x138] sm:$0xff] %v1631_v38  ;;  %v1434_v42 = vadd.f32 %v1433_v41, %v1144_v39  ;;  %v1146_v43 = vpop.f32.mrf.mxu0  ;;  %v807_v39 = vld [vmem:[#allocation2 + $0x1e0] sm:$0xff] }
 0x1ba   : > { %v1435_v44 = vpop.f32.mrf.mxu1 }
 0x1bb   : > { %v1632_v45 = vadd.f32 %v1434_v42, %v798_v40  ;;  %v1149_v46 = vpop.f32.mrf.mxu0 }
 0x1bc   : > { %v1438_v48 = vpop.f32.mrf.mxu1 }
 0x1bd   : > { %1696 = vst [vmem:[#allocation2 + $0x140] sm:$0xff] %v1632_v45  ;;  %v1439_v49 = vadd.f32 %v1438_v48, %v1149_v46  ;;  %v1151_v50 = vpop.f32.mrf.mxu0  ;;  %v808_v46 = vld [vmem:[#allocation2] sm:$0xff] }
 0x1be   : > { %v1440_v51 = vpop.f32.mrf.mxu1 }
 0x1bf   : > { %v1633_v52 = vadd.f32 %v1439_v49, %v799_v47  ;;  %v1152_v53 = vpop.f32.mrf.mxu0 }
 0x1c0   : > { %v1441_v55 = vpop.f32.mrf.mxu1 }
 0x1c1   : > { %1697 = vst [vmem:[#allocation2 + $0x80] sm:$0xff] %v1633_v52  ;;  %v1442_v56 = vadd.f32 %v1441_v55, %v1152_v53  ;;  %v1154_v57 = vpop.f32.mrf.mxu0  ;;  %v809_v53 = vld [vmem:[#allocation2 + $0xf0] sm:$0xff] }
 0x1c2   : > { %v1443_v58 = vpop.f32.mrf.mxu1 }
 0x1c3   : > { %v1634_v59 = vadd.f32 %v1442_v56, %v800_v54  ;;  %v1157_v60 = vpop.f32.mrf.mxu0 }
 0x1c4   : > { %v1446_v62 = vpop.f32.mrf.mxu1 }
 0x1c5   : > { %1698 = vst [vmem:[#allocation2 + $0x1a8] sm:$0xff] %v1634_v59  ;;  %v1447_v63 = vadd.f32 %v1446_v62, %v1157_v60  ;;  %v1159_v0 = vpop.f32.mrf.mxu0  ;;  %v810_v60 = vld [vmem:[#allocation2 + $0x8] sm:$0xff] }
 0x1c6   : > { %v1448_v1 = vpop.f32.mrf.mxu1 }
 0x1c7   : > { %v1635_v2 = vadd.f32 %v1447_v63, %v801_v61  ;;  %v1160_v3 = vpop.f32.mrf.mxu0 }
 0x1c8   : > { %v1449_v5 = vpop.f32.mrf.mxu1 }
 0x1c9   : > { %1699 = vst [vmem:[#allocation2 + $0x1b8] sm:$0xff] %v1635_v2  ;;  %v1450_v6 = vadd.f32 %v1449_v5, %v1160_v3  ;;  %v1162_v7 = vpop.f32.mrf.mxu0  ;;  %v811_v3 = vld [vmem:[#allocation2 + $0x148] sm:$0xff] }
 0x1ca   : > { %v1451_v8 = vpop.f32.mrf.mxu1 }
 0x1cb   : > { %v1636_v9 = vadd.f32 %v1450_v6, %v802_v4  ;;  %v1165_v10 = vpop.f32.mrf.mxu0 }
 0x1cc   : > { %v1454_v12 = vpop.f32.mrf.mxu1 }
 0x1cd   : > { %1700 = vst [vmem:[#allocation2 + $0x28] sm:$0xff] %v1636_v9  ;;  %v1455_v13 = vadd.f32 %v1454_v12, %v1165_v10  ;;  %v1167_v14 = vpop.f32.mrf.mxu0  ;;  %v812_v10 = vld [vmem:[#allocation2 + $0x1d0] sm:$0xff] }
 0x1ce   : > { %v1456_v15 = vpop.f32.mrf.mxu1 }
 0x1cf   : > { %v1637_v16 = vadd.f32 %v1455_v13, %v803_v11  ;;  %v1168_v17 = vpop.f32.mrf.mxu0 }
 0x1d0   : > { %v1457_v19 = vpop.f32.mrf.mxu1 }
 0x1d1   : > { %1701 = vst [vmem:[#allocation2 + $0x1e8] sm:$0xff] %v1637_v16  ;;  %v1458_v20 = vadd.f32 %v1457_v19, %v1168_v17  ;;  %v1170_v21 = vpop.f32.mrf.mxu0  ;;  %v813_v17 = vld [vmem:[#allocation2 + $0x100] sm:$0xff] }
 0x1d2   : > { %v1459_v22 = vpop.f32.mrf.mxu1 }
 0x1d3   : > { %v1638_v23 = vadd.f32 %v1458_v20, %v804_v18  ;;  %v1173_v24 = vpop.f32.mrf.mxu0 }
 0x1d4   : > { %v1462_v26 = vpop.f32.mrf.mxu1 }
 0x1d5   : > { %1702 = vst [vmem:[#allocation2 + $0xf8] sm:$0xff] %v1638_v23  ;;  %v1463_v27 = vadd.f32 %v1462_v26, %v1173_v24  ;;  %v1175_v28 = vpop.f32.mrf.mxu0  ;;  %v814_v24 = vld [vmem:[#allocation2 + $0xc8] sm:$0xff] }
 0x1d6   : > { %v1464_v29 = vpop.f32.mrf.mxu1 }
 0x1d7   : > { %v1639_v30 = vadd.f32 %v1463_v27, %v805_v25  ;;  %v1176_v31 = vpop.f32.mrf.mxu0 }
 0x1d8   : > { %v1465_v33 = vpop.f32.mrf.mxu1 }
 0x1d9   : > { %1703 = vst [vmem:[#allocation2 + $0x160] sm:$0xff] %v1639_v30  ;;  %v1466_v34 = vadd.f32 %v1465_v33, %v1176_v31  ;;  %v1178_v35 = vpop.f32.mrf.mxu0  ;;  %v815_v31 = vld [vmem:[#allocation2 + $0x40] sm:$0xff] }
 0x1da   : > { %v1467_v36 = vpop.f32.mrf.mxu1 }
 0x1db   : > { %v1640_v37 = vadd.f32 %v1466_v34, %v806_v32  ;;  %v1181_v38 = vpop.f32.mrf.mxu0 }
 0x1dc   : > { %v1470_v40 = vpop.f32.mrf.mxu1 }
 0x1dd   : > { %1704 = vst [vmem:[#allocation2 + $0x30] sm:$0xff] %v1640_v37  ;;  %v1471_v41 = vadd.f32 %v1470_v40, %v1181_v38  ;;  %v1183_v42 = vpop.f32.mrf.mxu0  ;;  %v816_v38 = vld [vmem:[#allocation2 + $0x1f8] sm:$0xff] }
 0x1de   : > { %v1472_v43 = vpop.f32.mrf.mxu1 }
 0x1df   : > { %v1641_v44 = vadd.f32 %v1471_v41, %v807_v39  ;;  %v1184_v45 = vpop.f32.mrf.mxu0 }
 0x1e0   : > { %v1473_v47 = vpop.f32.mrf.mxu1 }
 0x1e1   : > { %1705 = vst [vmem:[#allocation2 + $0x1e0] sm:$0xff] %v1641_v44  ;;  %v1474_v48 = vadd.f32 %v1473_v47, %v1184_v45  ;;  %v1186_v49 = vpop.f32.mrf.mxu0  ;;  %v817_v45 = vld [vmem:[#allocation2 + $0x20] sm:$0xff] }
 0x1e2   : > { %v1475_v50 = vpop.f32.mrf.mxu1 }
 0x1e3   : > { %v1642_v51 = vadd.f32 %v1474_v48, %v808_v46  ;;  %v1189_v52 = vpop.f32.mrf.mxu0 }
 0x1e4   : > { %v1478_v54 = vpop.f32.mrf.mxu1 }
 0x1e5   : > { %1706 = vst [vmem:[#allocation2] sm:$0xff] %v1642_v51  ;;  %v1479_v55 = vadd.f32 %v1478_v54, %v1189_v52  ;;  %v1191_v56 = vpop.f32.mrf.mxu0  ;;  %v818_v52 = vld [vmem:[#allocation2 + $0x128] sm:$0xff] }
 0x1e6   : > { %v1480_v57 = vpop.f32.mrf.mxu1 }
 0x1e7   : > { %v1643_v58 = vadd.f32 %v1479_v55, %v809_v53  ;;  %v1192_v59 = vpop.f32.mrf.mxu0 }
 0x1e8   : > { %v1481_v61 = vpop.f32.mrf.mxu1 }
 0x1e9   : > { %1707 = vst [vmem:[#allocation2 + $0xf0] sm:$0xff] %v1643_v58  ;;  %v1482_v62 = vadd.f32 %v1481_v61, %v1192_v59  ;;  %v1194_v63 = vpop.f32.mrf.mxu0  ;;  %v819_v59 = vld [vmem:[#allocation2 + $0x1a0] sm:$0xff] }
 0x1ea   : > { %v1483_v0 = vpop.f32.mrf.mxu1 }
 0x1eb   : > { %v1644_v1 = vadd.f32 %v1482_v62, %v810_v60  ;;  %v1197_v2 = vpop.f32.mrf.mxu0 }
 0x1ec   : > { %v1486_v4 = vpop.f32.mrf.mxu1 }
 0x1ed   : > { %1708 = vst [vmem:[#allocation2 + $0x8] sm:$0xff] %v1644_v1  ;;  %v1487_v5 = vadd.f32 %v1486_v4, %v1197_v2  ;;  %v1199_v6 = vpop.f32.mrf.mxu0  ;;  %v820_v2 = vld [vmem:[#allocation2 + $0x1f0] sm:$0xff] }
 0x1ee   : > { %v1488_v7 = vpop.f32.mrf.mxu1 }
 0x1ef   : > { %v1645_v8 = vadd.f32 %v1487_v5, %v811_v3  ;;  %v1200_v9 = vpop.f32.mrf.mxu0 }
 0x1f0   : > { %v1489_v11 = vpop.f32.mrf.mxu1 }
 0x1f1   : > { %1709 = vst [vmem:[#allocation2 + $0x148] sm:$0xff] %v1645_v8  ;;  %v1490_v12 = vadd.f32 %v1489_v11, %v1200_v9  ;;  %v1202_v13 = vpop.f32.mrf.mxu0  ;;  %v821_v9 = vld [vmem:[#allocation2 + $0xe8] sm:$0xff] }
 0x1f2   : > { %v1491_v14 = vpop.f32.mrf.mxu1 }
 0x1f3   : > { %v1646_v15 = vadd.f32 %v1490_v12, %v812_v10  ;;  %v1205_v16 = vpop.f32.mrf.mxu0 }
 0x1f4   : > { %v1494_v18 = vpop.f32.mrf.mxu1 }
 0x1f5   : > { %1710 = vst [vmem:[#allocation2 + $0x1d0] sm:$0xff] %v1646_v15  ;;  %v1495_v19 = vadd.f32 %v1494_v18, %v1205_v16  ;;  %v1207_v20 = vpop.f32.mrf.mxu0  ;;  %v822_v16 = vld [vmem:[#allocation2 + $0x78] sm:$0xff] }
 0x1f6   : > { %v1496_v21 = vpop.f32.mrf.mxu1 }
 0x1f7   : > { %v1647_v22 = vadd.f32 %v1495_v19, %v813_v17  ;;  %v1208_v23 = vpop.f32.mrf.mxu0 }
 0x1f8   : > { %v1497_v25 = vpop.f32.mrf.mxu1 }
 0x1f9   : > { %1711 = vst [vmem:[#allocation2 + $0x100] sm:$0xff] %v1647_v22  ;;  %v1498_v26 = vadd.f32 %v1497_v25, %v1208_v23  ;;  %v1210_v27 = vpop.f32.mrf.mxu0  ;;  %v823_v23 = vld [vmem:[#allocation2 + $0x70] sm:$0xff] }
 0x1fa   : > { %v1499_v28 = vpop.f32.mrf.mxu1 }
 0x1fb   : > { %v1648_v29 = vadd.f32 %v1498_v26, %v814_v24  ;;  %v1213_v30 = vpop.f32.mrf.mxu0 }
 0x1fc   : > { %v1502_v32 = vpop.f32.mrf.mxu1 }
 0x1fd   : > { %1712 = vst [vmem:[#allocation2 + $0xc8] sm:$0xff] %v1648_v29  ;;  %v1503_v33 = vadd.f32 %v1502_v32, %v1213_v30  ;;  %v1215_v34 = vpop.f32.mrf.mxu0  ;;  %v824_v30 = vld [vmem:[#allocation2 + $0x90] sm:$0xff] }
 0x1fe   : > { %v1504_v35 = vpop.f32.mrf.mxu1 }
 0x1ff   : > { %v1649_v36 = vadd.f32 %v1503_v33, %v815_v31  ;;  %v1216_v37 = vpop.f32.mrf.mxu0 }
 0x200   : > { %v1505_v39 = vpop.f32.mrf.mxu1 }
 0x201   : > { %1713 = vst [vmem:[#allocation2 + $0x40] sm:$0xff] %v1649_v36  ;;  %v1506_v40 = vadd.f32 %v1505_v39, %v1216_v37  ;;  %v1218_v41 = vpop.f32.mrf.mxu0  ;;  %v825_v37 = vld [vmem:[#allocation2 + $0x1d8] sm:$0xff] }
 0x202   : > { %v1507_v42 = vpop.f32.mrf.mxu1 }
 0x203   : > { %v1650_v43 = vadd.f32 %v1506_v40, %v816_v38  ;;  %v1221_v44 = vpop.f32.mrf.mxu0 }
 0x204   : > { %v1510_v46 = vpop.f32.mrf.mxu1 }
 0x205   : > { %1714 = vst [vmem:[#allocation2 + $0x1f8] sm:$0xff] %v1650_v43  ;;  %v1511_v47 = vadd.f32 %v1510_v46, %v1221_v44  ;;  %v1223_v48 = vpop.f32.mrf.mxu0  ;;  %v826_v44 = vld [vmem:[#allocation2 + $0xd0] sm:$0xff] }
 0x206   : > { %v1512_v49 = vpop.f32.mrf.mxu1 }
 0x207   : > { %v1651_v50 = vadd.f32 %v1511_v47, %v817_v45  ;;  %v1224_v51 = vpop.f32.mrf.mxu0 }
 0x208   : > { %v1513_v53 = vpop.f32.mrf.mxu1 }
 0x209   : > { %1715 = vst [vmem:[#allocation2 + $0x20] sm:$0xff] %v1651_v50  ;;  %v1514_v54 = vadd.f32 %v1513_v53, %v1224_v51  ;;  %v1226_v55 = vpop.f32.mrf.mxu0  ;;  %v827_v51 = vld [vmem:[#allocation2 + $0xb8] sm:$0xff] }
 0x20a   : > { %v1515_v56 = vpop.f32.mrf.mxu1 }
 0x20b   : > { %v1652_v57 = vadd.f32 %v1514_v54, %v818_v52  ;;  %v1229_v58 = vpop.f32.mrf.mxu0 }
 0x20c   : > { %v1518_v60 = vpop.f32.mrf.mxu1 }
 0x20d   : > { %1716 = vst [vmem:[#allocation2 + $0x128] sm:$0xff] %v1652_v57  ;;  %v1519_v61 = vadd.f32 %v1518_v60, %v1229_v58  ;;  %v1231_v62 = vpop.f32.mrf.mxu0  ;;  %v828_v58 = vld [vmem:[#allocation2 + $0x88] sm:$0xff] }
 0x20e   : > { %v1520_v63 = vpop.f32.mrf.mxu1 }
 0x20f   : > { %v1653_v0 = vadd.f32 %v1519_v61, %v819_v59  ;;  %v1232_v1 = vpop.f32.mrf.mxu0 }
 0x210   : > { %v1521_v3 = vpop.f32.mrf.mxu1 }
 0x211   : > { %1717 = vst [vmem:[#allocation2 + $0x1a0] sm:$0xff] %v1653_v0  ;;  %v1522_v4 = vadd.f32 %v1521_v3, %v1232_v1  ;;  %v1234_v5 = vpop.f32.mrf.mxu0  ;;  %v829_v1 = vld [vmem:[#allocation2 + $0xa8] sm:$0xff] }
 0x212   : > { %v1523_v6 = vpop.f32.mrf.mxu1 }
 0x213   : > { %v1654_v7 = vadd.f32 %v1522_v4, %v820_v2  ;;  %v1237_v8 = vpop.f32.mrf.mxu0 }
 0x214   : > { %v1526_v10 = vpop.f32.mrf.mxu1 }
 0x215   : > { %1718 = vst [vmem:[#allocation2 + $0x1f0] sm:$0xff] %v1654_v7  ;;  %v1527_v11 = vadd.f32 %v1526_v10, %v1237_v8  ;;  %v1239_v12 = vpop.f32.mrf.mxu0  ;;  %v830_v8 = vld [vmem:[#allocation2 + $0x1c8] sm:$0xff] }
 0x216   : > { %v1528_v13 = vpop.f32.mrf.mxu1 }
 0x217   : > { %v1655_v14 = vadd.f32 %v1527_v11, %v821_v9  ;;  %v1240_v15 = vpop.f32.mrf.mxu0 }
 0x218   : > { %v1529_v17 = vpop.f32.mrf.mxu1 }
 0x219   : > { %1719 = vst [vmem:[#allocation2 + $0xe8] sm:$0xff] %v1655_v14  ;;  %v1530_v18 = vadd.f32 %v1529_v17, %v1240_v15  ;;  %v1242_v19 = vpop.f32.mrf.mxu0  ;;  %v831_v15 = vld [vmem:[#allocation2 + $0x170] sm:$0xff] }
 0x21a   : > { %v1531_v20 = vpop.f32.mrf.mxu1 }
 0x21b   : > { %v1656_v21 = vadd.f32 %v1530_v18, %v822_v16  ;;  %v1245_v22 = vpop.f32.mrf.mxu0 }
 0x21c   : > { %v1534_v24 = vpop.f32.mrf.mxu1 }
 0x21d   : > { %1720 = vst [vmem:[#allocation2 + $0x78] sm:$0xff] %v1656_v21  ;;  %v1535_v25 = vadd.f32 %v1534_v24, %v1245_v22  ;;  %v1247_v26 = vpop.f32.mrf.mxu0  ;;  %v832_v22 = vld [vmem:[#allocation2 + $0x178] sm:$0xff] }
 0x21e   : > { %v1536_v27 = vpop.f32.mrf.mxu1 }
 0x21f   : > { %v1657_v28 = vadd.f32 %v1535_v25, %v823_v23  ;;  %v1248_v29 = vpop.f32.mrf.mxu0 }
 0x220   : > { %v1537_v31 = vpop.f32.mrf.mxu1 }
 0x221   : > { %1721 = vst [vmem:[#allocation2 + $0x70] sm:$0xff] %v1657_v28  ;;  %v1538_v32 = vadd.f32 %v1537_v31, %v1248_v29  ;;  %v1250_v33 = vpop.f32.mrf.mxu0  ;;  %v833_v29 = vld [vmem:[#allocation2 + $0x68] sm:$0xff] }
 0x222   : > { %v1539_v34 = vpop.f32.mrf.mxu1 }
 0x223   : > { %v1658_v35 = vadd.f32 %v1538_v32, %v824_v30  ;;  %v1253_v36 = vpop.f32.mrf.mxu0 }
 0x224   : > { %v1542_v38 = vpop.f32.mrf.mxu1 }
 0x225   : > { %1722 = vst [vmem:[#allocation2 + $0x90] sm:$0xff] %v1658_v35  ;;  %v1543_v39 = vadd.f32 %v1542_v38, %v1253_v36  ;;  %v1255_v40 = vpop.f32.mrf.mxu0  ;;  %v834_v36 = vld [vmem:[#allocation2 + $0x190] sm:$0xff] }
 0x226   : > { %v1544_v41 = vpop.f32.mrf.mxu1 }
 0x227   : > { %v1659_v42 = vadd.f32 %v1543_v39, %v825_v37  ;;  %v1256_v43 = vpop.f32.mrf.mxu0 }
 0x228   : > { %v1545_v45 = vpop.f32.mrf.mxu1 }
 0x229   : > { %1723 = vst [vmem:[#allocation2 + $0x1d8] sm:$0xff] %v1659_v42  ;;  %v1546_v46 = vadd.f32 %v1545_v45, %v1256_v43  ;;  %v1258_v47 = vpop.f32.mrf.mxu0  ;;  %v835_v43 = vld [vmem:[#allocation2 + $0x198] sm:$0xff] }
 0x22a   : > { %v1547_v48 = vpop.f32.mrf.mxu1 }
 0x22b   : > { %v1660_v49 = vadd.f32 %v1546_v46, %v826_v44  ;;  %v1261_v50 = vpop.f32.mrf.mxu0 }
 0x22c   : > { %v1550_v52 = vpop.f32.mrf.mxu1 }
 0x22d   : > { %1724 = vst [vmem:[#allocation2 + $0xd0] sm:$0xff] %v1660_v49  ;;  %v1551_v53 = vadd.f32 %v1550_v52, %v1261_v50  ;;  %v1263_v54 = vpop.f32.mrf.mxu0  ;;  %v836_v50 = vld [vmem:[#allocation2 + $0x38] sm:$0xff] }
 0x22e   : > { %v1552_v55 = vpop.f32.mrf.mxu1 }
 0x22f   : > { %v1661_v56 = vadd.f32 %v1551_v53, %v827_v51  ;;  %v1264_v57 = vpop.f32.mrf.mxu0 }
 0x230   : > { %v1553_v59 = vpop.f32.mrf.mxu1 }
 0x231   : > { %1725 = vst [vmem:[#allocation2 + $0xb8] sm:$0xff] %v1661_v56  ;;  %v1554_v60 = vadd.f32 %v1553_v59, %v1264_v57  ;;  %v1266_v61 = vpop.f32.mrf.mxu0  ;;  %v837_v57 = vld [vmem:[#allocation2 + $0xc0] sm:$0xff] }
 0x232   : > { %v1555_v62 = vpop.f32.mrf.mxu1 }
 0x233   : > { %v1662_v63 = vadd.f32 %v1554_v60, %v828_v58  ;;  %v1269_v0 = vpop.f32.mrf.mxu0 }
 0x234   : > { %v1558_v2 = vpop.f32.mrf.mxu1 }
 0x235   : > { %1726 = vst [vmem:[#allocation2 + $0x88] sm:$0xff] %v1662_v63  ;;  %v1559_v3 = vadd.f32 %v1558_v2, %v1269_v0  ;;  %v1271_v4 = vpop.f32.mrf.mxu0  ;;  %v838_v0 = vld [vmem:[#allocation2 + $0x1c0] sm:$0xff] }
 0x236   : > { %v1560_v5 = vpop.f32.mrf.mxu1 }
 0x237   : > { %v1663_v6 = vadd.f32 %v1559_v3, %v829_v1  ;;  %v1272_v7 = vpop.f32.mrf.mxu0 }
 0x238   : > { %v1561_v9 = vpop.f32.mrf.mxu1 }
 0x239   : > { %1727 = vst [vmem:[#allocation2 + $0xa8] sm:$0xff] %v1663_v6  ;;  %v1562_v10 = vadd.f32 %v1561_v9, %v1272_v7  ;;  %v1274_v11 = vpop.f32.mrf.mxu0  ;;  %v839_v7 = vld [vmem:[#allocation2 + $0x158] sm:$0xff] }
 0x23a   : > { %v1563_v12 = vpop.f32.mrf.mxu1 }
 0x23b   : > { %v1664_v13 = vadd.f32 %v1562_v10, %v830_v8  ;;  %v1277_v14 = vpop.f32.mrf.mxu0 }
 0x23c   : > { %v1566_v16 = vpop.f32.mrf.mxu1 }
 0x23d   : > { %1728 = vst [vmem:[#allocation2 + $0x1c8] sm:$0xff] %v1664_v13  ;;  %v1567_v17 = vadd.f32 %v1566_v16, %v1277_v14  ;;  %v1279_v18 = vpop.f32.mrf.mxu0  ;;  %v840_v14 = vld [vmem:[#allocation2 + $0x10] sm:$0xff] }
 0x23e   : > { %v1568_v19 = vpop.f32.mrf.mxu1 }
 0x23f   : > { %v1665_v20 = vadd.f32 %v1567_v17, %v831_v15  ;;  %v1280_v21 = vpop.f32.mrf.mxu0 }
 0x240   : > { %v1569_v23 = vpop.f32.mrf.mxu1 }
 0x241   : > { %1729 = vst [vmem:[#allocation2 + $0x170] sm:$0xff] %v1665_v20  ;;  %v1570_v24 = vadd.f32 %v1569_v23, %v1280_v21  ;;  %v1282_v25 = vpop.f32.mrf.mxu0  ;;  %v841_v21 = vld [vmem:[#allocation2 + $0x58] sm:$0xff] }
 0x242   : > { %v1571_v26 = vpop.f32.mrf.mxu1 }
 0x243   : > { %v1666_v27 = vadd.f32 %v1570_v24, %v832_v22  ;;  %v1285_v28 = vpop.f32.mrf.mxu0 }
 0x244   : > { %v1574_v30 = vpop.f32.mrf.mxu1 }
 0x245   : > { %1730 = vst [vmem:[#allocation2 + $0x178] sm:$0xff] %v1666_v27  ;;  %v1575_v31 = vadd.f32 %v1574_v30, %v1285_v28  ;;  %v1287_v32 = vpop.f32.mrf.mxu0  ;;  %v842_v28 = vld [vmem:[#allocation2 + $0xa0] sm:$0xff] }
 0x246   : > { %v1576_v33 = vpop.f32.mrf.mxu1 }
 0x247   : > { %v1667_v34 = vadd.f32 %v1575_v31, %v833_v29  ;;  %v1288_v35 = vpop.f32.mrf.mxu0 }
 0x248   : > { %v1577_v37 = vpop.f32.mrf.mxu1 }
 0x249   : > { %1731 = vst [vmem:[#allocation2 + $0x68] sm:$0xff] %v1667_v34  ;;  %v1578_v38 = vadd.f32 %v1577_v37, %v1288_v35  ;;  %v1290_v39 = vpop.f32.mrf.mxu0 }
 0x24a   : > { %v1579_v40 = vpop.f32.mrf.mxu1 }
 0x24b   : > { %v1668_v41 = vadd.f32 %v1578_v38, %v834_v36  ;;  %v1293_v42 = vpop.f32.mrf.mxu0 }
 0x24c   : > { %v1582_v44 = vpop.f32.mrf.mxu1 }
 0x24d   : > { %1732 = vst [vmem:[#allocation2 + $0x190] sm:$0xff] %v1668_v41  ;;  %v1583_v45 = vadd.f32 %v1582_v44, %v1293_v42  ;;  %v1295_v46 = vpop.f32.mrf.mxu0 }
 0x24e   : > { %v1584_v47 = vpop.f32.mrf.mxu1 }
 0x24f   : > { %v1669_v48 = vadd.f32 %v1583_v45, %v835_v43  ;;  %v1296_v49 = vpop.f32.mrf.mxu0 }
 0x250   : > { %v1585_v51 = vpop.f32.mrf.mxu1 }
 0x251   : > { %1733 = vst [vmem:[#allocation2 + $0x198] sm:$0xff] %v1669_v48  ;;  %v1586_v52 = vadd.f32 %v1585_v51, %v1296_v49  ;;  %v1298_v53 = vpop.f32.mrf.mxu0 }
 0x252   : > { %v1587_v54 = vpop.f32.mrf.mxu1 }
 0x253   : > { %v1670_v55 = vadd.f32 %v1586_v52, %v836_v50  ;;  %v1301_v56 = vpop.f32.mrf.mxu0 }
 0x254   : > { %v1590_v58 = vpop.f32.mrf.mxu1 }
 0x255   : > { %1734 = vst [vmem:[#allocation2 + $0x38] sm:$0xff] %v1670_v55  ;;  %v1591_v59 = vadd.f32 %v1590_v58, %v1301_v56  ;;  %v1303_v60 = vpop.f32.mrf.mxu0 }
 0x256   : > { %v1592_v61 = vpop.f32.mrf.mxu1 }
 0x257   : > { %v1671_v62 = vadd.f32 %v1591_v59, %v837_v57  ;;  %v1304_v63 = vpop.f32.mrf.mxu0 }
 0x258   : > { %v1593_v1 = vpop.f32.mrf.mxu1 }
 0x259   : > { %1735 = vst [vmem:[#allocation2 + $0xc0] sm:$0xff] %v1671_v62  ;;  %v1594_v2 = vadd.f32 %v1593_v1, %v1304_v63  ;;  %v1306_v3 = vpop.f32.mrf.mxu0 }
 0x25a   : > { %v1595_v4 = vpop.f32.mrf.mxu1 }
 0x25b   : > { %v1672_v5 = vadd.f32 %v1594_v2, %v838_v0  ;;  %v1309_v6 = vpop.f32.mrf.mxu0 }
 0x25c   : > { %v1598_v8 = vpop.f32.mrf.mxu1 }
 0x25d   : > { %1736 = vst [vmem:[#allocation2 + $0x1c0] sm:$0xff] %v1672_v5  ;;  %v1599_v9 = vadd.f32 %v1598_v8, %v1309_v6  ;;  %v1311_v10 = vpop.f32.mrf.mxu0 }
 0x25e   : > { %v1600_v11 = vpop.f32.mrf.mxu1 }
 0x25f   : > { %v1673_v12 = vadd.f32 %v1599_v9, %v839_v7  ;;  %v1312_v13 = vpop.f32.mrf.mxu0 }
 0x260   : > { %v1601_v15 = vpop.f32.mrf.mxu1 }
 0x261   : > { %1737 = vst [vmem:[#allocation2 + $0x158] sm:$0xff] %v1673_v12  ;;  %v1602_v16 = vadd.f32 %v1601_v15, %v1312_v13  ;;  %v1314_v17 = vpop.f32.mrf.mxu0 }
 0x262   : > { %v1603_v18 = vpop.f32.mrf.mxu1 }
 0x263   : > { %v1674_v19 = vadd.f32 %v1602_v16, %v840_v14  ;;  %v1317_v20 = vpop.f32.mrf.mxu0 }
 0x264   : > { %v1606_v22 = vpop.f32.mrf.mxu1 }
 0x265   : > { %1738 = vst [vmem:[#allocation2 + $0x10] sm:$0xff] %v1674_v19  ;;  %v1607_v23 = vadd.f32 %v1606_v22, %v1317_v20  ;;  %v1319_v24 = vpop.f32.mrf.mxu0 }
 0x266   : > { %v1608_v25 = vpop.f32.mrf.mxu1 }
 0x267   : > { %v1675_v26 = vadd.f32 %v1607_v23, %v841_v21  ;;  %v1320_v27 = vpop.f32.mrf.mxu0 }
 0x268   : > { %v1609_v29 = vpop.f32.mrf.mxu1 }
 0x269   : > { %1739 = vst [vmem:[#allocation2 + $0x58] sm:$0xff] %v1675_v26  ;;  %v1610_v30 = vadd.f32 %v1609_v29, %v1320_v27  ;;  %v1322_v31 = vpop.f32.mrf.mxu0  ;;  %1744 = sbr.rel (%p3024_p12) target bundleno = 879 (0x36f), region = 67 }
 0x26a   : > { %v1611_v32 = vpop.f32.mrf.mxu1 }
 0x26b   : > { %v1676_v33 = vadd.f32 %v1610_v30, %v842_v28 }
 0x26d   : > { %1740 = vst [vmem:[#allocation2 + $0xa0] sm:$0xff] %v1676_v33 }
 0x26e   : > { %v1747_v34 = vld [vmem:[%s3728_s9 + $0x10] sm:$0xff]  ;;  %v1745_v35 = vld [vmem:[%s3728_s9] sm:$0xff]  ;;  %v3498_v36 = vmov 0   ;;  %v1748_v37 = vld [vmem:[%s3728_s9 + $0x18] sm:$0xff] }
 0x26f   : > { %3439 = vset.pattern.permute.xlu1 %v3498_v36  ;;  %3438 = vset.pattern.permute.xlu0 %v3498_v36  ;;  %v1746_v38 = vld [vmem:[%s3728_s9 + $0x8] sm:$0xff]  ;;  %v1749_v40 = vld [vmem:[%s3728_s9 + $0x20] sm:$0xff]  ;;  %v1752_v41 = vld [vmem:[%s3728_s9 + $0x38] sm:$0xff] }
 0x270   : > { %1885 = vperm.xlu1 %3439, %v1747_v34   ;;  %1875 = vperm.xlu0 %3438, %v1745_v35   ;;  %v1750_v39 = vld [vmem:[%s3728_s9 + $0x28] sm:$0xff]  ;;  %v1751_v42 = vld [vmem:[%s3728_s9 + $0x30] sm:$0xff]  ;;  %v1753_v44 = vld [vmem:[%s3728_s9 + $0x40] sm:$0xff] }
 0x271   : > { %v1754_v43 = vld [vmem:[%s3728_s9 + $0x48] sm:$0xff]  ;;  %v1756_v45 = vld [vmem:[%s3728_s9 + $0x58] sm:$0xff]  ;;  %v1755_v46 = vld [vmem:[%s3728_s9 + $0x50] sm:$0xff] }
 0x272   : > { %v1758_v47 = vld [vmem:[%s3728_s9 + $0x68] sm:$0xff]  ;;  %v1757_v48 = vld [vmem:[%s3728_s9 + $0x60] sm:$0xff]  ;;  %v1760_v49 = vld [vmem:[%s3728_s9 + $0x78] sm:$0xff] }
 0x273   : > { %v1759_v50 = vld [vmem:[%s3728_s9 + $0x70] sm:$0xff]  ;;  %v1762_v51 = vld [vmem:[%s3728_s9 + $0x88] sm:$0xff]  ;;  %v1761_v52 = vld [vmem:[%s3728_s9 + $0x80] sm:$0xff] }
 0x274   : > { %1890 = vperm.xlu1 %3439, %v1748_v37   ;;  %1880 = vperm.xlu0 %3438, %v1746_v38   ;;  %v1764_v53 = vld [vmem:[%s3728_s9 + $0x98] sm:$0xff]  ;;  %v1763_v54 = vld [vmem:[%s3728_s9 + $0x90] sm:$0xff]  ;;  %v1766_v55 = vld [vmem:[%s3728_s9 + $0xa8] sm:$0xff] }
 0x275   : > { %v1765_v56 = vld [vmem:[%s3728_s9 + $0xa0] sm:$0xff]  ;;  %v1768_v57 = vld [vmem:[%s3728_s9 + $0xb8] sm:$0xff]  ;;  %v1767_v58 = vld [vmem:[%s3728_s9 + $0xb0] sm:$0xff] }
 0x276   : > { %v1770_v59 = vld [vmem:[%s3728_s9 + $0xc8] sm:$0xff]  ;;  %v1769_v60 = vld [vmem:[%s3728_s9 + $0xc0] sm:$0xff]  ;;  %v1772_v61 = vld [vmem:[%s3728_s9 + $0xd8] sm:$0xff] }
 0x277   : > { %v1771_v62 = vld [vmem:[%s3728_s9 + $0xd0] sm:$0xff]  ;;  %v1774_v63 = vld [vmem:[%s3728_s9 + $0xe8] sm:$0xff]  ;;  %v1773_v0 = vld [vmem:[%s3728_s9 + $0xe0] sm:$0xff] }
 0x278   : > { %1900 = vperm.xlu1 %3439, %v1750_v39   ;;  %1895 = vperm.xlu0 %3438, %v1749_v40   ;;  %v1776_v1 = vld [vmem:[%s3728_s9 + $0xf8] sm:$0xff]  ;;  %v1775_v2 = vld [vmem:[%s3728_s9 + $0xf0] sm:$0xff]  ;;  %v1778_v3 = vld [vmem:[%s3728_s9 + $0x108] sm:$0xff] }
 0x279   : > { %v1777_v4 = vld [vmem:[%s3728_s9 + $0x100] sm:$0xff]  ;;  %v1780_v5 = vld [vmem:[%s3728_s9 + $0x118] sm:$0xff]  ;;  %v1779_v6 = vld [vmem:[%s3728_s9 + $0x110] sm:$0xff] }
 0x27a   : > { %v1782_v7 = vld [vmem:[%s3728_s9 + $0x128] sm:$0xff]  ;;  %v1781_v8 = vld [vmem:[%s3728_s9 + $0x120] sm:$0xff]  ;;  %v1784_v9 = vld [vmem:[%s3728_s9 + $0x138] sm:$0xff] }
 0x27b   : > { %v1783_v10 = vld [vmem:[%s3728_s9 + $0x130] sm:$0xff]  ;;  %v1786_v11 = vld [vmem:[%s3728_s9 + $0x148] sm:$0xff]  ;;  %v1785_v12 = vld [vmem:[%s3728_s9 + $0x140] sm:$0xff] }
 0x27c   : > { %1910 = vperm.xlu1 %3439, %v1752_v41   ;;  %1905 = vperm.xlu0 %3438, %v1751_v42   ;;  %v1788_v13 = vld [vmem:[%s3728_s9 + $0x158] sm:$0xff]  ;;  %v1787_v14 = vld [vmem:[%s3728_s9 + $0x150] sm:$0xff]  ;;  %v1790_v15 = vld [vmem:[%s3728_s9 + $0x168] sm:$0xff] }
 0x27d   : > { %v1789_v16 = vld [vmem:[%s3728_s9 + $0x160] sm:$0xff]  ;;  %v1792_v17 = vld [vmem:[%s3728_s9 + $0x178] sm:$0xff]  ;;  %v1791_v18 = vld [vmem:[%s3728_s9 + $0x170] sm:$0xff] }
 0x27e   : > { %v1794_v19 = vld [vmem:[%s3728_s9 + $0x188] sm:$0xff]  ;;  %v1793_v20 = vld [vmem:[%s3728_s9 + $0x180] sm:$0xff]  ;;  %v1796_v21 = vld [vmem:[%s3728_s9 + $0x198] sm:$0xff] }
 0x27f   : > { %v1795_v22 = vld [vmem:[%s3728_s9 + $0x190] sm:$0xff]  ;;  %v1798_v23 = vld [vmem:[%s3728_s9 + $0x1a8] sm:$0xff]  ;;  %v1797_v24 = vld [vmem:[%s3728_s9 + $0x1a0] sm:$0xff] }
 0x280   : > { %1920 = vperm.xlu1 %3439, %v1754_v43   ;;  %1915 = vperm.xlu0 %3438, %v1753_v44   ;;  %v1800_v25 = vld [vmem:[%s3728_s9 + $0x1b8] sm:$0xff]  ;;  %v1799_v26 = vld [vmem:[%s3728_s9 + $0x1b0] sm:$0xff]  ;;  %v1802_v27 = vld [vmem:[%s3728_s9 + $0x1c8] sm:$0xff] }
 0x281   : > { %v1801_v28 = vld [vmem:[%s3728_s9 + $0x1c0] sm:$0xff]  ;;  %v1804_v29 = vld [vmem:[%s3728_s9 + $0x1d8] sm:$0xff]  ;;  %v1803_v30 = vld [vmem:[%s3728_s9 + $0x1d0] sm:$0xff] }
 0x282   : > { %v1806_v31 = vld [vmem:[%s3728_s9 + $0x1e8] sm:$0xff]  ;;  %v1805_v32 = vld [vmem:[%s3728_s9 + $0x1e0] sm:$0xff]  ;;  %v4017_v33 = vld [vmem:[#allocation2 + $0xd8] sm:$0xff] }
 0x283   : > { %v4019_v34 = vld [vmem:[#allocation2 + $0xb0] sm:$0xff]  ;;  %v4022_v35 = vld [vmem:[%s3728_s9 + $0x1f8] sm:$0xff]  ;;  %v4031_v38 = vld [vmem:[%s3733_s12] sm:$0xff] }
 0x284   : > { %1930 = vperm.xlu1 %3439, %v1756_v45   ;;  %1925 = vperm.xlu0 %3438, %v1755_v46   ;;  %v4025_v36 = vld [vmem:[%s3728_s9 + $0x1f0] sm:$0xff]  ;;  %v4037_v41 = vld [vmem:[#allocation2 + $0x18] sm:$0xff]  ;;  %v4045_v44 = vld [vmem:[%s3733_s12 + $0x8] sm:$0xff] }
 0x285   : > { %v4028_v37 = vld [vmem:[%s3733_s12 + $0x10] sm:$0xff]  ;;  %v4040_v42 = vld [vmem:[%s3733_s12 + $0x18] sm:$0xff]  ;;  %v4048_v45 = vld [vmem:[%s3733_s12 + $0x28] sm:$0xff] }
 0x286   : > { %v4042_v43 = vld [vmem:[#allocation2 + $0x1b0] sm:$0xff]  ;;  %v4051_v46 = vld [vmem:[%s3733_s12 + $0x20] sm:$0xff] }
 0x288   : > { %1940 = vperm.xlu1 %3439, %v1758_v47   ;;  %1935 = vperm.xlu0 %3438, %v1757_v48   ;;  %v4054_v47 = vld [vmem:[%s3733_s12 + $0x38] sm:$0xff]  ;;  %v4057_v48 = vld [vmem:[%s3733_s12 + $0x30] sm:$0xff] }
 0x28c   : > { %1950 = vperm.xlu1 %3439, %v1760_v49   ;;  %1945 = vperm.xlu0 %3438, %v1759_v50   ;;  %v4060_v49 = vld [vmem:[%s3733_s12 + $0x48] sm:$0xff]  ;;  %v4063_v50 = vld [vmem:[%s3733_s12 + $0x40] sm:$0xff] }
 0x290   : > { %1960 = vperm.xlu1 %3439, %v1762_v51   ;;  %1955 = vperm.xlu0 %3438, %v1761_v52   ;;  %v4066_v51 = vld [vmem:[%s3733_s12 + $0x58] sm:$0xff]  ;;  %v4069_v52 = vld [vmem:[%s3733_s12 + $0x50] sm:$0xff] }
 0x294   : > { %1970 = vperm.xlu1 %3439, %v1764_v53   ;;  %1965 = vperm.xlu0 %3438, %v1763_v54   ;;  %v4072_v53 = vld [vmem:[%s3733_s12 + $0x68] sm:$0xff]  ;;  %v4075_v54 = vld [vmem:[%s3733_s12 + $0x60] sm:$0xff] }
 0x298   : > { %1980 = vperm.xlu1 %3439, %v1766_v55   ;;  %1975 = vperm.xlu0 %3438, %v1765_v56   ;;  %v4078_v55 = vld [vmem:[%s3733_s12 + $0x78] sm:$0xff]  ;;  %v4081_v56 = vld [vmem:[%s3733_s12 + $0x70] sm:$0xff] }
 0x29c   : > { %1990 = vperm.xlu1 %3439, %v1768_v57   ;;  %1985 = vperm.xlu0 %3438, %v1767_v58   ;;  %v4084_v57 = vld [vmem:[%s3733_s12 + $0x88] sm:$0xff]  ;;  %v4087_v58 = vld [vmem:[%s3733_s12 + $0x80] sm:$0xff] }
 0x2a0   : > { %2000 = vperm.xlu1 %3439, %v1770_v59   ;;  %1995 = vperm.xlu0 %3438, %v1769_v60   ;;  %v4090_v59 = vld [vmem:[%s3733_s12 + $0x98] sm:$0xff]  ;;  %v4093_v60 = vld [vmem:[%s3733_s12 + $0x90] sm:$0xff] }
 0x2a4   : > { %2010 = vperm.xlu1 %3439, %v1772_v61   ;;  %2005 = vperm.xlu0 %3438, %v1771_v62   ;;  %v4096_v61 = vld [vmem:[%s3733_s12 + $0xa8] sm:$0xff]  ;;  %v4099_v62 = vld [vmem:[%s3733_s12 + $0xa0] sm:$0xff] }
 0x2a8   : > { %2020 = vperm.xlu1 %3439, %v1774_v63   ;;  %2015 = vperm.xlu0 %3438, %v1773_v0   ;;  %v4102_v63 = vld [vmem:[%s3733_s12 + $0xb8] sm:$0xff]  ;;  %v4105_v0 = vld [vmem:[%s3733_s12 + $0xb0] sm:$0xff] }
 0x2ac   : > { %2030 = vperm.xlu1 %3439, %v1776_v1   ;;  %2025 = vperm.xlu0 %3438, %v1775_v2   ;;  %v4108_v1 = vld [vmem:[%s3733_s12 + $0xc8] sm:$0xff]  ;;  %v4111_v2 = vld [vmem:[%s3733_s12 + $0xc0] sm:$0xff] }
 0x2b0   : > { %2040 = vperm.xlu1 %3439, %v1778_v3   ;;  %2035 = vperm.xlu0 %3438, %v1777_v4   ;;  %v4114_v3 = vld [vmem:[%s3733_s12 + $0xd8] sm:$0xff]  ;;  %v4117_v4 = vld [vmem:[%s3733_s12 + $0xd0] sm:$0xff] }
 0x2b4   : > { %2050 = vperm.xlu1 %3439, %v1780_v5   ;;  %2045 = vperm.xlu0 %3438, %v1779_v6   ;;  %v4120_v5 = vld [vmem:[%s3733_s12 + $0xe8] sm:$0xff]  ;;  %v4123_v6 = vld [vmem:[%s3733_s12 + $0xe0] sm:$0xff] }
 0x2b8   : > { %2060 = vperm.xlu1 %3439, %v1782_v7   ;;  %2055 = vperm.xlu0 %3438, %v1781_v8   ;;  %v4126_v7 = vld [vmem:[%s3733_s12 + $0xf8] sm:$0xff]  ;;  %v4129_v8 = vld [vmem:[%s3733_s12 + $0xf0] sm:$0xff] }
 0x2bc   : > { %2070 = vperm.xlu1 %3439, %v1784_v9   ;;  %2065 = vperm.xlu0 %3438, %v1783_v10   ;;  %v4132_v9 = vld [vmem:[%s3733_s12 + $0x108] sm:$0xff]  ;;  %v4135_v10 = vld [vmem:[%s3733_s12 + $0x100] sm:$0xff] }
 0x2c0   : > { %2080 = vperm.xlu1 %3439, %v1786_v11   ;;  %2075 = vperm.xlu0 %3438, %v1785_v12   ;;  %v4138_v11 = vld [vmem:[%s3733_s12 + $0x118] sm:$0xff]  ;;  %v4141_v12 = vld [vmem:[%s3733_s12 + $0x110] sm:$0xff] }
 0x2c4   : > { %2090 = vperm.xlu1 %3439, %v1788_v13   ;;  %2085 = vperm.xlu0 %3438, %v1787_v14   ;;  %v4144_v13 = vld [vmem:[%s3733_s12 + $0x128] sm:$0xff]  ;;  %v4147_v14 = vld [vmem:[%s3733_s12 + $0x120] sm:$0xff] }
 0x2c8   : > { %2100 = vperm.xlu1 %3439, %v1790_v15   ;;  %2095 = vperm.xlu0 %3438, %v1789_v16   ;;  %v4150_v15 = vld [vmem:[%s3733_s12 + $0x138] sm:$0xff]  ;;  %v4153_v16 = vld [vmem:[%s3733_s12 + $0x130] sm:$0xff] }
 0x2cc   : > { %2110 = vperm.xlu1 %3439, %v1792_v17   ;;  %2105 = vperm.xlu0 %3438, %v1791_v18   ;;  %v4156_v17 = vld [vmem:[%s3733_s12 + $0x148] sm:$0xff]  ;;  %v4159_v18 = vld [vmem:[%s3733_s12 + $0x140] sm:$0xff] }
 0x2d0   : > { %2120 = vperm.xlu1 %3439, %v1794_v19   ;;  %2115 = vperm.xlu0 %3438, %v1793_v20   ;;  %v4162_v19 = vld [vmem:[%s3733_s12 + $0x158] sm:$0xff]  ;;  %v4165_v20 = vld [vmem:[%s3733_s12 + $0x150] sm:$0xff] }
 0x2d4   : > { %2130 = vperm.xlu1 %3439, %v1796_v21   ;;  %2125 = vperm.xlu0 %3438, %v1795_v22   ;;  %v4168_v21 = vld [vmem:[%s3733_s12 + $0x168] sm:$0xff]  ;;  %v4171_v22 = vld [vmem:[%s3733_s12 + $0x160] sm:$0xff] }
 0x2d5   : > { %4424 = vst [vmem:[#allocation4_spill] sm:$0xff] %v4168_v21  ;;  %4425 = vst [vmem:[#allocation5_spill] sm:$0xff] %v4171_v22 }
 0x2d8   : > { %2140 = vperm.xlu1 %3439, %v1798_v23   ;;  %2135 = vperm.xlu0 %3438, %v1797_v24   ;;  %v4174_v23 = vld [vmem:[%s3733_s12 + $0x178] sm:$0xff]  ;;  %v4177_v24 = vld [vmem:[%s3733_s12 + $0x170] sm:$0xff] }
 0x2d9   : > { %4426 = vst [vmem:[#allocation6_spill] sm:$0xff] %v4174_v23  ;;  %4427 = vst [vmem:[#allocation7_spill] sm:$0xff] %v4177_v24  ;;  %v4204_v24 = vld [vmem:[%s3733_s12 + $0x1c8] sm:$0xff] }
 0x2da   : > { %4436 = vst [vmem:[#allocation16_spill] sm:$0xff] %v4204_v24  ;;  %v4225_v24 = vld [vmem:[%s3733_s12 + $0x1e0] sm:$0xff] }
 0x2db   : > { %4441 = vst [vmem:[#allocation21_spill] sm:$0xff] %v4225_v24 }
 0x2dc   : > { %2150 = vperm.xlu1 %3439, %v1800_v25   ;;  %2145 = vperm.xlu0 %3438, %v1799_v26   ;;  %v4180_v25 = vld [vmem:[%s3733_s12 + $0x188] sm:$0xff]  ;;  %v4183_v26 = vld [vmem:[%s3733_s12 + $0x180] sm:$0xff] }
 0x2dd   : > { %4428 = vst [vmem:[#allocation8_spill] sm:$0xff] %v4180_v25  ;;  %4429 = vst [vmem:[#allocation9_spill] sm:$0xff] %v4183_v26  ;;  %v4207_v25 = vld [vmem:[%s3733_s12 + $0x1c0] sm:$0xff] }
 0x2de   : > { %4437 = vst [vmem:[#allocation17_spill] sm:$0xff] %v4207_v25  ;;  %v4228_v25 = vld [vmem:[%s3733_s12 + $0x1f8] sm:$0xff] }
 0x2df   : > { %4442 = vst [vmem:[#allocation22_spill] sm:$0xff] %v4228_v25 }
 0x2e0   : > { %2160 = vperm.xlu1 %3439, %v1802_v27   ;;  %2155 = vperm.xlu0 %3438, %v1801_v28   ;;  %v4186_v27 = vld [vmem:[%s3733_s12 + $0x198] sm:$0xff]  ;;  %v4189_v28 = vld [vmem:[%s3733_s12 + $0x190] sm:$0xff] }
 0x2e1   : > { %4430 = vst [vmem:[#allocation10_spill] sm:$0xff] %v4186_v27  ;;  %4431 = vst [vmem:[#allocation11_spill] sm:$0xff] %v4189_v28 }
 0x2e4   : > { %2170 = vperm.xlu1 %3439, %v1804_v29   ;;  %2165 = vperm.xlu0 %3438, %v1803_v30   ;;  %v4192_v29 = vld [vmem:[%s3733_s12 + $0x1a8] sm:$0xff]  ;;  %v4195_v30 = vld [vmem:[%s3733_s12 + $0x1a0] sm:$0xff] }
 0x2e5   : > { %4432 = vst [vmem:[#allocation12_spill] sm:$0xff] %v4192_v29  ;;  %4433 = vst [vmem:[#allocation13_spill] sm:$0xff] %v4195_v30  ;;  %v4216_v30 = vld [vmem:[%s3733_s12 + $0x1d8] sm:$0xff] }
 0x2e6   : > { %4438 = vst [vmem:[#allocation18_spill] sm:$0xff] %v4216_v30 }
 0x2e8   : > { %2180 = vperm.xlu1 %3439, %v1806_v31   ;;  %2175 = vperm.xlu0 %3438, %v1805_v32   ;;  %v4198_v31 = vld [vmem:[%s3733_s12 + $0x1b8] sm:$0xff]  ;;  %v4201_v32 = vld [vmem:[%s3733_s12 + $0x1b0] sm:$0xff] }
 0x2e9   : > { %4434 = vst [vmem:[#allocation14_spill] sm:$0xff] %v4198_v31  ;;  %4435 = vst [vmem:[#allocation15_spill] sm:$0xff] %v4201_v32  ;;  %v4219_v31 = vld [vmem:[%s3733_s12 + $0x1d0] sm:$0xff]  ;;  %v4222_v32 = vld [vmem:[%s3733_s12 + $0x1e8] sm:$0xff] }
 0x2ea   : > { %4439 = vst [vmem:[#allocation19_spill] sm:$0xff] %v4219_v31  ;;  %4440 = vst [vmem:[#allocation20_spill] sm:$0xff] %v4222_v32  ;;  %v1814_v32 = vld [vmem:[#allocation2 + $0x168] sm:$0xff] }
 0x2eb   : > { %v4033_v39 = vpop.permute.xlu1 %1885  ;;  %v4035_v40 = vpop.permute.xlu0 %1875 }
 0x2ec   : > { %v2195_v26 = vmul.f32 %v4033_v39, %v4017_v33  ;;  %v2193_v28 = vmul.f32 %v4035_v40, %v4019_v34  ;;  %2190 = vperm.xlu1 %3439, %v4022_v35   ;;  %2185 = vperm.xlu0 %3438, %v4025_v36   ;;  %v4231_v33 = vld [vmem:[%s3733_s12 + $0x1f0] sm:$0xff] }
 0x2ed   : > { %4443 = vst [vmem:[#allocation23_spill] sm:$0xff] %v4231_v33  ;;  %v1813_v33 = vld [vmem:[#allocation2 + $0x50] sm:$0xff] }
 0x2ee   : > { %v2323_v29 = vadd.f32 %v4028_v37, %v2195_v26  ;;  %v2321_v34 = vadd.f32 %v4031_v38, %v2193_v28  ;;  %v2451_v24 = vmul.f32 %v2195_v26, %v4033_v39  ;;  %v2449_v25 = vmul.f32 %v2193_v28, %v4035_v40  ;;  %v1816_v39 = vld [vmem:[#allocation2 + $0x48] sm:$0xff]  ;;  %v1815_v40 = vld [vmem:[#allocation2 + $0x130] sm:$0xff] }
 0x2ef   : > { %v1891_v27 = vpop.permute.xlu1 %1890  ;;  %v1881_v35 = vpop.permute.xlu0 %1880 }
 0x2f0   : > { %v2196_v36 = vmul.f32 %v1891_v27, %v4037_v41  ;;  %v2194_v30 = vmul.f32 %v1881_v35, %v4042_v43  ;;  %2385 = vst [vmem:[%s3743_s16] sm:$0xff] %v2321_v34  ;;  %2387 = vst [vmem:[%s3743_s16 + $0x10] sm:$0xff] %v2323_v29 }
 0x2f2   : > { %v2324_v37 = vadd.f32 %v4040_v42, %v2196_v36  ;;  %v2452_v38 = vmul.f32 %v2196_v36, %v1891_v27  ;;  %v2322_v31 = vadd.f32 %v4045_v44, %v2194_v30  ;;  %v2450_v41 = vmul.f32 %v2194_v30, %v1881_v35 }
 0x2f3   : > { %v1901_v23 = vpop.permute.xlu1 %1900  ;;  %v1896_v43 = vpop.permute.xlu0 %1895 }
 0x2f4   : > { %v3163_v34 = vpack.c.bf16 %v2452_v38, %v2451_v24  ;;  %v3158_v22 = vpack.c.bf16 %v2450_v41, %v2449_v25  ;;  %v2198_v29 = vmul.f32 %v1901_v23, %v1814_v32  ;;  %v2197_v21 = vmul.f32 %v1896_v43, %v1813_v33  ;;  %2386 = vst [vmem:[%s3743_s16 + $0x8] sm:$0xff] %v2322_v31  ;;  %v1818_v31 = vld [vmem:[#allocation2 + $0x110] sm:$0xff]  ;;  %v1817_v33 = vld [vmem:[#allocation2 + $0x180] sm:$0xff]  ;;  %v1820_v41 = vld [vmem:[#allocation2 + $0x98] sm:$0xff] }
 0x2f5   : > { %2388 = vst [vmem:[%s3743_s16 + $0x18] sm:$0xff] %v2324_v37 }
 0x2f6   : > { %3315 = vst [vmem:[%s3738_s18 + $0x8] sm:$0xff] %v3163_v34   ;;  %3159 = vst [vmem:[%s3738_s18] sm:$0xff] %v3158_v22   ;;  %v2326_v42 = vadd.f32 %v4048_v45, %v2198_v29  ;;  %v2454_v26 = vmul.f32 %v2198_v29, %v1901_v23  ;;  %v2325_v44 = vadd.f32 %v4051_v46, %v2197_v21 }
 0x2f7   : > { %v2453_v27 = vmul.f32 %v2197_v21, %v1896_v43  ;;  %v1911_v28 = vpop.permute.xlu1 %1910  ;;  %v1906_v24 = vpop.permute.xlu0 %1905  ;;  %v1819_v43 = vld [vmem:[#allocation2 + $0x118] sm:$0xff] }
 0x2f8   : > { %v2200_v30 = vmul.f32 %v1911_v28, %v1816_v39  ;;  %v2199_v32 = vmul.f32 %v1906_v24, %v1815_v40  ;;  %2389 = vst [vmem:[%s3743_s16 + $0x20] sm:$0xff] %v2325_v44  ;;  %2390 = vst [vmem:[%s3743_s16 + $0x28] sm:$0xff] %v2326_v42 }
 0x2f9   : > { %v3168_v25 = vpack.c.bf16 %v2454_v26, %v2453_v27  ;;  %v1822_v27 = vld [vmem:[#allocation2 + $0x150] sm:$0xff] }
 0x2fa   : > { %v2328_v22 = vadd.f32 %v4054_v47, %v2200_v30  ;;  %v2456_v45 = vmul.f32 %v2200_v30, %v1911_v28  ;;  %v2327_v23 = vadd.f32 %v4057_v48, %v2199_v32  ;;  %v2455_v46 = vmul.f32 %v2199_v32, %v1906_v24  ;;  %v1821_v28 = vld [vmem:[#allocation2 + $0x120] sm:$0xff] }
 0x2fb   : > { %3316 = vst [vmem:[%s3738_s18 + $0x10] sm:$0xff] %v3168_v25   ;;  %v1921_v21 = vpop.permute.xlu1 %1920  ;;  %v1916_v35 = vpop.permute.xlu0 %1915 }
 0x2fc   : > { %v3173_v36 = vpack.c.bf16 %v2456_v45, %v2455_v46  ;;  %v2202_v37 = vmul.f32 %v1921_v21, %v1818_v31  ;;  %v2201_v38 = vmul.f32 %v1916_v35, %v1817_v33  ;;  %2391 = vst [vmem:[%s3743_s16 + $0x30] sm:$0xff] %v2327_v23  ;;  %2392 = vst [vmem:[%s3743_s16 + $0x38] sm:$0xff] %v2328_v22  ;;  %v1824_v45 = vld [vmem:[#allocation2 + $0x60] sm:$0xff]  ;;  %v1823_v23 = vld [vmem:[#allocation2 + $0x108] sm:$0xff] }
 0x2fe   : > { %3317 = vst [vmem:[%s3738_s18 + $0x18] sm:$0xff] %v3173_v36   ;;  %v2330_v34 = vadd.f32 %v4060_v49, %v2202_v37  ;;  %v2458_v47 = vmul.f32 %v2202_v37, %v1921_v21  ;;  %v2329_v29 = vadd.f32 %v4063_v50, %v2201_v38  ;;  %v2457_v48 = vmul.f32 %v2201_v38, %v1916_v35 }
 0x2ff   : > { %v1931_v39 = vpop.permute.xlu1 %1930  ;;  %v1926_v40 = vpop.permute.xlu0 %1925 }
 0x300   : > { %v3178_v42 = vpack.c.bf16 %v2458_v47, %v2457_v48  ;;  %v2204_v26 = vmul.f32 %v1931_v39, %v1820_v41  ;;  %v2203_v44 = vmul.f32 %v1926_v40, %v1819_v43  ;;  %2393 = vst [vmem:[%s3743_s16 + $0x40] sm:$0xff] %v2329_v29  ;;  %2394 = vst [vmem:[%s3743_s16 + $0x48] sm:$0xff] %v2330_v34  ;;  %v1826_v43 = vld [vmem:[#allocation2 + $0x188] sm:$0xff]  ;;  %v1825_v34 = vld [vmem:[#allocation2 + $0xe0] sm:$0xff] }
 0x302   : > { %3318 = vst [vmem:[%s3738_s18 + $0x20] sm:$0xff] %v3178_v42   ;;  %v2332_v24 = vadd.f32 %v4066_v51, %v2204_v26  ;;  %v2460_v49 = vmul.f32 %v2204_v26, %v1931_v39  ;;  %v2331_v25 = vadd.f32 %v4069_v52, %v2203_v44  ;;  %v2459_v50 = vmul.f32 %v2203_v44, %v1926_v40  ;;  %v1828_v44 = vld [vmem:[#allocation2 + $0x140] sm:$0xff] }
 0x303   : > { %v1941_v30 = vpop.permute.xlu1 %1940  ;;  %v1936_v32 = vpop.permute.xlu0 %1935 }
 0x304   : > { %v3183_v31 = vpack.c.bf16 %v2460_v49, %v2459_v50  ;;  %v2206_v33 = vmul.f32 %v1941_v30, %v1822_v27  ;;  %v2205_v22 = vmul.f32 %v1936_v32, %v1821_v28  ;;  %2395 = vst [vmem:[%s3743_s16 + $0x50] sm:$0xff] %v2331_v25  ;;  %2396 = vst [vmem:[%s3743_s16 + $0x58] sm:$0xff] %v2332_v24  ;;  %v1827_v27 = vld [vmem:[#allocation2 + $0x138] sm:$0xff] }
 0x306   : > { %3319 = vst [vmem:[%s3738_s18 + $0x28] sm:$0xff] %v3183_v31   ;;  %v2334_v46 = vadd.f32 %v4072_v53, %v2206_v33  ;;  %v2462_v51 = vmul.f32 %v2206_v33, %v1941_v30  ;;  %v2333_v21 = vadd.f32 %v4075_v54, %v2205_v22  ;;  %v2461_v52 = vmul.f32 %v2205_v22, %v1936_v32  ;;  %v1830_v31 = vld [vmem:[#allocation2 + $0x1a8] sm:$0xff]  ;;  %v1829_v33 = vld [vmem:[#allocation2 + $0x80] sm:$0xff] }
 0x307   : > { %v1951_v35 = vpop.permute.xlu1 %1950  ;;  %v1946_v36 = vpop.permute.xlu0 %1945 }
 0x308   : > { %v3188_v37 = vpack.c.bf16 %v2462_v51, %v2461_v52  ;;  %v2208_v38 = vmul.f32 %v1951_v35, %v1824_v45  ;;  %v2207_v41 = vmul.f32 %v1946_v36, %v1823_v23  ;;  %2397 = vst [vmem:[%s3743_s16 + $0x60] sm:$0xff] %v2333_v21  ;;  %2398 = vst [vmem:[%s3743_s16 + $0x68] sm:$0xff] %v2334_v46 }
 0x30a   : > { %3320 = vst [vmem:[%s3738_s18 + $0x30] sm:$0xff] %v3188_v37   ;;  %v2336_v47 = vadd.f32 %v4078_v55, %v2208_v38  ;;  %v2464_v53 = vmul.f32 %v2208_v38, %v1951_v35  ;;  %v2335_v29 = vadd.f32 %v4081_v56, %v2207_v41  ;;  %v2463_v54 = vmul.f32 %v2207_v41, %v1946_v36  ;;  %v1832_v35 = vld [vmem:[#allocation2 + $0x28] sm:$0xff]  ;;  %v1831_v36 = vld [vmem:[#allocation2 + $0x1b8] sm:$0xff] }
 0x30b   : > { %v1961_v48 = vpop.permute.xlu1 %1960  ;;  %v1956_v39 = vpop.permute.xlu0 %1955 }
 0x30c   : > { %v3193_v40 = vpack.c.bf16 %v2464_v53, %v2463_v54  ;;  %v2210_v42 = vmul.f32 %v1961_v48, %v1826_v43  ;;  %v2209_v26 = vmul.f32 %v1956_v39, %v1825_v34  ;;  %2399 = vst [vmem:[%s3743_s16 + $0x70] sm:$0xff] %v2335_v29  ;;  %2400 = vst [vmem:[%s3743_s16 + $0x78] sm:$0xff] %v2336_v47  ;;  %v1834_v29 = vld [vmem:[#allocation2 + $0xf8] sm:$0xff]  ;;  %v1833_v54 = vld [vmem:[#allocation2 + $0x1e8] sm:$0xff] }
 0x30e   : > { %3321 = vst [vmem:[%s3738_s18 + $0x38] sm:$0xff] %v3193_v40   ;;  %v2338_v28 = vadd.f32 %v4084_v57, %v2210_v42  ;;  %v2466_v55 = vmul.f32 %v2210_v42, %v1961_v48  ;;  %v2337_v24 = vadd.f32 %v4087_v58, %v2209_v26  ;;  %v2465_v56 = vmul.f32 %v2209_v26, %v1956_v39 }
 0x30f   : > { %v1971_v49 = vpop.permute.xlu1 %1970  ;;  %v1966_v25 = vpop.permute.xlu0 %1965 }
 0x310   : > { %v3198_v50 = vpack.c.bf16 %v2466_v55, %v2465_v56  ;;  %v2212_v30 = vmul.f32 %v1971_v49, %v1828_v44  ;;  %v2211_v32 = vmul.f32 %v1966_v25, %v1827_v27  ;;  %2401 = vst [vmem:[%s3743_s16 + $0x80] sm:$0xff] %v2337_v24  ;;  %2402 = vst [vmem:[%s3743_s16 + $0x88] sm:$0xff] %v2338_v28  ;;  %v1836_v28 = vld [vmem:[#allocation2 + $0x30] sm:$0xff]  ;;  %v1835_v55 = vld [vmem:[#allocation2 + $0x160] sm:$0xff] }
 0x312   : > { %3322 = vst [vmem:[%s3738_s18 + $0x40] sm:$0xff] %v3198_v50   ;;  %v2340_v22 = vadd.f32 %v4090_v59, %v2212_v30  ;;  %v2468_v57 = vmul.f32 %v2212_v30, %v1971_v49  ;;  %v2339_v45 = vadd.f32 %v4093_v60, %v2211_v32  ;;  %v2467_v58 = vmul.f32 %v2211_v32, %v1966_v25 }
 0x313   : > { %v1981_v23 = vpop.permute.xlu1 %1980  ;;  %v1976_v46 = vpop.permute.xlu0 %1975 }
 0x314   : > { %v3203_v51 = vpack.c.bf16 %v2468_v57, %v2467_v58  ;;  %v2214_v21 = vmul.f32 %v1981_v23, %v1830_v31  ;;  %v2213_v52 = vmul.f32 %v1976_v46, %v1829_v33  ;;  %2403 = vst [vmem:[%s3743_s16 + $0x90] sm:$0xff] %v2339_v45  ;;  %2404 = vst [vmem:[%s3743_s16 + $0x98] sm:$0xff] %v2340_v22  ;;  %v1838_v31 = vld [vmem:[#allocation2] sm:$0xff] }
 0x315   : > { %v1837_v33 = vld [vmem:[#allocation2 + $0x1e0] sm:$0xff] }
 0x316   : > { %3323 = vst [vmem:[%s3738_s18 + $0x48] sm:$0xff] %v3203_v51   ;;  %v2342_v37 = vadd.f32 %v4096_v61, %v2214_v21  ;;  %v2470_v59 = vmul.f32 %v2214_v21, %v1981_v23  ;;  %v2341_v38 = vadd.f32 %v4099_v62, %v2213_v52  ;;  %v2469_v60 = vmul.f32 %v2213_v52, %v1976_v46  ;;  %v1840_v21 = vld [vmem:[#allocation2 + $0x8] sm:$0xff]  ;;  %v1839_v52 = vld [vmem:[#allocation2 + $0xf0] sm:$0xff] }
 0x317   : > { %v1991_v41 = vpop.permute.xlu1 %1990  ;;  %v1986_v43 = vpop.permute.xlu0 %1985 }
 0x318   : > { %v3208_v34 = vpack.c.bf16 %v2470_v59, %v2469_v60  ;;  %v2216_v47 = vmul.f32 %v1991_v41, %v1832_v35  ;;  %v2215_v53 = vmul.f32 %v1986_v43, %v1831_v36  ;;  %2405 = vst [vmem:[%s3743_s16 + $0xa0] sm:$0xff] %v2341_v38  ;;  %2406 = vst [vmem:[%s3743_s16 + $0xa8] sm:$0xff] %v2342_v37 }
 0x31a   : > { %3324 = vst [vmem:[%s3738_s18 + $0x50] sm:$0xff] %v3208_v34   ;;  %v2344_v48 = vadd.f32 %v4102_v63, %v2216_v47  ;;  %v2472_v61 = vmul.f32 %v2216_v47, %v1991_v41  ;;  %v2343_v39 = vadd.f32 %v4105_v0, %v2215_v53  ;;  %v2471_v62 = vmul.f32 %v2215_v53, %v1986_v43  ;;  %v1842_v43 = vld [vmem:[#allocation2 + $0x1d0] sm:$0xff]  ;;  %v1841_v34 = vld [vmem:[#allocation2 + $0x148] sm:$0xff] }
 0x31b   : > { %v2001_v40 = vpop.permute.xlu1 %2000  ;;  %v1996_v42 = vpop.permute.xlu0 %1995 }
 0x31c   : > { %v3213_v26 = vpack.c.bf16 %v2472_v61, %v2471_v62  ;;  %v2218_v44 = vmul.f32 %v2001_v40, %v1834_v29  ;;  %v2217_v27 = vmul.f32 %v1996_v42, %v1833_v54  ;;  %2407 = vst [vmem:[%s3743_s16 + $0xb0] sm:$0xff] %v2343_v39  ;;  %2408 = vst [vmem:[%s3743_s16 + $0xb8] sm:$0xff] %v2344_v48  ;;  %v1844_v62 = vld [vmem:[#allocation2 + $0xc8] sm:$0xff] }
 0x31e   : > { %3325 = vst [vmem:[%s3738_s18 + $0x58] sm:$0xff] %v3213_v26   ;;  %v2346_v24 = vadd.f32 %v4108_v1, %v2218_v44  ;;  %v2474_v63 = vmul.f32 %v2218_v44, %v2001_v40  ;;  %v2345_v56 = vadd.f32 %v4111_v2, %v2217_v27  ;;  %v2473_v0 = vmul.f32 %v2217_v27, %v1996_v42  ;;  %v1843_v40 = vld [vmem:[#allocation2 + $0x100] sm:$0xff] }
 0x31f   : > { %v2011_v49 = vpop.permute.xlu1 %2010  ;;  %v2006_v25 = vpop.permute.xlu0 %2005 }
 0x320   : > { %v3218_v50 = vpack.c.bf16 %v2474_v63, %v2473_v0  ;;  %v2220_v30 = vmul.f32 %v2011_v49, %v1836_v28  ;;  %v2219_v32 = vmul.f32 %v2006_v25, %v1835_v55  ;;  %2409 = vst [vmem:[%s3743_s16 + $0xc0] sm:$0xff] %v2345_v56  ;;  %2410 = vst [vmem:[%s3743_s16 + $0xc8] sm:$0xff] %v2346_v24  ;;  %v1846_v63 = vld [vmem:[#allocation2 + $0x1f8] sm:$0xff]  ;;  %v1845_v56 = vld [vmem:[#allocation2 + $0x40] sm:$0xff] }
 0x322   : > { %3326 = vst [vmem:[%s3738_s18 + $0x60] sm:$0xff] %v3218_v50   ;;  %v2348_v22 = vadd.f32 %v4114_v3, %v2220_v30  ;;  %v2476_v1 = vmul.f32 %v2220_v30, %v2011_v49  ;;  %v2347_v57 = vadd.f32 %v4117_v4, %v2219_v32  ;;  %v2475_v2 = vmul.f32 %v2219_v32, %v2006_v25 }
 0x323   : > { %v2021_v45 = vpop.permute.xlu1 %2020  ;;  %v2016_v58 = vpop.permute.xlu0 %2015 }
 0x324   : > { %v3223_v23 = vpack.c.bf16 %v2476_v1, %v2475_v2  ;;  %v2222_v46 = vmul.f32 %v2021_v45, %v1838_v31  ;;  %v2221_v51 = vmul.f32 %v2016_v58, %v1837_v33  ;;  %2411 = vst [vmem:[%s3743_s16 + $0xd0] sm:$0xff] %v2347_v57  ;;  %2412 = vst [vmem:[%s3743_s16 + $0xd8] sm:$0xff] %v2348_v22  ;;  %v1848_v33 = vld [vmem:[#allocation2 + $0x128] sm:$0xff]  ;;  %v1847_v22 = vld [vmem:[#allocation2 + $0x20] sm:$0xff] }
 0x326   : > { %3327 = vst [vmem:[%s3738_s18 + $0x68] sm:$0xff] %v3223_v23   ;;  %v2350_v35 = vadd.f32 %v4120_v5, %v2222_v46  ;;  %v2478_v3 = vmul.f32 %v2222_v46, %v2021_v45  ;;  %v2349_v36 = vadd.f32 %v4123_v6, %v2221_v51  ;;  %v2477_v4 = vmul.f32 %v2221_v51, %v2016_v58  ;;  %v1850_v51 = vld [vmem:[#allocation2 + $0x1f0] sm:$0xff] }
 0x327   : > { %v2031_v37 = vpop.permute.xlu1 %2030  ;;  %v2026_v59 = vpop.permute.xlu0 %2025 }
 0x328   : > { %v3228_v38 = vpack.c.bf16 %v2478_v3, %v2477_v4  ;;  %v2224_v60 = vmul.f32 %v2031_v37, %v1840_v21  ;;  %v2223_v41 = vmul.f32 %v2026_v59, %v1839_v52  ;;  %2413 = vst [vmem:[%s3743_s16 + $0xe0] sm:$0xff] %v2349_v36  ;;  %2414 = vst [vmem:[%s3743_s16 + $0xe8] sm:$0xff] %v2350_v35  ;;  %v1849_v21 = vld [vmem:[#allocation2 + $0x1a0] sm:$0xff] }
 0x32a   : > { %3328 = vst [vmem:[%s3738_s18 + $0x70] sm:$0xff] %v3228_v38   ;;  %v2352_v47 = vadd.f32 %v4126_v7, %v2224_v60  ;;  %v2480_v5 = vmul.f32 %v2224_v60, %v2031_v37  ;;  %v2351_v53 = vadd.f32 %v4129_v8, %v2223_v41  ;;  %v2479_v6 = vmul.f32 %v2223_v41, %v2026_v59  ;;  %v1852_v38 = vld [vmem:[#allocation2 + $0x78] sm:$0xff]  ;;  %v1851_v60 = vld [vmem:[#allocation2 + $0xe8] sm:$0xff] }
 0x32b   : > { %v2041_v29 = vpop.permute.xlu1 %2040  ;;  %v2036_v54 = vpop.permute.xlu0 %2035 }
 0x32c   : > { %v3233_v48 = vpack.c.bf16 %v2480_v5, %v2479_v6  ;;  %v2226_v61 = vmul.f32 %v2041_v29, %v1842_v43  ;;  %v2225_v39 = vmul.f32 %v2036_v54, %v1841_v34  ;;  %2415 = vst [vmem:[%s3743_s16 + $0xf0] sm:$0xff] %v2351_v53  ;;  %2416 = vst [vmem:[%s3743_s16 + $0xf8] sm:$0xff] %v2352_v47 }
 0x32e   : > { %3329 = vst [vmem:[%s3738_s18 + $0x78] sm:$0xff] %v3233_v48   ;;  %v2354_v42 = vadd.f32 %v4132_v9, %v2226_v61  ;;  %v2482_v7 = vmul.f32 %v2226_v61, %v2041_v29  ;;  %v2353_v26 = vadd.f32 %v4135_v10, %v2225_v39  ;;  %v2481_v8 = vmul.f32 %v2225_v39, %v2036_v54  ;;  %v1854_v29 = vld [vmem:[#allocation2 + $0x90] sm:$0xff] }
 0x32f   : > { %v2051_v44 = vpop.permute.xlu1 %2050  ;;  %v2046_v27 = vpop.permute.xlu0 %2045  ;;  %v1853_v54 = vld [vmem:[#allocation2 + $0x70] sm:$0xff] }
 0x330   : > { %v3238_v28 = vpack.c.bf16 %v2482_v7, %v2481_v8  ;;  %v2228_v55 = vmul.f32 %v2051_v44, %v1844_v62  ;;  %v2227_v24 = vmul.f32 %v2046_v27, %v1843_v40  ;;  %2417 = vst [vmem:[%s3743_s16 + $0x100] sm:$0xff] %v2353_v26  ;;  %2418 = vst [vmem:[%s3743_s16 + $0x108] sm:$0xff] %v2354_v42  ;;  %v1856_v26 = vld [vmem:[#allocation2 + $0xd0] sm:$0xff]  ;;  %v1855_v8 = vld [vmem:[#allocation2 + $0x1d8] sm:$0xff] }
 0x332   : > { %3330 = vst [vmem:[%s3738_s18 + $0x80] sm:$0xff] %v3238_v28   ;;  %v2356_v0 = vadd.f32 %v4138_v11, %v2228_v55  ;;  %v2484_v9 = vmul.f32 %v2228_v55, %v2051_v44  ;;  %v2355_v49 = vadd.f32 %v4141_v12, %v2227_v24  ;;  %v2483_v10 = vmul.f32 %v2227_v24, %v2046_v27  ;;  %v4444_v44 = vld [vmem:[#allocation4_spill] sm:$0xff]  ;;  %v4445_v28 = vld [vmem:[#allocation5_spill] sm:$0xff] }
 0x333   : > { %v2061_v25 = vpop.permute.xlu1 %2060  ;;  %v2056_v50 = vpop.permute.xlu0 %2055 }
 0x334   : > { %v3243_v30 = vpack.c.bf16 %v2484_v9, %v2483_v10  ;;  %v2230_v32 = vmul.f32 %v2061_v25, %v1846_v63  ;;  %v2229_v31 = vmul.f32 %v2056_v50, %v1845_v56  ;;  %2419 = vst [vmem:[%s3743_s16 + $0x110] sm:$0xff] %v2355_v49  ;;  %2420 = vst [vmem:[%s3743_s16 + $0x118] sm:$0xff] %v2356_v0  ;;  %v1858_v49 = vld [vmem:[#allocation2 + $0x88] sm:$0xff]  ;;  %v1857_v10 = vld [vmem:[#allocation2 + $0xb8] sm:$0xff] }
 0x336   : > { %3331 = vst [vmem:[%s3738_s18 + $0x88] sm:$0xff] %v3243_v30   ;;  %v2358_v1 = vadd.f32 %v4144_v13, %v2230_v32  ;;  %v2486_v11 = vmul.f32 %v2230_v32, %v2061_v25  ;;  %v2357_v57 = vadd.f32 %v4147_v14, %v2229_v31  ;;  %v2485_v12 = vmul.f32 %v2229_v31, %v2056_v50  ;;  %v4446_v25 = vld [vmem:[#allocation6_spill] sm:$0xff]  ;;  %v4447_v32 = vld [vmem:[#allocation7_spill] sm:$0xff] }
 0x337   : > { %v2071_v2 = vpop.permute.xlu1 %2070  ;;  %v2066_v45 = vpop.permute.xlu0 %2065 }
 0x338   : > { %v3248_v58 = vpack.c.bf16 %v2486_v11, %v2485_v12  ;;  %v2232_v23 = vmul.f32 %v2071_v2, %v1848_v33  ;;  %v2231_v46 = vmul.f32 %v2066_v45, %v1847_v22  ;;  %2421 = vst [vmem:[%s3743_s16 + $0x120] sm:$0xff] %v2357_v57  ;;  %2422 = vst [vmem:[%s3743_s16 + $0x128] sm:$0xff] %v2358_v1 }
 0x33a   : > { %3332 = vst [vmem:[%s3738_s18 + $0x90] sm:$0xff] %v3248_v58   ;;  %v2360_v52 = vadd.f32 %v4150_v15, %v2232_v23  ;;  %v2488_v13 = vmul.f32 %v2232_v23, %v2071_v2  ;;  %v2359_v35 = vadd.f32 %v4153_v16, %v2231_v46  ;;  %v2487_v14 = vmul.f32 %v2231_v46, %v2066_v45  ;;  %v1860_v2 = vld [vmem:[#allocation2 + $0x1c8] sm:$0xff]  ;;  %v4448_v58 = vld [vmem:[#allocation8_spill] sm:$0xff] }
 0x33b   : > { %v2081_v3 = vpop.permute.xlu1 %2080  ;;  %v2076_v36 = vpop.permute.xlu0 %2075  ;;  %v1859_v45 = vld [vmem:[#allocation2 + $0xa8] sm:$0xff] }
 0x33c   : > { %v3253_v4 = vpack.c.bf16 %v2488_v13, %v2487_v14  ;;  %v2234_v37 = vmul.f32 %v2081_v3, %v1850_v51  ;;  %v2233_v59 = vmul.f32 %v2076_v36, %v1849_v21  ;;  %2423 = vst [vmem:[%s3743_s16 + $0x130] sm:$0xff] %v2359_v35  ;;  %2424 = vst [vmem:[%s3743_s16 + $0x138] sm:$0xff] %v2360_v52  ;;  %v4449_v51 = vld [vmem:[#allocation9_spill] sm:$0xff] }
 0x33e   : > { %3333 = vst [vmem:[%s3738_s18 + $0x98] sm:$0xff] %v3253_v4   ;;  %v2362_v41 = vadd.f32 %v4156_v17, %v2234_v37  ;;  %v2490_v15 = vmul.f32 %v2234_v37, %v2081_v3  ;;  %v2361_v43 = vadd.f32 %v4159_v18, %v2233_v59  ;;  %v2489_v16 = vmul.f32 %v2233_v59, %v2076_v36  ;;  %v1862_v4 = vld [vmem:[#allocation2 + $0x178] sm:$0xff]  ;;  %v1861_v37 = vld [vmem:[#allocation2 + $0x170] sm:$0xff] }
 0x33f   : > { %v2091_v34 = vpop.permute.xlu1 %2090  ;;  %v2086_v47 = vpop.permute.xlu0 %2085  ;;  %v4450_v59 = vld [vmem:[#allocation10_spill] sm:$0xff] }
 0x340   : > { %v3258_v5 = vpack.c.bf16 %v2490_v15, %v2489_v16  ;;  %v2236_v53 = vmul.f32 %v2091_v34, %v1852_v38  ;;  %v2235_v6 = vmul.f32 %v2086_v47, %v1851_v60  ;;  %2425 = vst [vmem:[%s3743_s16 + $0x140] sm:$0xff] %v2361_v43  ;;  %2426 = vst [vmem:[%s3743_s16 + $0x148] sm:$0xff] %v2362_v41  ;;  %v4451_v41 = vld [vmem:[#allocation11_spill] sm:$0xff] }
 0x342   : > { %3334 = vst [vmem:[%s3738_s18 + $0xa0] sm:$0xff] %v3258_v5   ;;  %v2364_v48 = vadd.f32 %v4162_v19, %v2236_v53  ;;  %v2492_v17 = vmul.f32 %v2236_v53, %v2091_v34  ;;  %v2363_v61 = vadd.f32 %v4165_v20, %v2235_v6  ;;  %v2491_v18 = vmul.f32 %v2235_v6, %v2086_v47  ;;  %v1864_v6 = vld [vmem:[#allocation2 + $0x190] sm:$0xff] }
 0x343   : > { %v2101_v39 = vpop.permute.xlu1 %2100  ;;  %v2096_v62 = vpop.permute.xlu0 %2095 }
 0x344   : > { %v3263_v40 = vpack.c.bf16 %v2492_v17, %v2491_v18  ;;  %v2238_v42 = vmul.f32 %v2101_v39, %v1854_v29  ;;  %v2237_v7 = vmul.f32 %v2096_v62, %v1853_v54  ;;  %2427 = vst [vmem:[%s3743_s16 + $0x150] sm:$0xff] %v2363_v61  ;;  %2428 = vst [vmem:[%s3743_s16 + $0x158] sm:$0xff] %v2364_v48  ;;  %v1863_v29 = vld [vmem:[#allocation2 + $0x68] sm:$0xff]  ;;  %v4452_v54 = vld [vmem:[#allocation12_spill] sm:$0xff] }
 0x345   : > { %v4453_v61 = vld [vmem:[#allocation13_spill] sm:$0xff] }
 0x346   : > { %3335 = vst [vmem:[%s3738_s18 + $0xa8] sm:$0xff] %v3263_v40   ;;  %v2366_v27 = vadd.f32 %v4444_v44, %v2238_v42  ;;  %v2494_v19 = vmul.f32 %v2238_v42, %v2101_v39  ;;  %v2365_v55 = vadd.f32 %v4445_v28, %v2237_v7  ;;  %v2493_v20 = vmul.f32 %v2237_v7, %v2096_v62  ;;  %v1865_v44 = vld [vmem:[#allocation2 + $0x198] sm:$0xff] }
 0x347   : > { %v2111_v24 = vpop.permute.xlu1 %2110  ;;  %v2106_v63 = vpop.permute.xlu0 %2105 }
 0x348   : > { %v3268_v56 = vpack.c.bf16 %v2494_v19, %v2493_v20  ;;  %v2240_v0 = vmul.f32 %v2111_v24, %v1856_v26  ;;  %v2239_v9 = vmul.f32 %v2106_v63, %v1855_v8  ;;  %2429 = vst [vmem:[%s3743_s16 + $0x160] sm:$0xff] %v2365_v55  ;;  %2430 = vst [vmem:[%s3743_s16 + $0x168] sm:$0xff] %v2366_v27  ;;  %v1866_v8 = vld [vmem:[#allocation2 + $0x38] sm:$0xff]  ;;  %v4454_v27 = vld [vmem:[#allocation14_spill] sm:$0xff] }
 0x349   : > { %v4455_v55 = vld [vmem:[#allocation15_spill] sm:$0xff] }
 0x34a   : > { %3336 = vst [vmem:[%s3738_s18 + $0xb0] sm:$0xff] %v3268_v56   ;;  %v2368_v50 = vadd.f32 %v4446_v25, %v2240_v0  ;;  %v2496_v30 = vmul.f32 %v2240_v0, %v2111_v24  ;;  %v2367_v31 = vadd.f32 %v4447_v32, %v2239_v9  ;;  %v2495_v33 = vmul.f32 %v2239_v9, %v2106_v63  ;;  %v1867_v25 = vld [vmem:[#allocation2 + $0xc0] sm:$0xff] }
 0x34b   : > { %v2121_v22 = vpop.permute.xlu1 %2120  ;;  %v2116_v1 = vpop.permute.xlu0 %2115 }
 0x34c   : > { %v3273_v11 = vpack.c.bf16 %v2496_v30, %v2495_v33  ;;  %v2242_v57 = vmul.f32 %v2121_v22, %v1858_v49  ;;  %v2241_v12 = vmul.f32 %v2116_v1, %v1857_v10  ;;  %2431 = vst [vmem:[%s3743_s16 + $0x170] sm:$0xff] %v2367_v31  ;;  %2432 = vst [vmem:[%s3743_s16 + $0x178] sm:$0xff] %v2368_v50  ;;  %v1868_v10 = vld [vmem:[#allocation2 + $0x1c0] sm:$0xff]  ;;  %v4457_v31 = vld [vmem:[#allocation17_spill] sm:$0xff] }
 0x34d   : > { %v4456_v50 = vld [vmem:[#allocation16_spill] sm:$0xff] }
 0x34e   : > { %3337 = vst [vmem:[%s3738_s18 + $0xb8] sm:$0xff] %v3273_v11   ;;  %v2370_v23 = vadd.f32 %v4448_v58, %v2242_v57  ;;  %v2498_v46 = vmul.f32 %v2242_v57, %v2121_v22  ;;  %v2369_v21 = vadd.f32 %v4449_v51, %v2241_v12  ;;  %v2497_v52 = vmul.f32 %v2241_v12, %v2116_v1  ;;  %v1869_v58 = vld [vmem:[#allocation2 + $0x158] sm:$0xff] }
 0x34f   : > { %v2131_v13 = vpop.permute.xlu1 %2130  ;;  %v2126_v35 = vpop.permute.xlu0 %2125 }
 0x350   : > { %v3278_v14 = vpack.c.bf16 %v2498_v46, %v2497_v52  ;;  %v2244_v3 = vmul.f32 %v2131_v13, %v1860_v2  ;;  %v2243_v36 = vmul.f32 %v2126_v35, %v1859_v45  ;;  %2433 = vst [vmem:[%s3743_s16 + $0x180] sm:$0xff] %v2369_v21  ;;  %2434 = vst [vmem:[%s3743_s16 + $0x188] sm:$0xff] %v2370_v23  ;;  %v1870_v45 = vld [vmem:[#allocation2 + $0x10] sm:$0xff]  ;;  %v4459_v21 = vld [vmem:[#allocation19_spill] sm:$0xff] }
 0x351   : > { %v4458_v23 = vld [vmem:[#allocation18_spill] sm:$0xff] }
 0x352   : > { %3338 = vst [vmem:[%s3738_s18 + $0xc0] sm:$0xff] %v3278_v14   ;;  %v2372_v38 = vadd.f32 %v4450_v59, %v2244_v3  ;;  %v2500_v60 = vmul.f32 %v2244_v3, %v2131_v13  ;;  %v2371_v15 = vadd.f32 %v4451_v41, %v2243_v36  ;;  %v2499_v43 = vmul.f32 %v2243_v36, %v2126_v35  ;;  %v1871_v59 = vld [vmem:[#allocation2 + $0x58] sm:$0xff] }
 0x353   : > { %v2141_v16 = vpop.permute.xlu1 %2140  ;;  %v2136_v34 = vpop.permute.xlu0 %2135 }
 0x354   : > { %v3283_v47 = vpack.c.bf16 %v2500_v60, %v2499_v43  ;;  %v2246_v5 = vmul.f32 %v2141_v16, %v1862_v4  ;;  %v2245_v53 = vmul.f32 %v2136_v34, %v1861_v37  ;;  %2435 = vst [vmem:[%s3743_s16 + $0x190] sm:$0xff] %v2371_v15  ;;  %2436 = vst [vmem:[%s3743_s16 + $0x198] sm:$0xff] %v2372_v38  ;;  %v1872_v37 = vld [vmem:[#allocation2 + $0xa0] sm:$0xff]  ;;  %v4461_v15 = vld [vmem:[#allocation21_spill] sm:$0xff] }
 0x355   : > { %v4460_v38 = vld [vmem:[#allocation20_spill] sm:$0xff] }
 0x356   : > { %3339 = vst [vmem:[%s3738_s18 + $0xc8] sm:$0xff] %v3283_v47   ;;  %v2374_v48 = vadd.f32 %v4452_v54, %v2246_v5  ;;  %v2502_v17 = vmul.f32 %v2246_v5, %v2141_v16  ;;  %v2373_v18 = vadd.f32 %v4453_v61, %v2245_v53  ;;  %v2501_v39 = vmul.f32 %v2245_v53, %v2136_v34 }
 0x357   : > { %v2151_v62 = vpop.permute.xlu1 %2150  ;;  %v2146_v40 = vpop.permute.xlu0 %2145 }
 0x358   : > { %v3288_v42 = vpack.c.bf16 %v2502_v17, %v2501_v39  ;;  %v2248_v7 = vmul.f32 %v2151_v62, %v1864_v6  ;;  %v2247_v26 = vmul.f32 %v2146_v40, %v1863_v29  ;;  %2437 = vst [vmem:[%s3743_s16 + $0x1a0] sm:$0xff] %v2373_v18  ;;  %2438 = vst [vmem:[%s3743_s16 + $0x1a8] sm:$0xff] %v2374_v48  ;;  %v4462_v29 = vld [vmem:[#allocation22_spill] sm:$0xff]  ;;  %v4463_v17 = vld [vmem:[#allocation23_spill] sm:$0xff] }
 0x35a   : > { %3340 = vst [vmem:[%s3738_s18 + $0xd0] sm:$0xff] %v3288_v42   ;;  %v2376_v19 = vadd.f32 %v4454_v27, %v2248_v7  ;;  %v2504_v28 = vmul.f32 %v2248_v7, %v2151_v62  ;;  %v2375_v20 = vadd.f32 %v4455_v55, %v2247_v26  ;;  %v2503_v24 = vmul.f32 %v2247_v26, %v2146_v40 }
 0x35b   : > { %v2161_v63 = vpop.permute.xlu1 %2160  ;;  %v2156_v56 = vpop.permute.xlu0 %2155 }
 0x35c   : > { %v3293_v0 = vpack.c.bf16 %v2504_v28, %v2503_v24  ;;  %v2250_v9 = vmul.f32 %v2161_v63, %v1866_v8  ;;  %v2249_v49 = vmul.f32 %v2156_v56, %v1865_v44  ;;  %2439 = vst [vmem:[%s3743_s16 + $0x1b0] sm:$0xff] %v2375_v20  ;;  %2440 = vst [vmem:[%s3743_s16 + $0x1b8] sm:$0xff] %v2376_v19 }
 0x35e   : > { %3341 = vst [vmem:[%s3738_s18 + $0xd8] sm:$0xff] %v3293_v0   ;;  %v2378_v30 = vadd.f32 %v4456_v50, %v2250_v9  ;;  %v2506_v32 = vmul.f32 %v2250_v9, %v2161_v63  ;;  %v2377_v33 = vadd.f32 %v4457_v31, %v2249_v49  ;;  %v2505_v22 = vmul.f32 %v2249_v49, %v2156_v56 }
 0x35f   : > { %v2171_v1 = vpop.permute.xlu1 %2170  ;;  %v2166_v11 = vpop.permute.xlu0 %2165 }
 0x360   : > { %v3298_v57 = vpack.c.bf16 %v2506_v32, %v2505_v22  ;;  %v2252_v12 = vmul.f32 %v2171_v1, %v1868_v10  ;;  %v2251_v2 = vmul.f32 %v2166_v11, %v1867_v25  ;;  %2441 = vst [vmem:[%s3743_s16 + $0x1c0] sm:$0xff] %v2377_v33  ;;  %2442 = vst [vmem:[%s3743_s16 + $0x1c8] sm:$0xff] %v2378_v30 }
 0x362   : > { %3342 = vst [vmem:[%s3738_s18 + $0xe0] sm:$0xff] %v3298_v57   ;;  %v2380_v46 = vadd.f32 %v4458_v23, %v2252_v12  ;;  %v2508_v51 = vmul.f32 %v2252_v12, %v2171_v1  ;;  %v2379_v52 = vadd.f32 %v4459_v21, %v2251_v2  ;;  %v2507_v13 = vmul.f32 %v2251_v2, %v2166_v11 }
 0x363   : > { %v2181_v35 = vpop.permute.xlu1 %2180  ;;  %v2176_v14 = vpop.permute.xlu0 %2175 }
 0x364   : > { %v3303_v3 = vpack.c.bf16 %v2508_v51, %v2507_v13  ;;  %v2254_v36 = vmul.f32 %v2181_v35, %v1870_v45  ;;  %v2253_v4 = vmul.f32 %v2176_v14, %v1869_v58  ;;  %2443 = vst [vmem:[%s3743_s16 + $0x1d0] sm:$0xff] %v2379_v52  ;;  %2444 = vst [vmem:[%s3743_s16 + $0x1d8] sm:$0xff] %v2380_v46 }
 0x366   : > { %3343 = vst [vmem:[%s3738_s18 + $0xe8] sm:$0xff] %v3303_v3   ;;  %v2382_v60 = vadd.f32 %v4460_v38, %v2254_v36  ;;  %v2510_v41 = vmul.f32 %v2254_v36, %v2181_v35  ;;  %v2381_v43 = vadd.f32 %v4461_v15, %v2253_v4  ;;  %v2509_v16 = vmul.f32 %v2253_v4, %v2176_v14 }
 0x367   : > { %v2191_v34 = vpop.permute.xlu1 %2190  ;;  %v2186_v47 = vpop.permute.xlu0 %2185 }
 0x368   : > { %v3308_v5 = vpack.c.bf16 %v2510_v41, %v2509_v16  ;;  %v2256_v53 = vmul.f32 %v2191_v34, %v1872_v37  ;;  %2445 = vst [vmem:[%s3743_s16 + $0x1e0] sm:$0xff] %v2381_v43  ;;  %2446 = vst [vmem:[%s3743_s16 + $0x1e8] sm:$0xff] %v2382_v60  ;;  %v2255_v6 = vmul.f32 %v2186_v47, %v1871_v59 }
 0x36a   : > { %3344 = vst [vmem:[%s3738_s18 + $0xf0] sm:$0xff] %v3308_v5   ;;  %v2384_v54 = vadd.f32 %v4462_v29, %v2256_v53  ;;  %v2512_v48 = vmul.f32 %v2256_v53, %v2191_v34  ;;  %v2383_v61 = vadd.f32 %v4463_v17, %v2255_v6  ;;  %v2511_v18 = vmul.f32 %v2255_v6, %v2186_v47 }
 0x36c   : > { %2448 = vst [vmem:[%s3743_s16 + $0x1f8] sm:$0xff] %v2384_v54  ;;  %2447 = vst [vmem:[%s3743_s16 + $0x1f0] sm:$0xff] %v2383_v61  ;;  %v3313_v39 = vpack.c.bf16 %v2512_v48, %v2511_v18 }
 0x36e   : > { %3345 = vst [vmem:[%s3738_s18 + $0xf8] sm:$0xff] %v3313_v39  }
 0x36f PF: > { %s16_s24 = sadd.s32 1, %s3494_s24   ;;  %s4464_s18 = smov %s3474_s19 }
 0x370   : > { %p13_p13 = scmp.ge.s32.totalorder %s16_s24, 11   ;;  %s4465_s19 = smov %s3580_s6 }
 0x371   : > { %s4466_s20 = smov %s3486_s22  ;;  %s4467_s21 = smov %s3490_s23 }
 0x372   : > { %s4468_s22 = smov %s4471_s25  ;;  %s4469_s23 = smov %s4475_s26 }
 0x373   :  { %15 = sbr.rel (!%p13_p13) target bundleno = 4 (0x4), region = 121 }

</bundles_post_ra>
